<compile_context>
chip_gen: v6e
topology: v6e:2x2x1
jax: 0.10.0
libtpu: 0.0.40
codegen_flags: <defaults>
</compile_context>

<pallas_src>
import functools

import jax
import jax.numpy as jnp
from jax.experimental import pallas as pl
from jax.experimental.pallas import tpu as pltpu

LANE = 128      # vreg lane width
SUBLANE = 8     # vreg sublane count (f32)


def _round_up(x, m):
    return (x + m - 1) // m * m


def _mlp_kernel(n_layers, x_ref, *refs):
    """refs = (w0, b0, w1, b1, ..., w{L-1}, b{L-1}, o_ref).

    x_ref : (TILE_B, n_in)    f32 activation tile for this grid step.
    w_i   : (in_i, out_i)     bf16, VMEM-resident (constant index_map).
    b_i   : (1, out_i)        f32.
    o_ref : (TILE_B, 128)     f32 lane-dense output tile.

    Every Linear except the last is followed by ReLU; the Dropout between the
    13th Linear and its ReLU is identity at inference time.
    """
    o_ref = refs[-1]
    params = refs[:-1]

    h = x_ref[...]                       # f32
    for i in range(n_layers):
        w = params[2 * i][...]           # (in, out)  bf16
        b = params[2 * i + 1][...]       # (1, out)   f32
        h = jnp.dot(h.astype(jnp.bfloat16), w,
                    preferred_element_type=jnp.float32) + b
        if i < n_layers - 1:
            h = jnp.maximum(h, 0.0)      # ReLU (skipped after final Linear)
    o_ref[...] = h.astype(o_ref.dtype)


def mlp_forward(x, weights, biases):
    """x: (B, n_in) f32; weights[i]: (in_i, out_i) f32; biases[i]: (1, out_i) f32."""
    n_layers = len(weights)
    assert len(biases) == n_layers
    B, n_in = x.shape
    n_out = weights[-1].shape[1]

    # ---- dtype / layout prep -------------------------------------------------
    # Stream weights as bf16 (bandwidth-bound path); keep biases f32.
    w_list = [w.astype(jnp.bfloat16) for w in weights]
    b_list = [b.reshape(1, -1).astype(jnp.float32) for b in biases]

    # Lane-dense output: zero-pad the final layer's output features to 128 lanes.
    n_out_pad = _round_up(max(n_out, LANE), LANE)
    if n_out_pad != n_out:
        w_last = jnp.zeros((w_list[-1].shape[0], n_out_pad), jnp.bfloat16)
        w_list[-1] = w_last.at[:, :n_out].set(w_list[-1])
        b_last = jnp.zeros((1, n_out_pad), jnp.float32)
        b_list[-1] = b_last.at[:, :n_out].set(b_list[-1])

    # Batch tiling: pad B to a multiple of the tile and grid over batch tiles.
    tile_b = min(LANE, _round_up(B, SUBLANE))
    b_pad = _round_up(B, tile_b)
    if b_pad != B:
        x = jnp.zeros((b_pad, n_in), x.dtype).at[:B].set(x)

    flat_params = []
    in_specs = [pl.BlockSpec((tile_b, n_in), lambda i: (i, 0))]
    for w, b in zip(w_list, b_list):
        flat_params += [w, b]
        # Constant block index -> parameter tile stays VMEM-resident across steps.
        in_specs.append(pl.BlockSpec(w.shape, lambda i: (0, 0)))
        in_specs.append(pl.BlockSpec(b.shape, lambda i: (0, 0)))

    out_spec = pl.BlockSpec((tile_b, n_out_pad), lambda i: (i, 0))

    kernel = functools.partial(_mlp_kernel, n_layers)

    out = pl.pallas_call(
        kernel,
        out_shape=jax.ShapeDtypeStruct((b_pad, n_out_pad), jnp.float32),
        grid=(b_pad // tile_b,),
        in_specs=in_specs,
        out_specs=out_spec,
        compiler_params=pltpu.CompilerParams(
            dimension_semantics=("parallel",),   # shard batch tiles across TCs (v7x)
            vmem_limit_bytes=16 << 20,           # ~6 MB real footprint; fits all chips
        ),
    )(x, *flat_params)

    return out[:B, :n_out]


def make_params(key, n_in, n_out, neurons):
    """Deterministic params matching the PyTorch layer shapes.

    Weights are returned already transposed to (in, out) for the kernel.
    He-uniform scaling keeps activations O(1) through the ReLU stack so the
    numerical comparison below is meaningful.
    """
    dims = [
        (n_in, 128),
        (128, neurons),
        (neurons, neurons),
        (neurons, neurons),
        (neurons, neurons),
        (neurons, 512),
        (512, 512),
        (512, 512),
        (512, neurons),
        (neurons, neurons),
        (neurons, neurons),
        (neurons, neurons),
        (neurons, 128),
        (128, n_out),
    ]
    weights, biases = [], []
    for i, (fan_in, fan_out) in enumerate(dims):
        kw, kb = jax.random.split(jax.random.fold_in(key, i))
        bound = (6.0 / fan_in) ** 0.5
        w = jax.random.uniform(kw, (fan_in, fan_out), jnp.float32, -bound, bound)
        b = jax.random.uniform(kb, (1, fan_out), jnp.float32, -0.05, 0.05)
        weights.append(w)
        biases.append(b)
    return weights, biases


def reference_forward(x, weights, biases):
    """Pure-JAX reference with the same bf16-weight / f32-accumulate numerics."""
    h = x
    n_layers = len(weights)
    for i, (w, b) in enumerate(zip(weights, biases)):
        h = jnp.dot(h.astype(jnp.bfloat16), w.astype(jnp.bfloat16),
                    preferred_element_type=jnp.float32) + b.reshape(1, -1)
        if i < n_layers - 1:
            h = jnp.maximum(h, 0.0)
    return h


if __name__ == "__main__":
    n_in, n_out, neurons = 32, 8, 256
    batch = 16

    key = jax.random.PRNGKey(0)
    kx, kp = jax.random.split(key)

    x = jax.random.normal(kx, (batch, n_in), dtype=jnp.float32)
    weights, biases = make_params(kp, n_in, n_out, neurons)

    out = jax.block_until_ready(mlp_forward(x, weights, biases))
    ref = jax.block_until_ready(reference_forward(x, weights, biases))

    assert out.shape == (batch, n_out)
    assert jnp.allclose(out, ref, atol=1e-2, rtol=1e-2), "mismatch vs reference"

    print("KERNEL_OK")
</pallas_src>

<mosaic_0001>
module attributes {stable_mosaic.version = 11 : i64} {
  func.func @_mlp_kernel(%arg0: i32, %arg1: memref<16x32xf32, #tpu.memory_space<vmem>>, %arg2: memref<32x128xbf16, #tpu.memory_space<vmem>>, %arg3: memref<1x128xf32, #tpu.memory_space<vmem>>, %arg4: memref<128x256xbf16, #tpu.memory_space<vmem>>, %arg5: memref<1x256xf32, #tpu.memory_space<vmem>>, %arg6: memref<256x256xbf16, #tpu.memory_space<vmem>>, %arg7: memref<1x256xf32, #tpu.memory_space<vmem>>, %arg8: memref<256x256xbf16, #tpu.memory_space<vmem>>, %arg9: memref<1x256xf32, #tpu.memory_space<vmem>>, %arg10: memref<256x256xbf16, #tpu.memory_space<vmem>>, %arg11: memref<1x256xf32, #tpu.memory_space<vmem>>, %arg12: memref<256x512xbf16, #tpu.memory_space<vmem>>, %arg13: memref<1x512xf32, #tpu.memory_space<vmem>>, %arg14: memref<512x512xbf16, #tpu.memory_space<vmem>>, %arg15: memref<1x512xf32, #tpu.memory_space<vmem>>, %arg16: memref<512x512xbf16, #tpu.memory_space<vmem>>, %arg17: memref<1x512xf32, #tpu.memory_space<vmem>>, %arg18: memref<512x256xbf16, #tpu.memory_space<vmem>>, %arg19: memref<1x256xf32, #tpu.memory_space<vmem>>, %arg20: memref<256x256xbf16, #tpu.memory_space<vmem>>, %arg21: memref<1x256xf32, #tpu.memory_space<vmem>>, %arg22: memref<256x256xbf16, #tpu.memory_space<vmem>>, %arg23: memref<1x256xf32, #tpu.memory_space<vmem>>, %arg24: memref<256x256xbf16, #tpu.memory_space<vmem>>, %arg25: memref<1x256xf32, #tpu.memory_space<vmem>>, %arg26: memref<256x128xbf16, #tpu.memory_space<vmem>>, %arg27: memref<1x128xf32, #tpu.memory_space<vmem>>, %arg28: memref<128x128xbf16, #tpu.memory_space<vmem>>, %arg29: memref<1x128xf32, #tpu.memory_space<vmem>>, %arg30: memref<16x128xf32, #tpu.memory_space<vmem>>) attributes {dimension_semantics = [#tpu.dimension_semantics<parallel>], iteration_bounds = array<i64: 1>, scalar_prefetch = 0 : i64, scratch_operands = 0 : i64, tpu.core_type = #tpu.core_type<tc>, window_params = [{transform_indices = @transform_0, window_bounds = array<i64: 16, 32>}, {pipeline_mode = #tpu.pipeline_mode<synchronous>, transform_indices = @transform_1, window_bounds = array<i64: 32, 128>}, {pipeline_mode = #tpu.pipeline_mode<synchronous>, transform_indices = @transform_2, window_bounds = array<i64: 1, 128>}, {pipeline_mode = #tpu.pipeline_mode<synchronous>, transform_indices = @transform_3, window_bounds = array<i64: 128, 256>}, {pipeline_mode = #tpu.pipeline_mode<synchronous>, transform_indices = @transform_4, window_bounds = array<i64: 1, 256>}, {pipeline_mode = #tpu.pipeline_mode<synchronous>, transform_indices = @transform_5, window_bounds = array<i64: 256, 256>}, {pipeline_mode = #tpu.pipeline_mode<synchronous>, transform_indices = @transform_6, window_bounds = array<i64: 1, 256>}, {pipeline_mode = #tpu.pipeline_mode<synchronous>, transform_indices = @transform_7, window_bounds = array<i64: 256, 256>}, {pipeline_mode = #tpu.pipeline_mode<synchronous>, transform_indices = @transform_8, window_bounds = array<i64: 1, 256>}, {pipeline_mode = #tpu.pipeline_mode<synchronous>, transform_indices = @transform_9, window_bounds = array<i64: 256, 256>}, {pipeline_mode = #tpu.pipeline_mode<synchronous>, transform_indices = @transform_10, window_bounds = array<i64: 1, 256>}, {pipeline_mode = #tpu.pipeline_mode<synchronous>, transform_indices = @transform_11, window_bounds = array<i64: 256, 512>}, {pipeline_mode = #tpu.pipeline_mode<synchronous>, transform_indices = @transform_12, window_bounds = array<i64: 1, 512>}, {pipeline_mode = #tpu.pipeline_mode<synchronous>, transform_indices = @transform_13, window_bounds = array<i64: 512, 512>}, {pipeline_mode = #tpu.pipeline_mode<synchronous>, transform_indices = @transform_14, window_bounds = array<i64: 1, 512>}, {pipeline_mode = #tpu.pipeline_mode<synchronous>, transform_indices = @transform_15, window_bounds = array<i64: 512, 512>}, {pipeline_mode = #tpu.pipeline_mode<synchronous>, transform_indices = @transform_16, window_bounds = array<i64: 1, 512>}, {pipeline_mode = #tpu.pipeline_mode<synchronous>, transform_indices = @transform_17, window_bounds = array<i64: 512, 256>}, {pipeline_mode = #tpu.pipeline_mode<synchronous>, transform_indices = @transform_18, window_bounds = array<i64: 1, 256>}, {pipeline_mode = #tpu.pipeline_mode<synchronous>, transform_indices = @transform_19, window_bounds = array<i64: 256, 256>}, {pipeline_mode = #tpu.pipeline_mode<synchronous>, transform_indices = @transform_20, window_bounds = array<i64: 1, 256>}, {pipeline_mode = #tpu.pipeline_mode<synchronous>, transform_indices = @transform_21, window_bounds = array<i64: 256, 256>}, {pipeline_mode = #tpu.pipeline_mode<synchronous>, transform_indices = @transform_22, window_bounds = array<i64: 1, 256>}, {pipeline_mode = #tpu.pipeline_mode<synchronous>, transform_indices = @transform_23, window_bounds = array<i64: 256, 256>}, {pipeline_mode = #tpu.pipeline_mode<synchronous>, transform_indices = @transform_24, window_bounds = array<i64: 1, 256>}, {pipeline_mode = #tpu.pipeline_mode<synchronous>, transform_indices = @transform_25, window_bounds = array<i64: 256, 128>}, {pipeline_mode = #tpu.pipeline_mode<synchronous>, transform_indices = @transform_26, window_bounds = array<i64: 1, 128>}, {pipeline_mode = #tpu.pipeline_mode<synchronous>, transform_indices = @transform_27, window_bounds = array<i64: 128, 128>}, {pipeline_mode = #tpu.pipeline_mode<synchronous>, transform_indices = @transform_28, window_bounds = array<i64: 1, 128>}, {transform_indices = @transform_29, window_bounds = array<i64: 16, 128>}]} {
    %c0 = arith.constant 0 : index
    %c0_0 = arith.constant 0 : index
    %0 = vector.load %arg1[%c0, %c0_0] : memref<16x32xf32, #tpu.memory_space<vmem>>, vector<16x32xf32>
    %c0_1 = arith.constant 0 : index
    %c0_2 = arith.constant 0 : index
    %1 = vector.load %arg2[%c0_1, %c0_2] : memref<32x128xbf16, #tpu.memory_space<vmem>>, vector<32x128xbf16>
    %c0_3 = arith.constant 0 : index
    %c0_4 = arith.constant 0 : index
    %2 = vector.load %arg3[%c0_3, %c0_4] : memref<1x128xf32, #tpu.memory_space<vmem>>, vector<1x128xf32>
    %3 = arith.truncf %0 : vector<16x32xf32> to vector<16x32xbf16>
    %cst = arith.constant dense<0.000000e+00> : vector<16x128xf32>
    %4 = tpu.matmul %3, %1, %cst {dimension_numbers = #tpu.dot_dimension_numbers<[1], [0], [0], [1], [0, 0, 1, 1], [], []>} : vector<16x32xbf16>, vector<32x128xbf16>, vector<16x128xf32> -> vector<16x128xf32>
    %5 = vector.broadcast %2 : vector<1x128xf32> to vector<16x128xf32>
    %6 = arith.addf %4, %5 : vector<16x128xf32>
    %cst_5 = arith.constant 0.000000e+00 : f32
    %7 = vector.broadcast %cst_5 : f32 to vector<16x128xf32>
    %8 = arith.maximumf %6, %7 : vector<16x128xf32>
    %c0_6 = arith.constant 0 : index
    %c0_7 = arith.constant 0 : index
    %9 = vector.load %arg4[%c0_6, %c0_7] : memref<128x256xbf16, #tpu.memory_space<vmem>>, vector<128x256xbf16>
    %c0_8 = arith.constant 0 : index
    %c0_9 = arith.constant 0 : index
    %10 = vector.load %arg5[%c0_8, %c0_9] : memref<1x256xf32, #tpu.memory_space<vmem>>, vector<1x256xf32>
    %11 = arith.truncf %8 : vector<16x128xf32> to vector<16x128xbf16>
    %cst_10 = arith.constant dense<0.000000e+00> : vector<16x256xf32>
    %12 = tpu.matmul %11, %9, %cst_10 {dimension_numbers = #tpu.dot_dimension_numbers<[1], [0], [0], [1], [0, 0, 1, 1], [], []>} : vector<16x128xbf16>, vector<128x256xbf16>, vector<16x256xf32> -> vector<16x256xf32>
    %13 = vector.broadcast %10 : vector<1x256xf32> to vector<16x256xf32>
    %14 = arith.addf %12, %13 : vector<16x256xf32>
    %cst_11 = arith.constant 0.000000e+00 : f32
    %15 = vector.broadcast %cst_11 : f32 to vector<16x256xf32>
    %16 = arith.maximumf %14, %15 : vector<16x256xf32>
    %c0_12 = arith.constant 0 : index
    %c0_13 = arith.constant 0 : index
    %17 = vector.load %arg6[%c0_12, %c0_13] : memref<256x256xbf16, #tpu.memory_space<vmem>>, vector<256x256xbf16>
    %c0_14 = arith.constant 0 : index
    %c0_15 = arith.constant 0 : index
    %18 = vector.load %arg7[%c0_14, %c0_15] : memref<1x256xf32, #tpu.memory_space<vmem>>, vector<1x256xf32>
    %19 = arith.truncf %16 : vector<16x256xf32> to vector<16x256xbf16>
    %cst_16 = arith.constant dense<0.000000e+00> : vector<16x256xf32>
    %20 = tpu.matmul %19, %17, %cst_16 {dimension_numbers = #tpu.dot_dimension_numbers<[1], [0], [0], [1], [0, 0, 1, 1], [], []>} : vector<16x256xbf16>, vector<256x256xbf16>, vector<16x256xf32> -> vector<16x256xf32>
    %21 = vector.broadcast %18 : vector<1x256xf32> to vector<16x256xf32>
    %22 = arith.addf %20, %21 : vector<16x256xf32>
    %cst_17 = arith.constant 0.000000e+00 : f32
    %23 = vector.broadcast %cst_17 : f32 to vector<16x256xf32>
    %24 = arith.maximumf %22, %23 : vector<16x256xf32>
    %c0_18 = arith.constant 0 : index
    %c0_19 = arith.constant 0 : index
    %25 = vector.load %arg8[%c0_18, %c0_19] : memref<256x256xbf16, #tpu.memory_space<vmem>>, vector<256x256xbf16>
    %c0_20 = arith.constant 0 : index
    %c0_21 = arith.constant 0 : index
    %26 = vector.load %arg9[%c0_20, %c0_21] : memref<1x256xf32, #tpu.memory_space<vmem>>, vector<1x256xf32>
    %27 = arith.truncf %24 : vector<16x256xf32> to vector<16x256xbf16>
    %cst_22 = arith.constant dense<0.000000e+00> : vector<16x256xf32>
    %28 = tpu.matmul %27, %25, %cst_22 {dimension_numbers = #tpu.dot_dimension_numbers<[1], [0], [0], [1], [0, 0, 1, 1], [], []>} : vector<16x256xbf16>, vector<256x256xbf16>, vector<16x256xf32> -> vector<16x256xf32>
    %29 = vector.broadcast %26 : vector<1x256xf32> to vector<16x256xf32>
    %30 = arith.addf %28, %29 : vector<16x256xf32>
    %cst_23 = arith.constant 0.000000e+00 : f32
    %31 = vector.broadcast %cst_23 : f32 to vector<16x256xf32>
    %32 = arith.maximumf %30, %31 : vector<16x256xf32>
    %c0_24 = arith.constant 0 : index
    %c0_25 = arith.constant 0 : index
    %33 = vector.load %arg10[%c0_24, %c0_25] : memref<256x256xbf16, #tpu.memory_space<vmem>>, vector<256x256xbf16>
    %c0_26 = arith.constant 0 : index
    %c0_27 = arith.constant 0 : index
    %34 = vector.load %arg11[%c0_26, %c0_27] : memref<1x256xf32, #tpu.memory_space<vmem>>, vector<1x256xf32>
    %35 = arith.truncf %32 : vector<16x256xf32> to vector<16x256xbf16>
    %cst_28 = arith.constant dense<0.000000e+00> : vector<16x256xf32>
    %36 = tpu.matmul %35, %33, %cst_28 {dimension_numbers = #tpu.dot_dimension_numbers<[1], [0], [0], [1], [0, 0, 1, 1], [], []>} : vector<16x256xbf16>, vector<256x256xbf16>, vector<16x256xf32> -> vector<16x256xf32>
    %37 = vector.broadcast %34 : vector<1x256xf32> to vector<16x256xf32>
    %38 = arith.addf %36, %37 : vector<16x256xf32>
    %cst_29 = arith.constant 0.000000e+00 : f32
    %39 = vector.broadcast %cst_29 : f32 to vector<16x256xf32>
    %40 = arith.maximumf %38, %39 : vector<16x256xf32>
    %c0_30 = arith.constant 0 : index
    %c0_31 = arith.constant 0 : index
    %41 = vector.load %arg12[%c0_30, %c0_31] : memref<256x512xbf16, #tpu.memory_space<vmem>>, vector<256x512xbf16>
    %c0_32 = arith.constant 0 : index
    %c0_33 = arith.constant 0 : index
    %42 = vector.load %arg13[%c0_32, %c0_33] : memref<1x512xf32, #tpu.memory_space<vmem>>, vector<1x512xf32>
    %43 = arith.truncf %40 : vector<16x256xf32> to vector<16x256xbf16>
    %cst_34 = arith.constant dense<0.000000e+00> : vector<16x512xf32>
    %44 = tpu.matmul %43, %41, %cst_34 {dimension_numbers = #tpu.dot_dimension_numbers<[1], [0], [0], [1], [0, 0, 1, 1], [], []>} : vector<16x256xbf16>, vector<256x512xbf16>, vector<16x512xf32> -> vector<16x512xf32>
    %45 = vector.broadcast %42 : vector<1x512xf32> to vector<16x512xf32>
    %46 = arith.addf %44, %45 : vector<16x512xf32>
    %cst_35 = arith.constant 0.000000e+00 : f32
    %47 = vector.broadcast %cst_35 : f32 to vector<16x512xf32>
    %48 = arith.maximumf %46, %47 : vector<16x512xf32>
    %c0_36 = arith.constant 0 : index
    %c0_37 = arith.constant 0 : index
    %49 = vector.load %arg14[%c0_36, %c0_37] : memref<512x512xbf16, #tpu.memory_space<vmem>>, vector<512x512xbf16>
    %c0_38 = arith.constant 0 : index
    %c0_39 = arith.constant 0 : index
    %50 = vector.load %arg15[%c0_38, %c0_39] : memref<1x512xf32, #tpu.memory_space<vmem>>, vector<1x512xf32>
    %51 = arith.truncf %48 : vector<16x512xf32> to vector<16x512xbf16>
    %cst_40 = arith.constant dense<0.000000e+00> : vector<16x512xf32>
    %52 = tpu.matmul %51, %49, %cst_40 {dimension_numbers = #tpu.dot_dimension_numbers<[1], [0], [0], [1], [0, 0, 1, 1], [], []>} : vector<16x512xbf16>, vector<512x512xbf16>, vector<16x512xf32> -> vector<16x512xf32>
    %53 = vector.broadcast %50 : vector<1x512xf32> to vector<16x512xf32>
    %54 = arith.addf %52, %53 : vector<16x512xf32>
    %cst_41 = arith.constant 0.000000e+00 : f32
    %55 = vector.broadcast %cst_41 : f32 to vector<16x512xf32>
    %56 = arith.maximumf %54, %55 : vector<16x512xf32>
    %c0_42 = arith.constant 0 : index
    %c0_43 = arith.constant 0 : index
    %57 = vector.load %arg16[%c0_42, %c0_43] : memref<512x512xbf16, #tpu.memory_space<vmem>>, vector<512x512xbf16>
    %c0_44 = arith.constant 0 : index
    %c0_45 = arith.constant 0 : index
    %58 = vector.load %arg17[%c0_44, %c0_45] : memref<1x512xf32, #tpu.memory_space<vmem>>, vector<1x512xf32>
    %59 = arith.truncf %56 : vector<16x512xf32> to vector<16x512xbf16>
    %cst_46 = arith.constant dense<0.000000e+00> : vector<16x512xf32>
    %60 = tpu.matmul %59, %57, %cst_46 {dimension_numbers = #tpu.dot_dimension_numbers<[1], [0], [0], [1], [0, 0, 1, 1], [], []>} : vector<16x512xbf16>, vector<512x512xbf16>, vector<16x512xf32> -> vector<16x512xf32>
    %61 = vector.broadcast %58 : vector<1x512xf32> to vector<16x512xf32>
    %62 = arith.addf %60, %61 : vector<16x512xf32>
    %cst_47 = arith.constant 0.000000e+00 : f32
    %63 = vector.broadcast %cst_47 : f32 to vector<16x512xf32>
    %64 = arith.maximumf %62, %63 : vector<16x512xf32>
    %c0_48 = arith.constant 0 : index
    %c0_49 = arith.constant 0 : index
    %65 = vector.load %arg18[%c0_48, %c0_49] : memref<512x256xbf16, #tpu.memory_space<vmem>>, vector<512x256xbf16>
    %c0_50 = arith.constant 0 : index
    %c0_51 = arith.constant 0 : index
    %66 = vector.load %arg19[%c0_50, %c0_51] : memref<1x256xf32, #tpu.memory_space<vmem>>, vector<1x256xf32>
    %67 = arith.truncf %64 : vector<16x512xf32> to vector<16x512xbf16>
    %cst_52 = arith.constant dense<0.000000e+00> : vector<16x256xf32>
    %68 = tpu.matmul %67, %65, %cst_52 {dimension_numbers = #tpu.dot_dimension_numbers<[1], [0], [0], [1], [0, 0, 1, 1], [], []>} : vector<16x512xbf16>, vector<512x256xbf16>, vector<16x256xf32> -> vector<16x256xf32>
    %69 = vector.broadcast %66 : vector<1x256xf32> to vector<16x256xf32>
    %70 = arith.addf %68, %69 : vector<16x256xf32>
    %cst_53 = arith.constant 0.000000e+00 : f32
    %71 = vector.broadcast %cst_53 : f32 to vector<16x256xf32>
    %72 = arith.maximumf %70, %71 : vector<16x256xf32>
    %c0_54 = arith.constant 0 : index
    %c0_55 = arith.constant 0 : index
    %73 = vector.load %arg20[%c0_54, %c0_55] : memref<256x256xbf16, #tpu.memory_space<vmem>>, vector<256x256xbf16>
    %c0_56 = arith.constant 0 : index
    %c0_57 = arith.constant 0 : index
    %74 = vector.load %arg21[%c0_56, %c0_57] : memref<1x256xf32, #tpu.memory_space<vmem>>, vector<1x256xf32>
    %75 = arith.truncf %72 : vector<16x256xf32> to vector<16x256xbf16>
    %cst_58 = arith.constant dense<0.000000e+00> : vector<16x256xf32>
    %76 = tpu.matmul %75, %73, %cst_58 {dimension_numbers = #tpu.dot_dimension_numbers<[1], [0], [0], [1], [0, 0, 1, 1], [], []>} : vector<16x256xbf16>, vector<256x256xbf16>, vector<16x256xf32> -> vector<16x256xf32>
    %77 = vector.broadcast %74 : vector<1x256xf32> to vector<16x256xf32>
    %78 = arith.addf %76, %77 : vector<16x256xf32>
    %cst_59 = arith.constant 0.000000e+00 : f32
    %79 = vector.broadcast %cst_59 : f32 to vector<16x256xf32>
    %80 = arith.maximumf %78, %79 : vector<16x256xf32>
    %c0_60 = arith.constant 0 : index
    %c0_61 = arith.constant 0 : index
    %81 = vector.load %arg22[%c0_60, %c0_61] : memref<256x256xbf16, #tpu.memory_space<vmem>>, vector<256x256xbf16>
    %c0_62 = arith.constant 0 : index
    %c0_63 = arith.constant 0 : index
    %82 = vector.load %arg23[%c0_62, %c0_63] : memref<1x256xf32, #tpu.memory_space<vmem>>, vector<1x256xf32>
    %83 = arith.truncf %80 : vector<16x256xf32> to vector<16x256xbf16>
    %cst_64 = arith.constant dense<0.000000e+00> : vector<16x256xf32>
    %84 = tpu.matmul %83, %81, %cst_64 {dimension_numbers = #tpu.dot_dimension_numbers<[1], [0], [0], [1], [0, 0, 1, 1], [], []>} : vector<16x256xbf16>, vector<256x256xbf16>, vector<16x256xf32> -> vector<16x256xf32>
    %85 = vector.broadcast %82 : vector<1x256xf32> to vector<16x256xf32>
    %86 = arith.addf %84, %85 : vector<16x256xf32>
    %cst_65 = arith.constant 0.000000e+00 : f32
    %87 = vector.broadcast %cst_65 : f32 to vector<16x256xf32>
    %88 = arith.maximumf %86, %87 : vector<16x256xf32>
    %c0_66 = arith.constant 0 : index
    %c0_67 = arith.constant 0 : index
    %89 = vector.load %arg24[%c0_66, %c0_67] : memref<256x256xbf16, #tpu.memory_space<vmem>>, vector<256x256xbf16>
    %c0_68 = arith.constant 0 : index
    %c0_69 = arith.constant 0 : index
    %90 = vector.load %arg25[%c0_68, %c0_69] : memref<1x256xf32, #tpu.memory_space<vmem>>, vector<1x256xf32>
    %91 = arith.truncf %88 : vector<16x256xf32> to vector<16x256xbf16>
    %cst_70 = arith.constant dense<0.000000e+00> : vector<16x256xf32>
    %92 = tpu.matmul %91, %89, %cst_70 {dimension_numbers = #tpu.dot_dimension_numbers<[1], [0], [0], [1], [0, 0, 1, 1], [], []>} : vector<16x256xbf16>, vector<256x256xbf16>, vector<16x256xf32> -> vector<16x256xf32>
    %93 = vector.broadcast %90 : vector<1x256xf32> to vector<16x256xf32>
    %94 = arith.addf %92, %93 : vector<16x256xf32>
    %cst_71 = arith.constant 0.000000e+00 : f32
    %95 = vector.broadcast %cst_71 : f32 to vector<16x256xf32>
    %96 = arith.maximumf %94, %95 : vector<16x256xf32>
    %c0_72 = arith.constant 0 : index
    %c0_73 = arith.constant 0 : index
    %97 = vector.load %arg26[%c0_72, %c0_73] : memref<256x128xbf16, #tpu.memory_space<vmem>>, vector<256x128xbf16>
    %c0_74 = arith.constant 0 : index
    %c0_75 = arith.constant 0 : index
    %98 = vector.load %arg27[%c0_74, %c0_75] : memref<1x128xf32, #tpu.memory_space<vmem>>, vector<1x128xf32>
    %99 = arith.truncf %96 : vector<16x256xf32> to vector<16x256xbf16>
    %cst_76 = arith.constant dense<0.000000e+00> : vector<16x128xf32>
    %100 = tpu.matmul %99, %97, %cst_76 {dimension_numbers = #tpu.dot_dimension_numbers<[1], [0], [0], [1], [0, 0, 1, 1], [], []>} : vector<16x256xbf16>, vector<256x128xbf16>, vector<16x128xf32> -> vector<16x128xf32>
    %101 = vector.broadcast %98 : vector<1x128xf32> to vector<16x128xf32>
    %102 = arith.addf %100, %101 : vector<16x128xf32>
    %cst_77 = arith.constant 0.000000e+00 : f32
    %103 = vector.broadcast %cst_77 : f32 to vector<16x128xf32>
    %104 = arith.maximumf %102, %103 : vector<16x128xf32>
    %c0_78 = arith.constant 0 : index
    %c0_79 = arith.constant 0 : index
    %105 = vector.load %arg28[%c0_78, %c0_79] : memref<128x128xbf16, #tpu.memory_space<vmem>>, vector<128x128xbf16>
    %c0_80 = arith.constant 0 : index
    %c0_81 = arith.constant 0 : index
    %106 = vector.load %arg29[%c0_80, %c0_81] : memref<1x128xf32, #tpu.memory_space<vmem>>, vector<1x128xf32>
    %107 = arith.truncf %104 : vector<16x128xf32> to vector<16x128xbf16>
    %cst_82 = arith.constant dense<0.000000e+00> : vector<16x128xf32>
    %108 = tpu.matmul %107, %105, %cst_82 {dimension_numbers = #tpu.dot_dimension_numbers<[1], [0], [0], [1], [0, 0, 1, 1], [], []>} : vector<16x128xbf16>, vector<128x128xbf16>, vector<16x128xf32> -> vector<16x128xf32>
    %109 = vector.broadcast %106 : vector<1x128xf32> to vector<16x128xf32>
    %110 = arith.addf %108, %109 : vector<16x128xf32>
    %c0_83 = arith.constant 0 : index
    %c0_84 = arith.constant 0 : index
    %111 = vector.load %arg30[%c0_83, %c0_84] : memref<16x128xf32, #tpu.memory_space<vmem>>, vector<16x128xf32>
    tpu.vector_store %arg30[%c0_83, %c0_84], %110 {strides = array<i32>} : memref<16x128xf32, #tpu.memory_space<vmem>>, vector<16x128xf32>,
    return
  }
  func.func @transform_0(%arg0: i32) -> (i32, i32) {
    %c0_i32 = arith.constant 0 : i32
    %c0_i32_0 = arith.constant 0 : i32
    return %arg0, %c0_i32 : i32, i32
  }
  func.func @transform_1(%arg0: i32) -> (i32, i32) {
    %c0_i32 = arith.constant 0 : i32
    %c0_i32_0 = arith.constant 0 : i32
    %c0_i32_1 = arith.constant 0 : i32
    return %c0_i32, %c0_i32_0 : i32, i32
  }
  func.func @transform_2(%arg0: i32) -> (i32, i32) {
    %c0_i32 = arith.constant 0 : i32
    %c0_i32_0 = arith.constant 0 : i32
    %c0_i32_1 = arith.constant 0 : i32
    return %c0_i32, %c0_i32_0 : i32, i32
  }
  func.func @transform_3(%arg0: i32) -> (i32, i32) {
    %c0_i32 = arith.constant 0 : i32
    %c0_i32_0 = arith.constant 0 : i32
    %c0_i32_1 = arith.constant 0 : i32
    return %c0_i32, %c0_i32_0 : i32, i32
  }
  func.func @transform_4(%arg0: i32) -> (i32, i32) {
    %c0_i32 = arith.constant 0 : i32
    %c0_i32_0 = arith.constant 0 : i32
    %c0_i32_1 = arith.constant 0 : i32
    return %c0_i32, %c0_i32_0 : i32, i32
  }
  func.func @transform_5(%arg0: i32) -> (i32, i32) {
    %c0_i32 = arith.constant 0 : i32
    %c0_i32_0 = arith.constant 0 : i32
    %c0_i32_1 = arith.constant 0 : i32
    return %c0_i32, %c0_i32_0 : i32, i32
  }
  func.func @transform_6(%arg0: i32) -> (i32, i32) {
    %c0_i32 = arith.constant 0 : i32
    %c0_i32_0 = arith.constant 0 : i32
    %c0_i32_1 = arith.constant 0 : i32
    return %c0_i32, %c0_i32_0 : i32, i32
  }
  func.func @transform_7(%arg0: i32) -> (i32, i32) {
    %c0_i32 = arith.constant 0 : i32
    %c0_i32_0 = arith.constant 0 : i32
    %c0_i32_1 = arith.constant 0 : i32
    return %c0_i32, %c0_i32_0 : i32, i32
  }
  func.func @transform_8(%arg0: i32) -> (i32, i32) {
    %c0_i32 = arith.constant 0 : i32
    %c0_i32_0 = arith.constant 0 : i32
    %c0_i32_1 = arith.constant 0 : i32
    return %c0_i32, %c0_i32_0 : i32, i32
  }
  func.func @transform_9(%arg0: i32) -> (i32, i32) {
    %c0_i32 = arith.constant 0 : i32
    %c0_i32_0 = arith.constant 0 : i32
    %c0_i32_1 = arith.constant 0 : i32
    return %c0_i32, %c0_i32_0 : i32, i32
  }
  func.func @transform_10(%arg0: i32) -> (i32, i32) {
    %c0_i32 = arith.constant 0 : i32
    %c0_i32_0 = arith.constant 0 : i32
    %c0_i32_1 = arith.constant 0 : i32
    return %c0_i32, %c0_i32_0 : i32, i32
  }
  func.func @transform_11(%arg0: i32) -> (i32, i32) {
    %c0_i32 = arith.constant 0 : i32
    %c0_i32_0 = arith.constant 0 : i32
    %c0_i32_1 = arith.constant 0 : i32
    return %c0_i32, %c0_i32_0 : i32, i32
  }
  func.func @transform_12(%arg0: i32) -> (i32, i32) {
    %c0_i32 = arith.constant 0 : i32
    %c0_i32_0 = arith.constant 0 : i32
    %c0_i32_1 = arith.constant 0 : i32
    return %c0_i32, %c0_i32_0 : i32, i32
  }
  func.func @transform_13(%arg0: i32) -> (i32, i32) {
    %c0_i32 = arith.constant 0 : i32
    %c0_i32_0 = arith.constant 0 : i32
    %c0_i32_1 = arith.constant 0 : i32
    return %c0_i32, %c0_i32_0 : i32, i32
  }
  func.func @transform_14(%arg0: i32) -> (i32, i32) {
    %c0_i32 = arith.constant 0 : i32
    %c0_i32_0 = arith.constant 0 : i32
    %c0_i32_1 = arith.constant 0 : i32
    return %c0_i32, %c0_i32_0 : i32, i32
  }
  func.func @transform_15(%arg0: i32) -> (i32, i32) {
    %c0_i32 = arith.constant 0 : i32
    %c0_i32_0 = arith.constant 0 : i32
    %c0_i32_1 = arith.constant 0 : i32
    return %c0_i32, %c0_i32_0 : i32, i32
  }
  func.func @transform_16(%arg0: i32) -> (i32, i32) {
    %c0_i32 = arith.constant 0 : i32
    %c0_i32_0 = arith.constant 0 : i32
    %c0_i32_1 = arith.constant 0 : i32
    return %c0_i32, %c0_i32_0 : i32, i32
  }
  func.func @transform_17(%arg0: i32) -> (i32, i32) {
    %c0_i32 = arith.constant 0 : i32
    %c0_i32_0 = arith.constant 0 : i32
    %c0_i32_1 = arith.constant 0 : i32
    return %c0_i32, %c0_i32_0 : i32, i32
  }
  func.func @transform_18(%arg0: i32) -> (i32, i32) {
    %c0_i32 = arith.constant 0 : i32
    %c0_i32_0 = arith.constant 0 : i32
    %c0_i32_1 = arith.constant 0 : i32
    return %c0_i32, %c0_i32_0 : i32, i32
  }
  func.func @transform_19(%arg0: i32) -> (i32, i32) {
    %c0_i32 = arith.constant 0 : i32
    %c0_i32_0 = arith.constant 0 : i32
    %c0_i32_1 = arith.constant 0 : i32
    return %c0_i32, %c0_i32_0 : i32, i32
  }
  func.func @transform_20(%arg0: i32) -> (i32, i32) {
    %c0_i32 = arith.constant 0 : i32
    %c0_i32_0 = arith.constant 0 : i32
    %c0_i32_1 = arith.constant 0 : i32
    return %c0_i32, %c0_i32_0 : i32, i32
  }
  func.func @transform_21(%arg0: i32) -> (i32, i32) {
    %c0_i32 = arith.constant 0 : i32
    %c0_i32_0 = arith.constant 0 : i32
    %c0_i32_1 = arith.constant 0 : i32
    return %c0_i32, %c0_i32_0 : i32, i32
  }
  func.func @transform_22(%arg0: i32) -> (i32, i32) {
    %c0_i32 = arith.constant 0 : i32
    %c0_i32_0 = arith.constant 0 : i32
    %c0_i32_1 = arith.constant 0 : i32
    return %c0_i32, %c0_i32_0 : i32, i32
  }
  func.func @transform_23(%arg0: i32) -> (i32, i32) {
    %c0_i32 = arith.constant 0 : i32
    %c0_i32_0 = arith.constant 0 : i32
    %c0_i32_1 = arith.constant 0 : i32
    return %c0_i32, %c0_i32_0 : i32, i32
  }
  func.func @transform_24(%arg0: i32) -> (i32, i32) {
    %c0_i32 = arith.constant 0 : i32
    %c0_i32_0 = arith.constant 0 : i32
    %c0_i32_1 = arith.constant 0 : i32
    return %c0_i32, %c0_i32_0 : i32, i32
  }
  func.func @transform_25(%arg0: i32) -> (i32, i32) {
    %c0_i32 = arith.constant 0 : i32
    %c0_i32_0 = arith.constant 0 : i32
    %c0_i32_1 = arith.constant 0 : i32
    return %c0_i32, %c0_i32_0 : i32, i32
  }
  func.func @transform_26(%arg0: i32) -> (i32, i32) {
    %c0_i32 = arith.constant 0 : i32
    %c0_i32_0 = arith.constant 0 : i32
    %c0_i32_1 = arith.constant 0 : i32
    return %c0_i32, %c0_i32_0 : i32, i32
  }
  func.func @transform_27(%arg0: i32) -> (i32, i32) {
    %c0_i32 = arith.constant 0 : i32
    %c0_i32_0 = arith.constant 0 : i32
    %c0_i32_1 = arith.constant 0 : i32
    return %c0_i32, %c0_i32_0 : i32, i32
  }
  func.func @transform_28(%arg0: i32) -> (i32, i32) {
    %c0_i32 = arith.constant 0 : i32
    %c0_i32_0 = arith.constant 0 : i32
    %c0_i32_1 = arith.constant 0 : i32
    return %c0_i32, %c0_i32_0 : i32, i32
  }
  func.func @transform_29(%arg0: i32) -> (i32, i32) {
    %c0_i32 = arith.constant 0 : i32
    %c0_i32_0 = arith.constant 0 : i32
    return %arg0, %c0_i32 : i32, i32
  }
}

</mosaic_0001>

<bundles_post_ra>
// kernel: tpu_custom_call.1
= control target key start
LH: loop header
LB: loop body
LE: loop exit
PB: predicated region body
PF: predicated region fallthrough
CT: control target
= control target key end

     0   :  { %s7456_s6 = smov 1   ;;  %s7457_s10 = smov 2   ;;  %s7824_s0 = inlined_call_operand.smem [shape: u32[30], index: -1, kind: input, shape index: {}] }
   0x1   :  { %s7521_s5 = sld [smem:[%s7824_s0]]   ;;  %s7458_s14 = smov 3  }
   0x2   :  { %s7526_s9 = sld [smem:[%s7824_s0 + %s7456_s6]]   ;;  %s7459_s18 = smov 4  }
   0x3   :  { %s7531_s13 = sld [smem:[%s7824_s0 + %s7457_s10]]   ;;  %s7460_s22 = smov 5  }
   0x4   :  { %s7536_s17 = sld [smem:[%s7824_s0 + %s7458_s14]]   ;;  %s7461_s26 = smov 6  }
   0x5   :  { %s7541_s21 = sld [smem:[%s7824_s0 + %s7459_s18]]   ;;  %s7462_s30 = smov 7  }
   0x6   :  { %s7546_s25 = sld [smem:[%s7824_s0 + %s7460_s22]]   ;;  %s7463_s4 = smov 8  }
   0x7   :  { %s7551_s29 = sld [smem:[%s7824_s0 + %s7461_s26]]   ;;  %s7464_s10 = smov 9  }
   0x8   :  { %s7556_s3 = sld [smem:[%s7824_s0 + %s7462_s30]]   ;;  %s7465_s15 = smov 10  }
   0x9   :  { %s7561_s8 = sld [smem:[%s7824_s0 + %s7463_s4]]   ;;  %s7466_s20 = smov 11  }
   0xa   :  { %s7566_s14 = sld [smem:[%s7824_s0 + %s7464_s10]]   ;;  %s7467_s26 = smov 12  }
   0xb   :  { %s7571_s19 = sld [smem:[%s7824_s0 + %s7465_s15]]   ;;  %s7468_s1 = smov 13  }
   0xc   :  { %s7576_s24 = sld [smem:[%s7824_s0 + %s7466_s20]]   ;;  %s7469_s7 = smov 14  }
   0xd   :  { %s7581_s30 = sld [smem:[%s7824_s0 + %s7467_s26]]   ;;  %s7470_s15 = smov 15  }
   0xe   :  { %s7586_s6 = sld [smem:[%s7824_s0 + %s7468_s1]]   ;;  %s7471_s22 = smov 16  }
   0xf   :  { %7825 = sst [smem:[#allocation43_spill]] %s7561_s8  ;;  %s7472_s28 = smov 17  }
  0x10   :  { %s7591_s12 = sld [smem:[%s7824_s0 + %s7469_s7]]   ;;  %s7473_s7 = smov 18  }
  0x11   :  { %7826 = sst [smem:[#allocation44_spill]] %s7571_s19 }
  0x12   :  { %s7596_s20 = sld [smem:[%s7824_s0 + %s7470_s15]]   ;;  %s7474_s15 = smov 19  }
  0x13   :  { %7827 = sst [smem:[#allocation45_spill]] %s7581_s30 }
  0x14   :  { %s7601_s27 = sld [smem:[%s7824_s0 + %s7471_s22]]   ;;  %s7475_s22 = smov 20  }
  0x15   :  { %s7606_s4 = sld [smem:[%s7824_s0 + %s7472_s28]]   ;;  %s7476_s28 = smov 21  }
  0x16   :  { %7828 = sst [smem:[#allocation46_spill]] %s7591_s12 }
  0x17   :  { %s7611_s12 = sld [smem:[%s7824_s0 + %s7473_s7]]   ;;  %s7477_s7 = smov 22  }
  0x18   :  { %s7616_s30 = sld [smem:[%s7824_s0 + %s7474_s15]]   ;;  %s7478_s15 = smov 23  }
  0x19   :  { %s7626_s19 = sld [smem:[%s7824_s0 + %s7476_s28]]   ;;  %s7480_s28 = smov 25  }
  0x1a   :  { %7829 = sst [smem:[#allocation47_spill]] %s7601_s27 }
  0x1b   :  { %7830 = sst [smem:[#allocation48_spill]] %s7606_s4 }
  0x1c   :  { %s7621_s27 = sld [smem:[%s7824_s0 + %s7475_s22]]   ;;  %s7479_s22 = smov 24  }
  0x1d   :  { %7831 = sst [smem:[#allocation49_spill]] %s7611_s12 }
  0x1e   :  { %s7631_s12 = sld [smem:[%s7824_s0 + %s7477_s7]]   ;;  %s7481_s7 = smov 26  }
  0x1f   :  { %7833 = sst [smem:[#allocation51_spill]] %s7626_s19 }
  0x20   :  { %s7636_s8 = sld [smem:[%s7824_s0 + %s7478_s15]]   ;;  %s7482_s15 = smov 27  }
  0x21   :  { %s7646_s19 = sld [smem:[%s7824_s0 + %s7480_s28]]   ;;  %s7484_s28 = smov 29  }
  0x22   :  { %7832 = sst [smem:[#allocation50_spill]] %s7621_s27 }
  0x23   :  { %s7641_s27 = sld [smem:[%s7824_s0 + %s7479_s22]]   ;;  %s7483_s22 = smov 28  }
  0x24   :  { %7834 = sst [smem:[#allocation52_spill]] %s7631_s12 }
  0x25   :  { %s7651_s12 = sld [smem:[%s7824_s0 + %s7481_s7]]  }
  0x26   :  { %s7656_s4 = sld [smem:[%s7824_s0 + %s7482_s15]]  }
  0x27   :  { %7836 = sst [smem:[#allocation54_spill]] %s7646_s19 }
  0x28   :  { %s7666_s19 = sld [smem:[%s7824_s0 + %s7484_s28]]  }
  0x29   :  { %7835 = sst [smem:[#allocation53_spill]] %s7641_s27 }
  0x2a   :  { %s7661_s27 = sld [smem:[%s7824_s0 + %s7483_s22]]  }
  0x2b   :  { %64 = vsyncpa [#allocation3], 0 }
  0x2c   :  { %65 = vsyncpa [#allocation6], 0 }
  0x2d   :  { %66 = vsyncpa [#allocation9], 0 }
  0x2e   :  { %67 = vsyncpa [#allocation12], 0 }
  0x2f   :  { %68 = vsyncpa [#allocation15], 0 }
  0x30   :  { %69 = vsyncpa [#allocation18], 0 }
  0x31   :  { %70 = vsyncpa [#allocation21], 0 }
  0x32   :  { %71 = vsyncpa [#allocation24], 0 }
  0x33   :  { %72 = vsyncpa [#allocation27], 0 }
  0x34   :  { %73 = vsyncpa [#allocation30], 0 }
  0x35   :  { %74 = vsyncpa [#allocation4], 0  ;;  %s7485_s7 = smov [#allocation5]  }
  0x36   :  { %s92_s10 = sshll.u32 %s7485_s7, 4  ;;  %s93_s10 = int_to_ptr.vmem [resolvable:$true] %s92_s10 }
  0x37   :  { %s7062_s11 = scalar_lea.vmem %s93_s10, 256  ;;  %p7067_p1 = scmp.lt.s32.totalorder %s93_s10, %s93_s10 }
  0x38   :  { %p7063_p0 = scmp.ne.s32.totalorder %s93_s10, %s7062_s11  ;;  %p7068_p2 = scmp.lt.s32.totalorder %s7062_s11, %s7062_s11 }
  0x3a   :  { %p7069_p3 = por %p7068_p2, %p7067_p1 }
  0x3c   :  { %p7070_p4 = pnand %p7069_p3, %p7063_p0 }
  0x3e   :  { %7073 = shalt.err (!%p7070_p4)
}
  0x3f   :  { %s7486_s0 = smov 64   ;;  %s7487_s15 = smov 4  }
  0x40   :  { %98 = dma.hbm_to_vmem [thread:$0]  %s7526_s9, 256, %s93_s10, [#allocation6], %s7486_s0, %s7486_s0, %s7487_s15  }
  0x41   :  { %s7488_s16 = smov [#allocation8]   ;;  %s7489_s22 = smov [#allocation11]  }
  0x42   :  { %s114_s18 = sshll.u32 %s7488_s16, 4  ;;  %s136_s23 = sshll.u32 %s7489_s22, 4  ;;  %s115_s18 = int_to_ptr.vmem [resolvable:$true] %s114_s18  ;;  %s137_s23 = int_to_ptr.vmem [resolvable:$true] %s136_s23 }
  0x43   :  { %s7082_s26 = scalar_lea.vmem %s115_s18, 2048  ;;  %p7087_p6 = scmp.lt.s32.totalorder %s115_s18, %s115_s18 }
  0x44   :  { %p7083_p5 = scmp.ne.s32.totalorder %s115_s18, %s7082_s26  ;;  %p7088_p7 = scmp.lt.s32.totalorder %s7082_s26, %s7082_s26 }
  0x46   :  { %p7089_p8 = por %p7088_p7, %p7087_p6 }
  0x48   :  { %p7090_p9 = pnand %p7089_p8, %p7083_p5 }
  0x4a   :  { %7093 = shalt.err (!%p7090_p9)
}
  0x4b   :  { %s7490_s28 = smov 128   ;;  %s7491_s1 = smov 8  }
  0x4c   :  { %120 = dma.hbm_to_vmem [thread:$0]  %s7536_s17, 2048, %s115_s18, [#allocation9], %s7490_s28, %s7490_s28, %s7491_s1  }
  0x4d   :  { %s7102_s9 = scalar_lea.vmem %s137_s23, 4096  ;;  %p7107_p11 = scmp.lt.s32.totalorder %s137_s23, %s137_s23 }
  0x4e   :  { %p7103_p10 = scmp.ne.s32.totalorder %s137_s23, %s7102_s9  ;;  %p7108_p12 = scmp.lt.s32.totalorder %s7102_s9, %s7102_s9 }
  0x50   :  { %p7109_p13 = por %p7108_p12, %p7107_p11 }
  0x52   :  { %p7110_p0 = pnand %p7109_p13, %p7103_p10 }
  0x54   :  { %7113 = shalt.err (!%p7110_p0)
}
  0x55   :  { %142 = dma.hbm_to_vmem [thread:$0]  %s7546_s25, 4096, %s137_s23, [#allocation12], %s7490_s28, %s7490_s28, %s7491_s1  }
  0x56   :  { %s7492_s2 = smov [#allocation14]   ;;  %s7493_s10 = smov [#allocation17]  }
  0x57   :  { %s158_s7 = sshll.u32 %s7492_s2, 4  ;;  %s186_s11 = sshll.u32 %s7493_s10, 4  ;;  %s159_s7 = int_to_ptr.vmem [resolvable:$true] %s158_s7  ;;  %s187_s11 = int_to_ptr.vmem [resolvable:$true] %s186_s11 }
  0x58   :  { %s7122_s16 = scalar_lea.vmem %s159_s7, 4096  ;;  %p7127_p2 = scmp.lt.s32.totalorder %s159_s7, %s159_s7 }
  0x59   :  { %p7123_p1 = scmp.ne.s32.totalorder %s159_s7, %s7122_s16  ;;  %p7128_p3 = scmp.lt.s32.totalorder %s7122_s16, %s7122_s16 }
  0x5b   :  { %p7129_p4 = por %p7128_p3, %p7127_p2 }
  0x5d   :  { %p7130_p5 = pnand %p7129_p4, %p7123_p1 }
  0x5f   :  { %7133 = shalt.err (!%p7130_p5)
}
  0x60   :  { %164 = dma.hbm_to_vmem [thread:$0]  %s7556_s3, 4096, %s159_s7, [#allocation15], %s7490_s28, %s7490_s28, %s7491_s1  }
  0x61   :  { %s7142_s17 = scalar_lea.vmem %s187_s11, 8192  ;;  %p7147_p7 = scmp.lt.s32.totalorder %s187_s11, %s187_s11 }
  0x62   :  { %p7143_p6 = scmp.ne.s32.totalorder %s187_s11, %s7142_s17  ;;  %p7148_p8 = scmp.lt.s32.totalorder %s7142_s17, %s7142_s17 }
  0x64   :  { %p7149_p9 = por %p7148_p8, %p7147_p7 }
  0x66   :  { %p7150_p10 = pnand %p7149_p9, %p7143_p6 }
  0x68   :  { %7153 = shalt.err (!%p7150_p10)
}
  0x69   :  { %s7494_s25 = smov 256   ;;  %s7495_s18 = smov 16  }
  0x6a   :  { %192 = dma.hbm_to_vmem [thread:$0]  %s7576_s24, 8192, %s187_s11, [#allocation18], %s7494_s25, %s7494_s25, %s7495_s18  }
  0x6b   :  { %s7496_s22 = smov [#allocation20]   ;;  %s7497_s26 = smov [#allocation23]  }
  0x6c   :  { %s214_s23 = sshll.u32 %s7496_s22, 4  ;;  %s242_s3 = sshll.u32 %s7497_s26, 4  ;;  %s215_s23 = int_to_ptr.vmem [resolvable:$true] %s214_s23  ;;  %s243_s3 = int_to_ptr.vmem [resolvable:$true] %s242_s3 }
  0x6d   :  { %s7162_s9 = scalar_lea.vmem %s215_s23, 16384  ;;  %p7167_p12 = scmp.lt.s32.totalorder %s215_s23, %s215_s23 }
  0x6e   :  { %p7163_p11 = scmp.ne.s32.totalorder %s215_s23, %s7162_s9  ;;  %p7168_p13 = scmp.lt.s32.totalorder %s7162_s9, %s7162_s9 }
  0x70   :  { %p7169_p0 = por %p7168_p13, %p7167_p12 }
  0x72   :  { %p7170_p1 = pnand %p7169_p0, %p7163_p11 }
  0x74   :  { %7173 = shalt.err (!%p7170_p1)
}
  0x75   :  { %220 = dma.hbm_to_vmem [thread:$0]  %s7596_s20, 16384, %s215_s23, [#allocation21], %s7494_s25, %s7494_s25, %s7495_s18  }
  0x76   :  { %s7182_s2 = scalar_lea.vmem %s243_s3, 4096  ;;  %p7187_p3 = scmp.lt.s32.totalorder %s243_s3, %s243_s3 }
  0x77   :  { %p7183_p2 = scmp.ne.s32.totalorder %s243_s3, %s7182_s2  ;;  %p7188_p4 = scmp.lt.s32.totalorder %s7182_s2, %s7182_s2 }
  0x79   :  { %p7189_p5 = por %p7188_p4, %p7187_p3 }
  0x7b   :  { %p7190_p6 = pnand %p7189_p5, %p7183_p2 }
  0x7d   :  { %7193 = shalt.err (!%p7190_p6)
}
  0x7e   :  { %248 = dma.hbm_to_vmem [thread:$0]  %s7616_s30, 4096, %s243_s3, [#allocation24], %s7490_s28, %s7490_s28, %s7491_s1  }
  0x7f   :  { %s7498_s24 = smov [#allocation26]   ;;  %s7499_s10 = smov [#allocation2]  }
  0x80   :  { %s270_s7 = sshll.u32 %s7498_s24, 4  ;;  %s80_s11 = sshll.u32 %s7499_s10, 4  ;;  %s271_s7 = int_to_ptr.vmem [resolvable:$true] %s270_s7  ;;  %s81_s11 = int_to_ptr.vmem [resolvable:$true] %s80_s11 }
  0x81   :  { %s7202_s16 = scalar_lea.vmem %s271_s7, 4096  ;;  %p7207_p8 = scmp.lt.s32.totalorder %s271_s7, %s271_s7 }
  0x82   :  { %p7203_p7 = scmp.ne.s32.totalorder %s271_s7, %s7202_s16  ;;  %p7208_p9 = scmp.lt.s32.totalorder %s7202_s16, %s7202_s16 }
  0x84   :  { %p7209_p10 = por %p7208_p9, %p7207_p8 }
  0x86   :  { %p7210_p11 = pnand %p7209_p10, %p7203_p7 }
  0x88   :  { %7213 = shalt.err (!%p7210_p11)
}
  0x89   :  { %276 = dma.hbm_to_vmem [thread:$0]  %s7636_s8, 4096, %s271_s7, [#allocation27], %s7490_s28, %s7490_s28, %s7491_s1  }
  0x8a   :  { %s7222_s20 = scalar_lea.vmem %s81_s11, 256  ;;  %p7227_p13 = scmp.lt.s32.totalorder %s81_s11, %s81_s11 }
  0x8b   :  { %p7223_p12 = scmp.ne.s32.totalorder %s81_s11, %s7222_s20  ;;  %p7228_p0 = scmp.lt.s32.totalorder %s7222_s20, %s7222_s20 }
  0x8d   :  { %p7229_p1 = por %p7228_p0, %p7227_p13 }
  0x8f   :  { %p7230_p2 = pnand %p7229_p1, %p7223_p12 }
  0x91   :  { %7233 = shalt.err (!%p7230_p2)
}
  0x92   :  { %86 = dma.hbm_to_vmem [thread:$0]  %s7521_s5, 256, %s81_s11, [#allocation3], %s7490_s28, %s7490_s28, %s7491_s1  }
  0x93   :  { %s7500_s30 = smov [#allocation7]   ;;  %s7501_s22 = smov [#allocation10]  }
  0x94   :  { %s105_s17 = sshll.u32 %s7500_s30, 4  ;;  %s127_s23 = sshll.u32 %s7501_s22, 4  ;;  %s106_s17 = int_to_ptr.vmem [resolvable:$true] %s105_s17  ;;  %s128_s23 = int_to_ptr.vmem [resolvable:$true] %s127_s23 }
  0x95   :  { %s7242_s26 = scalar_lea.vmem %s106_s17, 16  ;;  %s7246_s8 = scalar_lea.vmem %s106_s17, 32 }
  0x96   :  { %p7243_p3 = scmp.ne.s32.totalorder %s106_s17, %s7242_s26  ;;  %p7247_p4 = scmp.lt.s32.totalorder %s106_s17, %s106_s17 }
  0x97   :  { %p7248_p5 = scmp.lt.s32.totalorder %s7246_s8, %s7242_s26 }
  0x99   :  { %p7249_p6 = por %p7248_p5, %p7247_p4 }
  0x9b   :  { %p7250_p7 = pnand %p7249_p6, %p7243_p3 }
  0x9d   :  { %7253 = shalt.err (!%p7250_p7)
}
  0x9e   :  { %108 = dma.hbm_to_vmem [thread:$0]  %s7531_s13, 16, %s106_s17, [#allocation6]  }
  0x9f   :  { %s7262_s3 = scalar_lea.vmem %s128_s23, 32  ;;  %p7267_p9 = scmp.lt.s32.totalorder %s128_s23, %s128_s23 }
  0xa0   :  { %p7263_p8 = scmp.ne.s32.totalorder %s128_s23, %s7262_s3  ;;  %p7268_p10 = scmp.lt.s32.totalorder %s7262_s3, %s7262_s3 }
  0xa2   :  { %p7269_p11 = por %p7268_p10, %p7267_p9 }
  0xa4   :  { %p7270_p12 = pnand %p7269_p11, %p7263_p8 }
  0xa6   :  { %7273 = shalt.err (!%p7270_p12)
}
  0xa7   :  { %130 = dma.hbm_to_vmem [thread:$0]  %s7541_s21, 32, %s128_s23, [#allocation9]  }
  0xa8   :  { %s7502_s5 = smov [#allocation13]   ;;  %s7503_s2 = smov [#allocation16]  }
  0xa9   :  { %s149_s9 = sshll.u32 %s7502_s5, 4  ;;  %s172_s24 = sshll.u32 %s7503_s2, 4  ;;  %s150_s9 = int_to_ptr.vmem [resolvable:$true] %s149_s9  ;;  %s173_s24 = int_to_ptr.vmem [resolvable:$true] %s172_s24 }
  0xaa   :  { %s7282_s7 = scalar_lea.vmem %s150_s9, 32  ;;  %p7287_p0 = scmp.lt.s32.totalorder %s150_s9, %s150_s9 }
  0xab   :  { %p7283_p13 = scmp.ne.s32.totalorder %s150_s9, %s7282_s7  ;;  %p7288_p1 = scmp.lt.s32.totalorder %s7282_s7, %s7282_s7 }
  0xad   :  { %p7289_p2 = por %p7288_p1, %p7287_p0 }
  0xaf   :  { %p7290_p3 = pnand %p7289_p2, %p7283_p13 }
  0xb1   :  { %7293 = shalt.err (!%p7290_p3)
}
  0xb2   :  { %152 = dma.hbm_to_vmem [thread:$0]  %s7551_s29, 32, %s150_s9, [#allocation12]  }
  0xb3   :  { %s7302_s13 = scalar_lea.vmem %s173_s24, 4096  ;;  %p7307_p5 = scmp.lt.s32.totalorder %s173_s24, %s173_s24 }
  0xb4   :  { %p7303_p4 = scmp.ne.s32.totalorder %s173_s24, %s7302_s13  ;;  %p7308_p6 = scmp.lt.s32.totalorder %s7302_s13, %s7302_s13 }
  0xb6   :  { %p7309_p7 = por %p7308_p6, %p7307_p5 }
  0xb8   :  { %p7310_p8 = pnand %p7309_p7, %p7303_p4 }
  0xba   :  { %7313 = shalt.err (!%p7310_p8)
}
  0xbb   :  { %178 = dma.hbm_to_vmem [thread:$0]  %s7566_s14, 4096, %s173_s24, [#allocation15], %s7490_s28, %s7490_s28, %s7491_s1  }
  0xbc   :  { %s7504_s21 = smov [#allocation19]   ;;  %s7505_s11 = smov [#allocation22]  }
  0xbd   :  { %s200_s10 = sshll.u32 %s7504_s21, 4  ;;  %s228_s16 = sshll.u32 %s7505_s11, 4  ;;  %s201_s10 = int_to_ptr.vmem [resolvable:$true] %s200_s10  ;;  %s229_s16 = int_to_ptr.vmem [resolvable:$true] %s228_s16 }
  0xbe   :  { %s7322_s20 = scalar_lea.vmem %s201_s10, 16384  ;;  %p7327_p10 = scmp.lt.s32.totalorder %s201_s10, %s201_s10 }
  0xbf   :  { %p7323_p9 = scmp.ne.s32.totalorder %s201_s10, %s7322_s20  ;;  %p7328_p11 = scmp.lt.s32.totalorder %s7322_s20, %s7322_s20 }
  0xc1   :  { %p7329_p12 = por %p7328_p11, %p7327_p10 }
  0xc3   :  { %p7330_p13 = pnand %p7329_p12, %p7323_p9 }
  0xc5   :  { %7333 = shalt.err (!%p7330_p13)
}
  0xc6   :  { %206 = dma.hbm_to_vmem [thread:$0]  %s7586_s6, 16384, %s201_s10, [#allocation18], %s7494_s25, %s7494_s25, %s7495_s18  }
  0xc7   :  { %s7342_s29 = scalar_lea.vmem %s229_s16, 8192  ;;  %p7347_p1 = scmp.lt.s32.totalorder %s229_s16, %s229_s16 }
  0xc8   :  { %p7343_p0 = scmp.ne.s32.totalorder %s229_s16, %s7342_s29  ;;  %p7348_p2 = scmp.lt.s32.totalorder %s7342_s29, %s7342_s29 }
  0xca   :  { %p7349_p3 = por %p7348_p2, %p7347_p1 }
  0xcc   :  { %p7350_p4 = pnand %p7349_p3, %p7343_p0 }
  0xce   :  { %7353 = shalt.err (!%p7350_p4)
}
  0xcf   :  { %s7837_s14 = sld [smem:[#allocation48_spill]]  ;;  %s7506_s30 = smov [#allocation25]  }
  0xd0   :  { %s256_s17 = sshll.u32 %s7506_s30, 4  ;;  %s7507_s22 = smov [#allocation28]   ;;  %s257_s17 = int_to_ptr.vmem [resolvable:$true] %s256_s17 }
  0xd1   :  { %s284_s23 = sshll.u32 %s7507_s22, 4  ;;  %s7362_s26 = scalar_lea.vmem %s257_s17, 4096  ;;  %s285_s23 = int_to_ptr.vmem [resolvable:$true] %s284_s23 }
  0xd2   :  { %p7363_p5 = scmp.ne.s32.totalorder %s257_s17, %s7362_s26  ;;  %p7367_p6 = scmp.lt.s32.totalorder %s257_s17, %s257_s17 }
  0xd3   :  { %p7368_p7 = scmp.lt.s32.totalorder %s7362_s26, %s7362_s26 }
  0xd5   :  { %234 = dma.hbm_to_vmem [thread:$0]  %s7837_s14, 8192, %s229_s16, [#allocation21], %s7490_s28, %s7490_s28, %s7491_s1  }
  0xd6   :  { %p7369_p8 = por %p7368_p7, %p7367_p6 }
  0xd8   :  { %p7370_p9 = pnand %p7369_p8, %p7363_p5 }
  0xda   :  { %7373 = shalt.err (!%p7370_p9)
}
  0xdb   :  { %s7838_s6 = sld [smem:[#allocation51_spill]]  ;;  %s7382_s25 = scalar_lea.vmem %s285_s23, 2048 }
  0xdc   :  { %p7383_p10 = scmp.ne.s32.totalorder %s285_s23, %s7382_s25  ;;  %p7387_p11 = scmp.lt.s32.totalorder %s285_s23, %s285_s23 }
  0xdd   :  { %p7388_p12 = scmp.lt.s32.totalorder %s7382_s25, %s7382_s25 }
  0xdf   :  { %p7389_p13 = por %p7388_p12, %p7387_p11 }
  0xe1   :  { %262 = dma.hbm_to_vmem [thread:$0]  %s7838_s6, 4096, %s257_s17, [#allocation24], %s7490_s28, %s7490_s28, %s7491_s1  }
  0xe2   :  { %p7390_p0 = pnand %p7389_p13, %p7383_p10 }
  0xe4   :  { %7393 = shalt.err (!%p7390_p0)
}
  0xe5   :  { %s7839_s18 = sld [smem:[#allocation54_spill]]  ;;  %s7508_s8 = smov [#allocation29]  }
  0xe6   :  { %s298_s3 = sshll.u32 %s7508_s8, 4  ;;  %s299_s3 = int_to_ptr.vmem [resolvable:$true] %s298_s3 }
  0xe7   :  { %s7402_s5 = scalar_lea.vmem %s299_s3, 1024  ;;  %p7407_p2 = scmp.lt.s32.totalorder %s299_s3, %s299_s3 }
  0xe8   :  { %p7403_p1 = scmp.ne.s32.totalorder %s299_s3, %s7402_s5  ;;  %p7408_p3 = scmp.lt.s32.totalorder %s7402_s5, %s7402_s5 }
  0xea   :  { %p7409_p4 = por %p7408_p3, %p7407_p2 }
  0xeb   :  { %290 = dma.hbm_to_vmem [thread:$0]  %s7839_s18, 2048, %s285_s23, [#allocation27], %s7486_s0, %s7486_s0, %s7487_s15  }
  0xec   :  { %p7410_p5 = pnand %p7409_p4, %p7403_p1 }
  0xee   :  { %7413 = shalt.err (!%p7410_p5)
}
  0xef   :  { %304 = dma.hbm_to_vmem [thread:$0]  %s7656_s4, 1024, %s299_s3, [#allocation30], %s7486_s0, %s7486_s0, %s7487_s15  }
  0xf0   :  { %7434 = dma.done.wait [#allocation3], 256  }
  0xf1   :  { %7435 = vsyncadd [#allocation3], 4294967040 }
  0xf2   :  { %7436 = dma.done.wait [#allocation6], 272  }
  0xf3   :  { %7437 = vsyncadd [#allocation6], 4294967024 }
  0xf4   :  { %7438 = dma.done.wait [#allocation9], 2080  }
  0xf5   :  { %7439 = vsyncadd [#allocation9], 4294965216 }
  0xf6   :  { %7440 = dma.done.wait [#allocation12], 4128  }
  0xf7   :  { %7441 = vsyncadd [#allocation12], 4294963168 }
  0xf8   :  { %7442 = dma.done.wait [#allocation15], 8192  }
  0xf9   :  { %7443 = vsyncadd [#allocation15], 4294959104 }
  0xfa   :  { %7444 = dma.done.wait [#allocation18], 24576  }
  0xfb   :  { %7445 = vsyncadd [#allocation18], 4294942720 }
  0xfc   :  { %7446 = dma.done.wait [#allocation21], 24576  }
  0xfd   :  { %7447 = vsyncadd [#allocation21], 4294942720 }
  0xfe   :  { %7448 = dma.done.wait [#allocation24], 8192  }
  0xff   :  { %7449 = vsyncadd [#allocation24], 4294959104 }
 0x100   :  { %7450 = dma.done.wait [#allocation27], 6144  }
 0x101   :  { %7451 = vsyncadd [#allocation27], 4294961152 }
 0x102   :  { %7452 = dma.done.wait [#allocation30], 1024  }
 0x103   :  { %7453 = vsyncadd [#allocation30], 4294966272  ;;  %v7509_v0 = vmov 0.0   ;;  %vm7510_vm0 = vmmov 0   ;;  %v6140_v1 = vld [vmem:[#allocation5 + $0x8] sm:$0xff]   ;;  %v6141_v2 = vld [vmem:[#allocation5] sm:$0xff]  }
 0x104   :  { %6055 = vmatprep.subr.bf16.mxu0 %v7509_v0  ;;  %6059 = vmatprep.mubr.msk.bf16.mxu0 %vm7510_vm0, %v7509_v0  ;;  %v362_v3 = vld [vmem:[#allocation2] sm:$0xff]  ;;  %v363_v4 = vld [vmem:[#allocation2 + $0x8] sm:$0xff]  ;;  %v6144_v6 = vld [vmem:[#allocation8 + $0x70] ss:$8 sps:$4 sm:$0xff]   ;;  %vm388_vm1 = vcmask 261120   ;;  %v7511_v22 = vmov 0  }
 0x105   :  { %6056 = vmatpush3.bf16.msra.mxu0 %v6140_v1  ;;  %v6142_v5 = vld [vmem:[#allocation8 + $0x74] ss:$8 sps:$4 sm:$0xff]   ;;  %v6145_v7 = vld [vmem:[#allocation8 + $0x64] ss:$8 sps:$4 sm:$0xff]   ;;  %v369_v8 = vpack.c.bf16 %v363_v4, %v362_v3  ;;  %v6147_v9 = vld [vmem:[#allocation8 + $0x60] ss:$8 sps:$4 sm:$0xff]   ;;  %576 = vmatprep.mubr.bf16.mxu1 %v7511_v22 }
 0x106   :  { %6057 = vmatprep.subr.bf16.mxu0 %v7509_v0  ;;  %544 = vmatprep.subr.bf16.mxu1 %v6142_v5  ;;  %v6148_v10 = vld [vmem:[#allocation8 + $0x54] ss:$8 sps:$4 sm:$0xff]   ;;  %v6150_v11 = vld [vmem:[#allocation8 + $0x50] ss:$8 sps:$4 sm:$0xff]   ;;  %v6151_v12 = vld [vmem:[#allocation8 + $0x44] ss:$8 sps:$4 sm:$0xff]  }
 0x107   :  { %545 = vmatpush1.bf16.msra.mxu1 %v6144_v6  ;;  %v6153_v13 = vld [vmem:[#allocation8 + $0x40] ss:$8 sps:$4 sm:$0xff]   ;;  %v6154_v14 = vld [vmem:[#allocation8 + $0x34] ss:$8 sps:$4 sm:$0xff]   ;;  %v6156_v15 = vld [vmem:[#allocation8 + $0x30] ss:$8 sps:$4 sm:$0xff]  }
 0x108   :  { %546 = vmatprep.subr.bf16.mxu1 %v6145_v7  ;;  %v6157_v16 = vld [vmem:[#allocation8 + $0x24] ss:$8 sps:$4 sm:$0xff]   ;;  %v6159_v17 = vld [vmem:[#allocation8 + $0x20] ss:$8 sps:$4 sm:$0xff]   ;;  %v6160_v18 = vld [vmem:[#allocation8 + $0x14] ss:$8 sps:$4 sm:$0xff]  }
 0x109   :  { %6058 = vmatpush3.bf16.msra.mxu0 %v6141_v2  ;;  %v6162_v19 = vld [vmem:[#allocation8 + $0x10] ss:$8 sps:$4 sm:$0xff]   ;;  %v6163_v20 = vld [vmem:[#allocation8 + $0x4] ss:$8 sps:$4 sm:$0xff]   ;;  %v6165_v21 = vld [vmem:[#allocation8] ss:$8 sps:$4 sm:$0xff]  }
 0x10a   :  { %v6166_v23 = vld [vmem:[#allocation11 + $0x70] ss:$8 sps:$4 sm:$0xff]   ;;  %v6168_v24 = vld [vmem:[#allocation11 + $0x74] ss:$8 sps:$4 sm:$0xff]   ;;  %v6171_v25 = vld [vmem:[#allocation11 + $0x64] ss:$8 sps:$4 sm:$0xff]  }
 0x10b   :  { %547 = vmatpush1.bf16.msra.mxu1 %v6147_v9  ;;  %797 = vmatprep.subr.bf16.mxu0 %v6168_v24  ;;  %v6169_v26 = vld [vmem:[#allocation11 + $0x60] ss:$8 sps:$4 sm:$0xff]   ;;  %v6174_v27 = vld [vmem:[#allocation11 + $0x54] ss:$8 sps:$4 sm:$0xff]   ;;  %v6172_v28 = vld [vmem:[#allocation11 + $0x50] ss:$8 sps:$4 sm:$0xff]  }
 0x10c   :  { %6060 = vmatmul.mubr.msk.bf16.vlgmr.msra.gmra.mxu0 %vm388_vm1, %v369_v8  ;;  %548 = vmatprep.subr.bf16.mxu1 %v6148_v10  ;;  %v6177_v29 = vld [vmem:[#allocation11 + $0x44] ss:$8 sps:$4 sm:$0xff]   ;;  %v6175_v30 = vld [vmem:[#allocation11 + $0x40] ss:$8 sps:$4 sm:$0xff]   ;;  %v6180_v31 = vld [vmem:[#allocation11 + $0x34] ss:$8 sps:$4 sm:$0xff]  }
 0x10d   :  { %798 = vmatpush1.bf16.msra.mxu0 %v6166_v23  ;;  %v6178_v32 = vld [vmem:[#allocation11 + $0x30] ss:$8 sps:$4 sm:$0xff]   ;;  %v6183_v33 = vld [vmem:[#allocation11 + $0x24] ss:$8 sps:$4 sm:$0xff]   ;;  %v6181_v34 = vld [vmem:[#allocation11 + $0x20] ss:$8 sps:$4 sm:$0xff]  }
 0x10e   :  { %799 = vmatprep.subr.bf16.mxu0 %v6171_v25  ;;  %v6186_v35 = vld [vmem:[#allocation11 + $0x14] ss:$8 sps:$4 sm:$0xff]   ;;  %v6184_v36 = vld [vmem:[#allocation11 + $0x10] ss:$8 sps:$4 sm:$0xff]   ;;  %v6189_v37 = vld [vmem:[#allocation11 + $0x4] ss:$8 sps:$4 sm:$0xff]  }
 0x10f   :  { %549 = vmatpush1.bf16.msra.mxu1 %v6150_v11  ;;  %v6187_v38 = vld [vmem:[#allocation11] ss:$8 sps:$4 sm:$0xff]   ;;  %v6192_v39 = vld [vmem:[#allocation11 + $0xf4] ss:$8 sps:$4 sm:$0xff]   ;;  %v6190_v40 = vld [vmem:[#allocation11 + $0xf0] ss:$8 sps:$4 sm:$0xff]  }
 0x110   :  { %550 = vmatprep.subr.bf16.mxu1 %v6151_v12  ;;  %v6195_v41 = vld [vmem:[#allocation11 + $0xe4] ss:$8 sps:$4 sm:$0xff]   ;;  %v6193_v42 = vld [vmem:[#allocation11 + $0xe0] ss:$8 sps:$4 sm:$0xff]   ;;  %v6198_v43 = vld [vmem:[#allocation11 + $0xd4] ss:$8 sps:$4 sm:$0xff]  }
 0x111   :  { %800 = vmatpush1.bf16.msra.mxu0 %v6169_v26  ;;  %v6196_v44 = vld [vmem:[#allocation11 + $0xd0] ss:$8 sps:$4 sm:$0xff]   ;;  %v6201_v45 = vld [vmem:[#allocation11 + $0xc4] ss:$8 sps:$4 sm:$0xff]   ;;  %v6199_v46 = vld [vmem:[#allocation11 + $0xc0] ss:$8 sps:$4 sm:$0xff]  }
 0x112   :  { %801 = vmatprep.subr.bf16.mxu0 %v6174_v27  ;;  %v6204_v47 = vld [vmem:[#allocation11 + $0xb4] ss:$8 sps:$4 sm:$0xff]   ;;  %v6202_v48 = vld [vmem:[#allocation11 + $0xb0] ss:$8 sps:$4 sm:$0xff]   ;;  %v6207_v59 = vld [vmem:[#allocation11 + $0xa4] ss:$8 sps:$4 sm:$0xff]  }
 0x113   :  { %551 = vmatpush1.bf16.msra.mxu1 %v6153_v13  ;;  %v5399_v49 = vld [vmem:[#allocation7] ss:$0 sm:$0xff]  ;;  %v6205_v60 = vld [vmem:[#allocation11 + $0xa0] ss:$8 sps:$4 sm:$0xff]   ;;  %v6208_v62 = vld [vmem:[#allocation11 + $0x90] ss:$8 sps:$4 sm:$0xff]  }
 0x114   :  { %552 = vmatprep.subr.bf16.mxu1 %v6154_v14  ;;  %v6210_v61 = vld [vmem:[#allocation11 + $0x94] ss:$8 sps:$4 sm:$0xff]   ;;  %v6213_v63 = vld [vmem:[#allocation11 + $0x84] ss:$8 sps:$4 sm:$0xff]   ;;  %v6211_v1 = vld [vmem:[#allocation11 + $0x80] ss:$8 sps:$4 sm:$0xff]  }
 0x115   :  { %802 = vmatpush1.bf16.msra.mxu0 %v6172_v28  ;;  %v6214_v2 = vld [vmem:[#allocation14 + $0x70] ss:$8 sps:$4 sm:$0xff]   ;;  %v6216_v3 = vld [vmem:[#allocation14 + $0x74] ss:$8 sps:$4 sm:$0xff]   ;;  %v6219_v4 = vld [vmem:[#allocation14 + $0x64] ss:$8 sps:$4 sm:$0xff]   ;;  %v454_v28 = vlaneseq }
 0x116   :  { %803 = vmatprep.subr.bf16.mxu0 %v6177_v29  ;;  %v6217_v5 = vld [vmem:[#allocation14 + $0x60] ss:$8 sps:$4 sm:$0xff]   ;;  %v6222_v6 = vld [vmem:[#allocation14 + $0x54] ss:$8 sps:$4 sm:$0xff]   ;;  %v6220_v7 = vld [vmem:[#allocation14 + $0x50] ss:$8 sps:$4 sm:$0xff]  }
 0x117   :  { %553 = vmatpush1.bf16.msra.mxu1 %v6156_v15  ;;  %v6225_v8 = vld [vmem:[#allocation14 + $0x44] ss:$8 sps:$4 sm:$0xff]   ;;  %v6223_v9 = vld [vmem:[#allocation14 + $0x40] ss:$8 sps:$4 sm:$0xff]   ;;  %v6228_v10 = vld [vmem:[#allocation14 + $0x34] ss:$8 sps:$4 sm:$0xff]  }
 0x118   :  { %554 = vmatprep.subr.bf16.mxu1 %v6157_v16  ;;  %v6226_v11 = vld [vmem:[#allocation14 + $0x30] ss:$8 sps:$4 sm:$0xff]   ;;  %v6231_v12 = vld [vmem:[#allocation14 + $0x24] ss:$8 sps:$4 sm:$0xff]   ;;  %v6229_v13 = vld [vmem:[#allocation14 + $0x20] ss:$8 sps:$4 sm:$0xff]  }
 0x119   :  { %804 = vmatpush1.bf16.msra.mxu0 %v6175_v30  ;;  %v6234_v14 = vld [vmem:[#allocation14 + $0x14] ss:$8 sps:$4 sm:$0xff]   ;;  %v6232_v15 = vld [vmem:[#allocation14 + $0x10] ss:$8 sps:$4 sm:$0xff]   ;;  %v6237_v16 = vld [vmem:[#allocation14 + $0x4] ss:$8 sps:$4 sm:$0xff]  }
 0x11a   :  { %805 = vmatprep.subr.bf16.mxu0 %v6180_v31  ;;  %v6246_v22 = vld [vmem:[#allocation14 + $0xd4] ss:$8 sps:$4 sm:$0xff]   ;;  %v6244_v23 = vld [vmem:[#allocation14 + $0xd0] ss:$8 sps:$4 sm:$0xff]   ;;  %v6249_v24 = vld [vmem:[#allocation14 + $0xc4] ss:$8 sps:$4 sm:$0xff]  }
 0x11b   :  { %555 = vmatpush1.bf16.msra.mxu1 %v6159_v17  ;;  %v6235_v17 = vld [vmem:[#allocation14] ss:$8 sps:$4 sm:$0xff]   ;;  %v6252_v26 = vld [vmem:[#allocation14 + $0xb4] ss:$8 sps:$4 sm:$0xff]   ;;  %v6250_v27 = vld [vmem:[#allocation14 + $0xb0] ss:$8 sps:$4 sm:$0xff]  }
 0x11c   :  { %556 = vmatprep.subr.bf16.mxu1 %v6160_v18  ;;  %v6240_v18 = vld [vmem:[#allocation14 + $0xf4] ss:$8 sps:$4 sm:$0xff]   ;;  %v6247_v25 = vld [vmem:[#allocation14 + $0xc0] ss:$8 sps:$4 sm:$0xff]   ;;  %v7735_v29 = vshrl.u32 %v454_v28, 7  ;;  %s7840_s4 = sld [smem:[#allocation43_spill]] }
 0x11d   :  { %806 = vmatpush1.bf16.msra.mxu0 %v6178_v32  ;;  %v451_v32 = vld [vmem:[#allocation10] sm:$0x3]  ;;  %s7841_s0 = sld [smem:[#allocation44_spill]]  ;;  %s7512_s10 = smov [#allocation31]  }
 0x11e   :  { %807 = vmatprep.subr.bf16.mxu0 %v6183_v33  ;;  %v7738_v30 = vsub.s32 1, %v7735_v29  ;;  %v7741_v31 = vsub.s32 0, %v7735_v29  ;;  %s7842_s15 = sld [smem:[#allocation45_spill]]  ;;  %s5349_s11 = sshll.u32 %s7512_s10, 4  ;;  %s5350_s11 = int_to_ptr.vmem [resolvable:$true] %s5349_s11 }
 0x11f   :  { %557 = vmatpush1.bf16.msra.mxu1 %v6162_v19  ;;  %v6238_v19 = vld [vmem:[#allocation14 + $0xf0] ss:$8 sps:$4 sm:$0xff]   ;;  %s7843_s9 = sld [smem:[#allocation46_spill]]  ;;  %p7419_p7 = scmp.lt.s32.totalorder %s5350_s11, %s5350_s11 }
 0x120   :  { %558 = vmatprep.subr.bf16.mxu1 %v6163_v20  ;;  %v6243_v20 = vld [vmem:[#allocation14 + $0xe4] ss:$8 sps:$4 sm:$0xff]   ;;  %s7844_s2 = sld [smem:[#allocation47_spill]] }
 0x121   :  { %808 = vmatpush1.bf16.msra.mxu0 %v6181_v34  ;;  %v461_v34 = vrot.slane %v451_v32, %v7738_v30  ;;  %s7845_s24 = sld [smem:[#allocation49_spill]] }
 0x122   :  { %809 = vmatprep.subr.bf16.mxu0 %v6186_v35  ;;  %v457_v35 = vrot.slane %v451_v32, %v7741_v31  ;;  %s7846_s7 = sld [smem:[#allocation50_spill]] }
 0x123   :  { %559 = vmatpush1.bf16.msra.mxu1 %v6165_v21  ;;  %v6241_v21 = vld [vmem:[#allocation14 + $0xe0] ss:$8 sps:$4 sm:$0xff]   ;;  %s7847_s13 = sld [smem:[#allocation52_spill]] }
 0x124   :  { %1050 = vmatprep.subr.bf16.mxu1 %v6216_v3  ;;  %v6277_v3 = vld [vmem:[#allocation16 + $0x20] ss:$8 sps:$4 sm:$0xff]   ;;  %s7848_s21 = sld [smem:[#allocation53_spill]] }
 0x125   :  { %810 = vmatpush1.bf16.msra.mxu0 %v6184_v36 }
 0x126   :  { %811 = vmatprep.subr.bf16.mxu0 %v6189_v37 }
 0x129   :  { %812 = vmatpush1.bf16.msra.mxu0 %v6187_v38 }
 0x12a   :  { %813 = vmatprep.subr.bf16.mxu0 %v6192_v39 }
 0x12d   :  { %814 = vmatpush2.bf16.msra.mxu0 %v6190_v40 }
 0x12e   :  { %815 = vmatprep.subr.bf16.mxu0 %v6195_v41 }
 0x131   :  { %816 = vmatpush2.bf16.msra.mxu0 %v6193_v42 }
 0x132   :  { %817 = vmatprep.subr.bf16.mxu0 %v6198_v43 }
 0x135   :  { %818 = vmatpush2.bf16.msra.mxu0 %v6196_v44 }
 0x136   :  { %819 = vmatprep.subr.bf16.mxu0 %v6201_v45 }
 0x139   :  { %820 = vmatpush2.bf16.msra.mxu0 %v6199_v46 }
 0x13a   :  { %821 = vmatprep.subr.bf16.mxu0 %v6204_v47 }
 0x13d   :  { %822 = vmatpush2.bf16.msra.mxu0 %v6202_v48 }
 0x13e   :  { %823 = vmatprep.subr.bf16.mxu0 %v6207_v59  ;;  %v6270_v59 = vld [vmem:[#allocation16 + $0x54] ss:$8 sps:$4 sm:$0xff]  }
 0x141   :  { %824 = vmatpush2.bf16.msra.mxu0 %v6205_v60  ;;  %v6268_v60 = vld [vmem:[#allocation16 + $0x50] ss:$8 sps:$4 sm:$0xff]  }
 0x142   :  { %825 = vmatprep.subr.bf16.mxu0 %v6210_v61  ;;  %v6273_v61 = vld [vmem:[#allocation16 + $0x44] ss:$8 sps:$4 sm:$0xff]  }
 0x145   :  { %826 = vmatpush2.bf16.msra.mxu0 %v6208_v62  ;;  %v6271_v62 = vld [vmem:[#allocation16 + $0x40] ss:$8 sps:$4 sm:$0xff]  }
 0x146   :  { %827 = vmatprep.subr.bf16.mxu0 %v6213_v63  ;;  %v6276_v63 = vld [vmem:[#allocation16 + $0x34] ss:$8 sps:$4 sm:$0xff]  }
 0x149   :  { %828 = vmatpush2.bf16.msra.mxu0 %v6211_v1  ;;  %v6274_v1 = vld [vmem:[#allocation16 + $0x30] ss:$8 sps:$4 sm:$0xff]  }
 0x1cc   :  { %v426_v50 = vpop.f32.mrf.mxu0 }
 0x1cd   :  { %v427_v52 = vadd.f32 %v5399_v49, %v426_v50  ;;  %v6253_v50 = vld [vmem:[#allocation14 + $0xa0] ss:$8 sps:$4 sm:$0xff]  }
 0x1ce   :  { %v6061_v51 = vpop.f32.mrf.mxu0 }
 0x1cf   :  { %v433_v56 = vmax.f32 %v427_v52, 0.0  ;;  %v6258_v51 = vld [vmem:[#allocation14 + $0x94] ss:$8 sps:$4 sm:$0xff]   ;;  %v6256_v52 = vld [vmem:[#allocation14 + $0x90] ss:$8 sps:$4 sm:$0xff]  }
 0x1d0   :  { %v429_v53 = vpop.f32.mrf.mxu0 }
 0x1d1   :  { %v430_v54 = vadd.f32 %v5399_v49, %v429_v53  ;;  %v6255_v49 = vld [vmem:[#allocation14 + $0xa4] ss:$8 sps:$4 sm:$0xff]  }
 0x1d2   :  { %v6062_v55 = vpop.f32.mrf.mxu0  ;;  %v6261_v53 = vld [vmem:[#allocation14 + $0x84] ss:$8 sps:$4 sm:$0xff]  }
 0x1d3   :  { %v434_v57 = vmax.f32 %v430_v54, 0.0  ;;  %v6259_v54 = vld [vmem:[#allocation14 + $0x80] ss:$8 sps:$4 sm:$0xff]   ;;  %v6262_v55 = vld [vmem:[#allocation16 + $0x70] ss:$8 sps:$4 sm:$0xff]  }
 0x1d5   :  { %v452_v58 = vpack.c.bf16 %v434_v57, %v433_v56  ;;  %v6264_v56 = vld [vmem:[#allocation16 + $0x74] ss:$8 sps:$4 sm:$0xff]   ;;  %v6267_v57 = vld [vmem:[#allocation16 + $0x64] ss:$8 sps:$4 sm:$0xff]  }
 0x1d6   :  { %1303 = vmatprep.subr.bf16.mxu0 %v6264_v56  ;;  %v6340_v56 = vld [vmem:[#allocation17 + $0x40] ss:$16 sps:$4 sm:$0xff]  }
 0x1d7   :  { %577 = vmatmul.mubr.bf16.vlgmr.msra.gmra.mxu1 %v452_v58  ;;  %v6265_v58 = vld [vmem:[#allocation16 + $0x60] ss:$8 sps:$4 sm:$0xff]  }
 0x1d8   :  { %1051 = vmatpush1.bf16.msra.mxu1 %v6214_v2  ;;  %v6279_v2 = vld [vmem:[#allocation16 + $0x24] ss:$8 sps:$4 sm:$0xff]  }
 0x1d9   :  { %1052 = vmatprep.subr.bf16.mxu1 %v6219_v4  ;;  %v6282_v4 = vld [vmem:[#allocation16 + $0x14] ss:$8 sps:$4 sm:$0xff]  }
 0x1dc   :  { %1053 = vmatpush1.bf16.msra.mxu1 %v6217_v5  ;;  %v6280_v5 = vld [vmem:[#allocation16 + $0x10] ss:$8 sps:$4 sm:$0xff]  }
 0x1dd   :  { %1054 = vmatprep.subr.bf16.mxu1 %v6222_v6  ;;  %v6285_v6 = vld [vmem:[#allocation16 + $0x4] ss:$8 sps:$4 sm:$0xff]  }
 0x1e0   :  { %1055 = vmatpush1.bf16.msra.mxu1 %v6220_v7  ;;  %v6283_v7 = vld [vmem:[#allocation16] ss:$8 sps:$4 sm:$0xff]  }
 0x1e1   :  { %1056 = vmatprep.subr.bf16.mxu1 %v6225_v8  ;;  %v6288_v8 = vld [vmem:[#allocation16 + $0xf4] ss:$8 sps:$4 sm:$0xff]  }
 0x1e4   :  { %1057 = vmatpush1.bf16.msra.mxu1 %v6223_v9  ;;  %v6286_v9 = vld [vmem:[#allocation16 + $0xf0] ss:$8 sps:$4 sm:$0xff]  }
 0x1e5   :  { %1058 = vmatprep.subr.bf16.mxu1 %v6228_v10  ;;  %v6291_v10 = vld [vmem:[#allocation16 + $0xe4] ss:$8 sps:$4 sm:$0xff]  }
 0x1e8   :  { %1059 = vmatpush1.bf16.msra.mxu1 %v6226_v11  ;;  %v6289_v11 = vld [vmem:[#allocation16 + $0xe0] ss:$8 sps:$4 sm:$0xff]  }
 0x1e9   :  { %1060 = vmatprep.subr.bf16.mxu1 %v6231_v12  ;;  %v6294_v12 = vld [vmem:[#allocation16 + $0xd4] ss:$8 sps:$4 sm:$0xff]  }
 0x1ec   :  { %1061 = vmatpush1.bf16.msra.mxu1 %v6229_v13  ;;  %v6292_v13 = vld [vmem:[#allocation16 + $0xd0] ss:$8 sps:$4 sm:$0xff]  }
 0x1ed   :  { %1062 = vmatprep.subr.bf16.mxu1 %v6234_v14  ;;  %v6297_v14 = vld [vmem:[#allocation16 + $0xc4] ss:$8 sps:$4 sm:$0xff]  }
 0x1f0   :  { %1063 = vmatpush1.bf16.msra.mxu1 %v6232_v15  ;;  %v6295_v15 = vld [vmem:[#allocation16 + $0xc0] ss:$8 sps:$4 sm:$0xff]  }
 0x1f1   :  { %1064 = vmatprep.subr.bf16.mxu1 %v6237_v16  ;;  %v6300_v16 = vld [vmem:[#allocation16 + $0xb4] ss:$8 sps:$4 sm:$0xff]  }
 0x1f4   :  { %1065 = vmatpush1.bf16.msra.mxu1 %v6235_v17  ;;  %v6298_v17 = vld [vmem:[#allocation16 + $0xb0] ss:$8 sps:$4 sm:$0xff]  }
 0x1f5   :  { %1066 = vmatprep.subr.bf16.mxu1 %v6240_v18  ;;  %v623_v18 = vld [vmem:[#allocation13] sm:$0x3] }
 0x1f8   :  { %1067 = vmatpush2.bf16.msra.mxu1 %v6238_v19 }
 0x1f9   :  { %1068 = vmatprep.subr.bf16.mxu1 %v6243_v20  ;;  %v634_v20 = vrot.slane %v623_v18, %v7738_v30 }
 0x1fc   :  { %1069 = vmatpush2.bf16.msra.mxu1 %v6241_v21  ;;  %v630_v21 = vrot.slane %v623_v18, %v7741_v31 }
 0x1fd   :  { %1070 = vmatprep.subr.bf16.mxu1 %v6246_v22 }
 0x200   :  { %1071 = vmatpush2.bf16.msra.mxu1 %v6244_v23 }
 0x201   :  { %1072 = vmatprep.subr.bf16.mxu1 %v6249_v24 }
 0x204   :  { %1073 = vmatpush2.bf16.msra.mxu1 %v6247_v25 }
 0x205   :  { %1074 = vmatprep.subr.bf16.mxu1 %v6252_v26 }
 0x208   :  { %1075 = vmatpush2.bf16.msra.mxu1 %v6250_v27 }
 0x209   :  { %1076 = vmatprep.subr.bf16.mxu1 %v6255_v49  ;;  %v6324_v49 = vld [vmem:[#allocation17 + $0xa4] ss:$16 sps:$4 sm:$0xff]  }
 0x20c   :  { %1077 = vmatpush2.bf16.msra.mxu1 %v6253_v50  ;;  %v6322_v50 = vld [vmem:[#allocation17 + $0xa0] ss:$16 sps:$4 sm:$0xff]  }
 0x20d   :  { %1078 = vmatprep.subr.bf16.mxu1 %v6258_v51  ;;  %v6330_v51 = vld [vmem:[#allocation17 + $0x84] ss:$16 sps:$4 sm:$0xff]  }
 0x210   :  { %1079 = vmatpush2.bf16.msra.mxu1 %v6256_v52  ;;  %v6328_v52 = vld [vmem:[#allocation17 + $0x80] ss:$16 sps:$4 sm:$0xff]  }
 0x211   :  { %1080 = vmatprep.subr.bf16.mxu1 %v6261_v53  ;;  %v6336_v53 = vld [vmem:[#allocation17 + $0x64] ss:$16 sps:$4 sm:$0xff]  }
 0x214   :  { %1081 = vmatpush2.bf16.msra.mxu1 %v6259_v54  ;;  %v6334_v54 = vld [vmem:[#allocation17 + $0x60] ss:$16 sps:$4 sm:$0xff]  }
 0x297   :  { %v578_v33 = vpop.f32.mrf.mxu1 }
 0x298   :  { %v579_v40 = vadd.f32 %v578_v33, %v457_v35 }
 0x299   :  { %v580_v36 = vpop.f32.mrf.mxu1 }
 0x29a   :  { %v581_v38 = vadd.f32 %v580_v36, %v461_v34  ;;  %v587_v46 = vmax.f32 %v579_v40, 0.0  ;;  %v6306_v40 = vld [vmem:[#allocation16 + $0x94] ss:$8 sps:$4 sm:$0xff]  }
 0x29b   :  { %v582_v37 = vpop.f32.mrf.mxu1 }
 0x29c   :  { %v583_v39 = vadd.f32 %v582_v37, %v457_v35  ;;  %v588_v44 = vmax.f32 %v581_v38, 0.0  ;;  %v6303_v38 = vld [vmem:[#allocation16 + $0xa4] ss:$8 sps:$4 sm:$0xff]  }
 0x29d   :  { %v584_v41 = vpop.f32.mrf.mxu1 }
 0x29e   :  { %v585_v42 = vadd.f32 %v584_v41, %v461_v34  ;;  %v589_v43 = vmax.f32 %v583_v39, 0.0  ;;  %v6301_v39 = vld [vmem:[#allocation16 + $0xa0] ss:$8 sps:$4 sm:$0xff]   ;;  %v6304_v41 = vld [vmem:[#allocation16 + $0x90] ss:$8 sps:$4 sm:$0xff]  }
 0x2a0   :  { %v590_v45 = vmax.f32 %v585_v42, 0.0  ;;  %v624_v48 = vpack.c.bf16 %v589_v43, %v587_v46  ;;  %v6309_v42 = vld [vmem:[#allocation16 + $0x84] ss:$8 sps:$4 sm:$0xff]   ;;  %v6307_v43 = vld [vmem:[#allocation16 + $0x80] ss:$8 sps:$4 sm:$0xff]  }
 0x2a1   :  { %v6315_v46 = vld [vmem:[#allocation17 + $0xec] ss:$16 sps:$4 sm:$0xff]  }
 0x2a2   :  { %v625_v47 = vpack.c.bf16 %v590_v45, %v588_v44  ;;  %v6310_v44 = vld [vmem:[#allocation17 + $0xe0] ss:$16 sps:$4 sm:$0xff]   ;;  %v6312_v45 = vld [vmem:[#allocation17 + $0xe4] ss:$16 sps:$4 sm:$0xff]  }
 0x2a3   :  { %1758 = vmatprep.subr.bf16.mxu1 %v6312_v45  ;;  %v6369_v45 = vld [vmem:[#allocation17 + $0x1cc] ss:$16 sps:$4 sm:$0xff]  }
 0x2a4   :  { %829 = vmatprep.mubr.bf16.mxu0 %v625_v47  ;;  %v6318_v47 = vld [vmem:[#allocation17 + $0xc4] ss:$16 sps:$4 sm:$0xff]  }
 0x2a5   :  { %830 = vmatmul.mubr.bf16.vlgmr.msra.gmra.mxu0 %v624_v48  ;;  %v6316_v48 = vld [vmem:[#allocation17 + $0xc0] ss:$16 sps:$4 sm:$0xff]  }
 0x2a6   :  { %1304 = vmatpush1.bf16.msra.mxu0 %v6262_v55  ;;  %v6342_v55 = vld [vmem:[#allocation17 + $0x44] ss:$16 sps:$4 sm:$0xff]  }
 0x2a7   :  { %1305 = vmatprep.subr.bf16.mxu0 %v6267_v57  ;;  %v6348_v57 = vld [vmem:[#allocation17 + $0x24] ss:$16 sps:$4 sm:$0xff]  }
 0x2aa   :  { %1306 = vmatpush1.bf16.msra.mxu0 %v6265_v58  ;;  %v6346_v58 = vld [vmem:[#allocation17 + $0x20] ss:$16 sps:$4 sm:$0xff]  }
 0x2ab   :  { %1307 = vmatprep.subr.bf16.mxu0 %v6270_v59  ;;  %v6354_v59 = vld [vmem:[#allocation17 + $0x4] ss:$16 sps:$4 sm:$0xff]  }
 0x2ae   :  { %1308 = vmatpush1.bf16.msra.mxu0 %v6268_v60  ;;  %v6352_v60 = vld [vmem:[#allocation17] ss:$16 sps:$4 sm:$0xff]  }
 0x2af   :  { %1309 = vmatprep.subr.bf16.mxu0 %v6273_v61  ;;  %v6360_v61 = vld [vmem:[#allocation17 + $0x1e4] ss:$16 sps:$4 sm:$0xff]  }
 0x2b2   :  { %1310 = vmatpush1.bf16.msra.mxu0 %v6271_v62  ;;  %v6358_v62 = vld [vmem:[#allocation17 + $0x1e0] ss:$16 sps:$4 sm:$0xff]  }
 0x2b3   :  { %1311 = vmatprep.subr.bf16.mxu0 %v6276_v63  ;;  %v6366_v63 = vld [vmem:[#allocation17 + $0x1c4] ss:$16 sps:$4 sm:$0xff]  }
 0x2b6   :  { %1312 = vmatpush1.bf16.msra.mxu0 %v6274_v1  ;;  %v6364_v1 = vld [vmem:[#allocation17 + $0x1c0] ss:$16 sps:$4 sm:$0xff]  }
 0x2b7   :  { %1313 = vmatprep.subr.bf16.mxu0 %v6279_v2  ;;  %v6372_v2 = vld [vmem:[#allocation17 + $0x1a4] ss:$16 sps:$4 sm:$0xff]  }
 0x2ba   :  { %1314 = vmatpush1.bf16.msra.mxu0 %v6277_v3  ;;  %v6370_v3 = vld [vmem:[#allocation17 + $0x1a0] ss:$16 sps:$4 sm:$0xff]  }
 0x2bb   :  { %1315 = vmatprep.subr.bf16.mxu0 %v6282_v4  ;;  %v6378_v4 = vld [vmem:[#allocation17 + $0x184] ss:$16 sps:$4 sm:$0xff]  }
 0x2be   :  { %1316 = vmatpush1.bf16.msra.mxu0 %v6280_v5  ;;  %v6376_v5 = vld [vmem:[#allocation17 + $0x180] ss:$16 sps:$4 sm:$0xff]  }
 0x2bf   :  { %1317 = vmatprep.subr.bf16.mxu0 %v6285_v6  ;;  %v6384_v6 = vld [vmem:[#allocation17 + $0x164] ss:$16 sps:$4 sm:$0xff]  }
 0x2c2   :  { %1318 = vmatpush1.bf16.msra.mxu0 %v6283_v7  ;;  %v6382_v7 = vld [vmem:[#allocation17 + $0x160] ss:$16 sps:$4 sm:$0xff]  }
 0x2c3   :  { %1319 = vmatprep.subr.bf16.mxu0 %v6288_v8  ;;  %v876_v8 = vld [vmem:[%s7840_s4] sm:$0x3] }
 0x2c6   :  { %1320 = vmatpush2.bf16.msra.mxu0 %v6286_v9 }
 0x2c7   :  { %1321 = vmatprep.subr.bf16.mxu0 %v6291_v10  ;;  %v887_v10 = vrot.slane %v876_v8, %v7738_v30 }
 0x2ca   :  { %1322 = vmatpush2.bf16.msra.mxu0 %v6289_v11  ;;  %v883_v11 = vrot.slane %v876_v8, %v7741_v31 }
 0x2cb   :  { %1323 = vmatprep.subr.bf16.mxu0 %v6294_v12 }
 0x2ce   :  { %1324 = vmatpush2.bf16.msra.mxu0 %v6292_v13 }
 0x2cf   :  { %1325 = vmatprep.subr.bf16.mxu0 %v6297_v14 }
 0x2d2   :  { %1326 = vmatpush2.bf16.msra.mxu0 %v6295_v15 }
 0x2d3   :  { %1327 = vmatprep.subr.bf16.mxu0 %v6300_v16 }
 0x2d6   :  { %1328 = vmatpush2.bf16.msra.mxu0 %v6298_v17 }
 0x2d7   :  { %1329 = vmatprep.subr.bf16.mxu0 %v6303_v38  ;;  %v6343_v38 = vld [vmem:[#allocation17 + $0x48] ss:$16 sps:$4 sm:$0xff]  }
 0x2da   :  { %1330 = vmatpush2.bf16.msra.mxu0 %v6301_v39  ;;  %v6351_v39 = vld [vmem:[#allocation17 + $0x2c] ss:$16 sps:$4 sm:$0xff]  }
 0x2db   :  { %1331 = vmatprep.subr.bf16.mxu0 %v6306_v40  ;;  %v6349_v40 = vld [vmem:[#allocation17 + $0x28] ss:$16 sps:$4 sm:$0xff]  }
 0x2de   :  { %1332 = vmatpush2.bf16.msra.mxu0 %v6304_v41  ;;  %v6357_v41 = vld [vmem:[#allocation17 + $0xc] ss:$16 sps:$4 sm:$0xff]  }
 0x2df   :  { %1333 = vmatprep.subr.bf16.mxu0 %v6309_v42  ;;  %v6355_v42 = vld [vmem:[#allocation17 + $0x8] ss:$16 sps:$4 sm:$0xff]  }
 0x2e2   :  { %1334 = vmatpush2.bf16.msra.mxu0 %v6307_v43  ;;  %v6363_v43 = vld [vmem:[#allocation17 + $0x1ec] ss:$16 sps:$4 sm:$0xff]  }
 0x2e3   :  { %1801 = vmatprep.subr.bf16.mxu0 %v6315_v46  ;;  %v6367_v46 = vld [vmem:[#allocation17 + $0x1c8] ss:$16 sps:$4 sm:$0xff]  }
 0x365   :  { %v831_v19 = vpop.f32.mrf.mxu0 }
 0x366   :  { %v832_v26 = vadd.f32 %v831_v19, %v630_v21 }
 0x367   :  { %v833_v22 = vpop.f32.mrf.mxu0 }
 0x368   :  { %v834_v24 = vadd.f32 %v833_v22, %v634_v20  ;;  %v840_v35 = vmax.f32 %v832_v26, 0.0  ;;  %v6321_v26 = vld [vmem:[#allocation17 + $0xcc] ss:$16 sps:$4 sm:$0xff]  }
 0x369   :  { %v835_v23 = vpop.f32.mrf.mxu0 }
 0x36a   :  { %v836_v25 = vadd.f32 %v835_v23, %v630_v21  ;;  %v841_v33 = vmax.f32 %v834_v24, 0.0  ;;  %v6313_v24 = vld [vmem:[#allocation17 + $0xe8] ss:$16 sps:$4 sm:$0xff]  }
 0x36b   :  { %v837_v27 = vpop.f32.mrf.mxu0 }
 0x36c   :  { %v838_v28 = vadd.f32 %v837_v27, %v634_v20  ;;  %v842_v32 = vmax.f32 %v836_v25, 0.0  ;;  %v6319_v27 = vld [vmem:[#allocation17 + $0xc8] ss:$16 sps:$4 sm:$0xff]  }
 0x36e   :  { %v843_v34 = vmax.f32 %v838_v28, 0.0  ;;  %v877_v37 = vpack.c.bf16 %v842_v32, %v840_v35  ;;  %v6327_v28 = vld [vmem:[#allocation17 + $0xac] ss:$16 sps:$4 sm:$0xff]   ;;  %v6325_v32 = vld [vmem:[#allocation17 + $0xa8] ss:$16 sps:$4 sm:$0xff]  }
 0x36f   :  { %v6339_v35 = vld [vmem:[#allocation17 + $0x6c] ss:$16 sps:$4 sm:$0xff]  }
 0x370   :  { %v878_v36 = vpack.c.bf16 %v843_v34, %v841_v33  ;;  %v6333_v33 = vld [vmem:[#allocation17 + $0x8c] ss:$16 sps:$4 sm:$0xff]   ;;  %v6331_v34 = vld [vmem:[#allocation17 + $0x88] ss:$16 sps:$4 sm:$0xff]  }
 0x372   :  { %1082 = vmatprep.mubr.bf16.mxu1 %v878_v36  ;;  %v6337_v36 = vld [vmem:[#allocation17 + $0x68] ss:$16 sps:$4 sm:$0xff]  }
 0x373   :  { %1083 = vmatmul.mubr.bf16.vlgmr.msra.gmra.mxu1 %v877_v37  ;;  %v6345_v37 = vld [vmem:[#allocation17 + $0x4c] ss:$16 sps:$4 sm:$0xff]  }
 0x374   :  { %1759 = vmatpush1.bf16.msra.mxu1 %v6310_v44  ;;  %v6361_v44 = vld [vmem:[#allocation17 + $0x1e8] ss:$16 sps:$4 sm:$0xff]  }
 0x375   :  { %1760 = vmatprep.subr.bf16.mxu1 %v6318_v47  ;;  %v6375_v47 = vld [vmem:[#allocation17 + $0x1ac] ss:$16 sps:$4 sm:$0xff]  }
 0x378   :  { %1761 = vmatpush1.bf16.msra.mxu1 %v6316_v48  ;;  %v6373_v48 = vld [vmem:[#allocation17 + $0x1a8] ss:$16 sps:$4 sm:$0xff]  }
 0x379   :  { %1762 = vmatprep.subr.bf16.mxu1 %v6324_v49  ;;  %v6381_v49 = vld [vmem:[#allocation17 + $0x18c] ss:$16 sps:$4 sm:$0xff]  }
 0x37c   :  { %1763 = vmatpush1.bf16.msra.mxu1 %v6322_v50  ;;  %v6379_v50 = vld [vmem:[#allocation17 + $0x188] ss:$16 sps:$4 sm:$0xff]  }
 0x37d   :  { %1764 = vmatprep.subr.bf16.mxu1 %v6330_v51  ;;  %v6387_v51 = vld [vmem:[#allocation17 + $0x16c] ss:$16 sps:$4 sm:$0xff]  }
 0x380   :  { %1765 = vmatpush1.bf16.msra.mxu1 %v6328_v52  ;;  %v6385_v52 = vld [vmem:[#allocation17 + $0x168] ss:$16 sps:$4 sm:$0xff]  }
 0x381   :  { %1766 = vmatprep.subr.bf16.mxu1 %v6336_v53  ;;  %v6390_v53 = vld [vmem:[#allocation17 + $0x144] ss:$16 sps:$4 sm:$0xff]  }
 0x384   :  { %1767 = vmatpush1.bf16.msra.mxu1 %v6334_v54  ;;  %v6393_v54 = vld [vmem:[#allocation17 + $0x14c] ss:$16 sps:$4 sm:$0xff]  }
 0x385   :  { %1768 = vmatprep.subr.bf16.mxu1 %v6342_v55  ;;  %v6388_v55 = vld [vmem:[#allocation17 + $0x140] ss:$16 sps:$4 sm:$0xff]  }
 0x388   :  { %1769 = vmatpush1.bf16.msra.mxu1 %v6340_v56  ;;  %v6391_v56 = vld [vmem:[#allocation17 + $0x148] ss:$16 sps:$4 sm:$0xff]  }
 0x389   :  { %1770 = vmatprep.subr.bf16.mxu1 %v6348_v57  ;;  %v6396_v57 = vld [vmem:[#allocation17 + $0x124] ss:$16 sps:$4 sm:$0xff]  }
 0x38c   :  { %1771 = vmatpush1.bf16.msra.mxu1 %v6346_v58  ;;  %v6399_v58 = vld [vmem:[#allocation17 + $0x12c] ss:$16 sps:$4 sm:$0xff]  }
 0x38d   :  { %1772 = vmatprep.subr.bf16.mxu1 %v6354_v59  ;;  %v6394_v59 = vld [vmem:[#allocation17 + $0x120] ss:$16 sps:$4 sm:$0xff]  }
 0x390   :  { %1773 = vmatpush1.bf16.msra.mxu1 %v6352_v60  ;;  %v6397_v60 = vld [vmem:[#allocation17 + $0x128] ss:$16 sps:$4 sm:$0xff]  }
 0x391   :  { %1774 = vmatprep.subr.bf16.mxu1 %v6360_v61  ;;  %v6402_v61 = vld [vmem:[#allocation17 + $0x104] ss:$16 sps:$4 sm:$0xff]  }
 0x394   :  { %1775 = vmatpush2.bf16.msra.mxu1 %v6358_v62  ;;  %v6405_v62 = vld [vmem:[#allocation17 + $0x10c] ss:$16 sps:$4 sm:$0xff]  }
 0x395   :  { %1776 = vmatprep.subr.bf16.mxu1 %v6366_v63  ;;  %v6400_v63 = vld [vmem:[#allocation17 + $0x100] ss:$16 sps:$4 sm:$0xff]  }
 0x398   :  { %1777 = vmatpush2.bf16.msra.mxu1 %v6364_v1  ;;  %v6403_v1 = vld [vmem:[#allocation17 + $0x108] ss:$16 sps:$4 sm:$0xff]  }
 0x399   :  { %1778 = vmatprep.subr.bf16.mxu1 %v6372_v2  ;;  %v6408_v2 = vld [vmem:[#allocation19 + $0xe4] ss:$16 sps:$4 sm:$0xff]  }
 0x39c   :  { %1779 = vmatpush2.bf16.msra.mxu1 %v6370_v3  ;;  %v6411_v3 = vld [vmem:[#allocation19 + $0x2e4] ss:$16 sps:$4 sm:$0xff]  }
 0x39d   :  { %1780 = vmatprep.subr.bf16.mxu1 %v6378_v4  ;;  %v1129_v4 = vld [vmem:[%s7841_s0] sm:$0x3] }
 0x3a0   :  { %1781 = vmatpush2.bf16.msra.mxu1 %v6376_v5 }
 0x3a1   :  { %1782 = vmatprep.subr.bf16.mxu1 %v6384_v6  ;;  %v1140_v6 = vrot.slane %v1129_v4, %v7738_v30 }
 0x3a4   :  { %1783 = vmatpush2.bf16.msra.mxu1 %v6382_v7  ;;  %v1136_v7 = vrot.slane %v1129_v4, %v7741_v31  ;;  %v6477_v4 = vld [vmem:[#allocation19 + $0x384] ss:$16 sps:$4 sm:$0xff]  }
 0x3a5   :  { %1784 = vmatprep.subr.bf16.mxu1 %v6390_v53  ;;  %v6451_v53 = vld [vmem:[#allocation19 + $0x200] ss:$16 sps:$4 sm:$0xff]  }
 0x3a8   :  { %1785 = vmatpush2.bf16.msra.mxu1 %v6388_v55  ;;  %v6459_v55 = vld [vmem:[#allocation19 + $0x3e4] ss:$16 sps:$4 sm:$0xff]  }
 0x3a9   :  { %1786 = vmatprep.subr.bf16.mxu1 %v6396_v57  ;;  %v6457_v57 = vld [vmem:[#allocation19 + $0x3e0] ss:$16 sps:$4 sm:$0xff]  }
 0x3ac   :  { %1787 = vmatpush2.bf16.msra.mxu1 %v6394_v59  ;;  %v6465_v59 = vld [vmem:[#allocation19 + $0x3c4] ss:$16 sps:$4 sm:$0xff]  }
 0x3ad   :  { %1788 = vmatprep.subr.bf16.mxu1 %v6402_v61  ;;  %v6463_v61 = vld [vmem:[#allocation19 + $0x3c0] ss:$16 sps:$4 sm:$0xff]  }
 0x3b0   :  { %1789 = vmatpush2.bf16.msra.mxu1 %v6400_v63  ;;  %v6471_v63 = vld [vmem:[#allocation19 + $0x3a4] ss:$16 sps:$4 sm:$0xff]  }
 0x3b1   :  { %2646 = vmatprep.subr.bf16.mxu1 %v6408_v2  ;;  %v6469_v2 = vld [vmem:[#allocation19 + $0x3a0] ss:$16 sps:$4 sm:$0xff]  }
 0x433   :  { %v1084_v9 = vpop.f32.mrf.mxu1 }
 0x434   :  { %v1085_v16 = vadd.f32 %v1084_v9, %v883_v11 }
 0x435   :  { %v1086_v12 = vpop.f32.mrf.mxu1 }
 0x436   :  { %v1087_v14 = vadd.f32 %v1086_v12, %v887_v10  ;;  %v1093_v22 = vmax.f32 %v1085_v16, 0.0 }
 0x437   :  { %v1088_v13 = vpop.f32.mrf.mxu1 }
 0x438   :  { %v1089_v15 = vadd.f32 %v1088_v13, %v883_v11  ;;  %v1094_v20 = vmax.f32 %v1087_v14, 0.0 }
 0x439   :  { %v1090_v17 = vpop.f32.mrf.mxu1 }
 0x43a   :  { %v1091_v18 = vadd.f32 %v1090_v17, %v887_v10  ;;  %v1095_v19 = vmax.f32 %v1089_v15, 0.0 }
 0x43c   :  { %v1096_v21 = vmax.f32 %v1091_v18, 0.0  ;;  %v1130_v25 = vpack.c.bf16 %v1095_v19, %v1093_v22 }
 0x43e   :  { %v1131_v23 = vpack.c.bf16 %v1096_v21, %v1094_v20  ;;  %v6406_v20 = vld [vmem:[#allocation19 + $0xe0] ss:$16 sps:$4 sm:$0xff]  }
 0x43f   :  { %v6409_v21 = vld [vmem:[#allocation19 + $0x2e0] ss:$16 sps:$4 sm:$0xff]  }
 0x440   :  { %1335 = vmatprep.mubr.bf16.mxu0 %v1131_v23  ;;  %v6414_v23 = vld [vmem:[#allocation19 + $0xc4] ss:$16 sps:$4 sm:$0xff]  }
 0x441   :  { %1336 = vmatmul.mubr.bf16.vlgmr.msra.gmra.mxu0 %v1130_v25  ;;  %v6412_v25 = vld [vmem:[#allocation19 + $0xc0] ss:$16 sps:$4 sm:$0xff]  }
 0x442   :  { %1802 = vmatpush1.bf16.msra.mxu0 %v6313_v24  ;;  %v6417_v24 = vld [vmem:[#allocation19 + $0x2c4] ss:$16 sps:$4 sm:$0xff]  }
 0x443   :  { %1803 = vmatprep.subr.bf16.mxu0 %v6321_v26  ;;  %v6415_v26 = vld [vmem:[#allocation19 + $0x2c0] ss:$16 sps:$4 sm:$0xff]  }
 0x446   :  { %1804 = vmatpush1.bf16.msra.mxu0 %v6319_v27  ;;  %v6420_v27 = vld [vmem:[#allocation19 + $0xa4] ss:$16 sps:$4 sm:$0xff]  }
 0x447   :  { %1805 = vmatprep.subr.bf16.mxu0 %v6327_v28  ;;  %v6423_v28 = vld [vmem:[#allocation19 + $0x2a4] ss:$16 sps:$4 sm:$0xff]  }
 0x44a   :  { %1806 = vmatpush1.bf16.msra.mxu0 %v6325_v32  ;;  %v6418_v32 = vld [vmem:[#allocation19 + $0xa0] ss:$16 sps:$4 sm:$0xff]  }
 0x44b   :  { %1807 = vmatprep.subr.bf16.mxu0 %v6333_v33  ;;  %v6421_v33 = vld [vmem:[#allocation19 + $0x2a0] ss:$16 sps:$4 sm:$0xff]  }
 0x44e   :  { %1808 = vmatpush1.bf16.msra.mxu0 %v6331_v34  ;;  %v6426_v34 = vld [vmem:[#allocation19 + $0x84] ss:$16 sps:$4 sm:$0xff]  }
 0x44f   :  { %1809 = vmatprep.subr.bf16.mxu0 %v6339_v35  ;;  %v6429_v35 = vld [vmem:[#allocation19 + $0x284] ss:$16 sps:$4 sm:$0xff]  }
 0x452   :  { %1810 = vmatpush1.bf16.msra.mxu0 %v6337_v36  ;;  %v6424_v36 = vld [vmem:[#allocation19 + $0x80] ss:$16 sps:$4 sm:$0xff]  }
 0x453   :  { %1811 = vmatprep.subr.bf16.mxu0 %v6345_v37  ;;  %v6427_v37 = vld [vmem:[#allocation19 + $0x280] ss:$16 sps:$4 sm:$0xff]  }
 0x456   :  { %1812 = vmatpush1.bf16.msra.mxu0 %v6343_v38  ;;  %v6432_v38 = vld [vmem:[#allocation19 + $0x64] ss:$16 sps:$4 sm:$0xff]  }
 0x457   :  { %1813 = vmatprep.subr.bf16.mxu0 %v6351_v39  ;;  %v6435_v39 = vld [vmem:[#allocation19 + $0x264] ss:$16 sps:$4 sm:$0xff]  }
 0x45a   :  { %1814 = vmatpush1.bf16.msra.mxu0 %v6349_v40  ;;  %v6430_v40 = vld [vmem:[#allocation19 + $0x60] ss:$16 sps:$4 sm:$0xff]  }
 0x45b   :  { %1815 = vmatprep.subr.bf16.mxu0 %v6357_v41  ;;  %v6433_v41 = vld [vmem:[#allocation19 + $0x260] ss:$16 sps:$4 sm:$0xff]  }
 0x45e   :  { %1816 = vmatpush1.bf16.msra.mxu0 %v6355_v42  ;;  %v6438_v42 = vld [vmem:[#allocation19 + $0x44] ss:$16 sps:$4 sm:$0xff]  }
 0x45f   :  { %1817 = vmatprep.subr.bf16.mxu0 %v6363_v43  ;;  %v6441_v43 = vld [vmem:[#allocation19 + $0x244] ss:$16 sps:$4 sm:$0xff]  }
 0x462   :  { %1818 = vmatpush2.bf16.msra.mxu0 %v6361_v44  ;;  %v6436_v44 = vld [vmem:[#allocation19 + $0x40] ss:$16 sps:$4 sm:$0xff]  }
 0x463   :  { %1819 = vmatprep.subr.bf16.mxu0 %v6369_v45  ;;  %v6439_v45 = vld [vmem:[#allocation19 + $0x240] ss:$16 sps:$4 sm:$0xff]  }
 0x466   :  { %1820 = vmatpush2.bf16.msra.mxu0 %v6367_v46  ;;  %v6444_v46 = vld [vmem:[#allocation19 + $0x24] ss:$16 sps:$4 sm:$0xff]  }
 0x467   :  { %1821 = vmatprep.subr.bf16.mxu0 %v6375_v47  ;;  %v6447_v47 = vld [vmem:[#allocation19 + $0x224] ss:$16 sps:$4 sm:$0xff]  }
 0x46a   :  { %1822 = vmatpush2.bf16.msra.mxu0 %v6373_v48  ;;  %v6442_v48 = vld [vmem:[#allocation19 + $0x20] ss:$16 sps:$4 sm:$0xff]  }
 0x46b   :  { %1823 = vmatprep.subr.bf16.mxu0 %v6381_v49  ;;  %v6445_v49 = vld [vmem:[#allocation19 + $0x220] ss:$16 sps:$4 sm:$0xff]  }
 0x46e   :  { %1824 = vmatpush2.bf16.msra.mxu0 %v6379_v50  ;;  %v6450_v50 = vld [vmem:[#allocation19 + $0x4] ss:$16 sps:$4 sm:$0xff]  }
 0x46f   :  { %1825 = vmatprep.subr.bf16.mxu0 %v6387_v51  ;;  %v6453_v51 = vld [vmem:[#allocation19 + $0x204] ss:$16 sps:$4 sm:$0xff]  }
 0x472   :  { %1826 = vmatpush2.bf16.msra.mxu0 %v6385_v52  ;;  %v6448_v52 = vld [vmem:[#allocation19] ss:$16 sps:$4 sm:$0xff]  }
 0x473   :  { %1827 = vmatprep.subr.bf16.mxu0 %v6393_v54  ;;  %v6456_v54 = vld [vmem:[#allocation19 + $0x1e4] ss:$16 sps:$4 sm:$0xff]  }
 0x476   :  { %1828 = vmatpush2.bf16.msra.mxu0 %v6391_v56  ;;  %v6454_v56 = vld [vmem:[#allocation19 + $0x1e0] ss:$16 sps:$4 sm:$0xff]  }
 0x477   :  { %1829 = vmatprep.subr.bf16.mxu0 %v6399_v58  ;;  %v6462_v58 = vld [vmem:[#allocation19 + $0x1c4] ss:$16 sps:$4 sm:$0xff]  }
 0x47a   :  { %1830 = vmatpush2.bf16.msra.mxu0 %v6397_v60  ;;  %v6460_v60 = vld [vmem:[#allocation19 + $0x1c0] ss:$16 sps:$4 sm:$0xff]  }
 0x47b   :  { %1831 = vmatprep.subr.bf16.mxu0 %v6405_v62  ;;  %v6468_v62 = vld [vmem:[#allocation19 + $0x1a4] ss:$16 sps:$4 sm:$0xff]  }
 0x47e   :  { %1832 = vmatpush2.bf16.msra.mxu0 %v6403_v1  ;;  %v6466_v1 = vld [vmem:[#allocation19 + $0x1a0] ss:$16 sps:$4 sm:$0xff]  }
 0x47f   :  { %2689 = vmatprep.subr.bf16.mxu0 %v6411_v3  ;;  %v6474_v3 = vld [vmem:[#allocation19 + $0x184] ss:$16 sps:$4 sm:$0xff]  }
 0x501   :  { %v1337_v5 = vpop.f32.mrf.mxu0 }
 0x502   :  { %v1338_v12 = vadd.f32 %v1337_v5, %v1136_v7  ;;  %v6472_v5 = vld [vmem:[#allocation19 + $0x180] ss:$16 sps:$4 sm:$0xff]  }
 0x503   :  { %v1339_v8 = vpop.f32.mrf.mxu0 }
 0x504   :  { %v1340_v10 = vadd.f32 %v1339_v8, %v1140_v6  ;;  %v1346_v18 = vmax.f32 %v1338_v12, 0.0  ;;  %v6483_v8 = vld [vmem:[#allocation19 + $0x364] ss:$16 sps:$4 sm:$0xff]  }
 0x505   :  { %v1341_v9 = vpop.f32.mrf.mxu0  ;;  %v6489_v12 = vld [vmem:[#allocation19 + $0x344] ss:$16 sps:$4 sm:$0xff]  }
 0x506   :  { %v1342_v11 = vadd.f32 %v1341_v9, %v1136_v7  ;;  %v1347_v16 = vmax.f32 %v1340_v10, 0.0  ;;  %v6480_v7 = vld [vmem:[#allocation19 + $0x164] ss:$16 sps:$4 sm:$0xff]   ;;  %v6478_v9 = vld [vmem:[#allocation19 + $0x160] ss:$16 sps:$4 sm:$0xff]  }
 0x507   :  { %v1343_v13 = vpop.f32.mrf.mxu0  ;;  %v6481_v10 = vld [vmem:[#allocation19 + $0x360] ss:$16 sps:$4 sm:$0xff]  }
 0x508   :  { %v1344_v14 = vadd.f32 %v1343_v13, %v1140_v6  ;;  %v1348_v15 = vmax.f32 %v1342_v11, 0.0  ;;  %v6475_v6 = vld [vmem:[#allocation19 + $0x380] ss:$16 sps:$4 sm:$0xff]   ;;  %v6486_v11 = vld [vmem:[#allocation19 + $0x144] ss:$16 sps:$4 sm:$0xff]  }
 0x509   :  { %v6484_v13 = vld [vmem:[#allocation19 + $0x140] ss:$16 sps:$4 sm:$0xff]  }
 0x50a   :  { %v1349_v17 = vmax.f32 %v1344_v14, 0.0  ;;  %v1415_v22 = vpack.c.bf16 %v1348_v15, %v1346_v18  ;;  %v6487_v14 = vld [vmem:[#allocation19 + $0x340] ss:$16 sps:$4 sm:$0xff]   ;;  %v6492_v15 = vld [vmem:[#allocation19 + $0x124] ss:$16 sps:$4 sm:$0xff]  }
 0x50b   :  { %v6493_v18 = vld [vmem:[#allocation19 + $0x320] ss:$16 sps:$4 sm:$0xff]  }
 0x50c   :  { %v1416_v19 = vpack.c.bf16 %v1349_v17, %v1347_v16  ;;  %v6495_v16 = vld [vmem:[#allocation19 + $0x324] ss:$16 sps:$4 sm:$0xff]   ;;  %v6490_v17 = vld [vmem:[#allocation19 + $0x120] ss:$16 sps:$4 sm:$0xff]  }
 0x50e   :  { %1790 = vmatprep.mubr.bf16.mxu1 %v1416_v19  ;;  %1833 = vmatprep.mubr.bf16.mxu0 %v1416_v19  ;;  %v6498_v19 = vld [vmem:[#allocation19 + $0x104] ss:$16 sps:$4 sm:$0xff]  }
 0x50f   :  { %1791 = vmatmul.mubr.bf16.vlgmr.msra.gmra.mxu1 %v1415_v22  ;;  %1834 = vmatmul.mubr.bf16.vlgmr.msra.gmra.mxu0 %v1415_v22  ;;  %v6499_v22 = vld [vmem:[#allocation19 + $0x300] ss:$16 sps:$4 sm:$0xff]  }
 0x510   :  { %2647 = vmatpush1.bf16.msra.mxu1 %v6406_v20  ;;  %2690 = vmatpush1.bf16.msra.mxu0 %v6409_v21  ;;  %v6501_v20 = vld [vmem:[#allocation19 + $0x304] ss:$16 sps:$4 sm:$0xff]   ;;  %v6496_v21 = vld [vmem:[#allocation19 + $0x100] ss:$16 sps:$4 sm:$0xff]  }
 0x511   :  { %2648 = vmatprep.subr.bf16.mxu1 %v6414_v23  ;;  %2691 = vmatprep.subr.bf16.mxu0 %v6417_v24  ;;  %v6504_v23 = vld [vmem:[#allocation19 + $0xec] ss:$16 sps:$4 sm:$0xff]  }
 0x512   :  { %v6507_v24 = vld [vmem:[#allocation19 + $0x2ec] ss:$16 sps:$4 sm:$0xff]  }
 0x514   :  { %2649 = vmatpush1.bf16.msra.mxu1 %v6412_v25  ;;  %2692 = vmatpush1.bf16.msra.mxu0 %v6415_v26  ;;  %v7754_v25 = vsub.s32 3, %v7735_v29  ;;  %v7757_v26 = vsub.s32 2, %v7735_v29 }
 0x515   :  { %2650 = vmatprep.subr.bf16.mxu1 %v6420_v27  ;;  %2693 = vmatprep.subr.bf16.mxu0 %v6423_v28  ;;  %v1414_v27 = vld [vmem:[%s7842_s15] sm:$0xf] }
 0x518   :  { %2651 = vmatpush1.bf16.msra.mxu1 %v6418_v32  ;;  %2694 = vmatpush1.bf16.msra.mxu0 %v6421_v33  ;;  %v1425_v33 = vrot.slane %v1414_v27, %v7738_v30 }
 0x519   :  { %2652 = vmatprep.subr.bf16.mxu1 %v6426_v34  ;;  %2695 = vmatprep.subr.bf16.mxu0 %v6429_v35  ;;  %v1433_v34 = vrot.slane %v1414_v27, %v7754_v25  ;;  %v1421_v35 = vrot.slane %v1414_v27, %v7741_v31 }
 0x51c   :  { %2653 = vmatpush1.bf16.msra.mxu1 %v6424_v36  ;;  %2696 = vmatpush1.bf16.msra.mxu0 %v6427_v37  ;;  %v1429_v36 = vrot.slane %v1414_v27, %v7757_v26  ;;  %v6546_v27 = vld [vmem:[#allocation19 + $0xc] ss:$16 sps:$4 sm:$0xff]  }
 0x51d   :  { %2654 = vmatprep.subr.bf16.mxu1 %v6432_v38  ;;  %2697 = vmatprep.subr.bf16.mxu0 %v6435_v39 }
 0x520   :  { %2655 = vmatpush1.bf16.msra.mxu1 %v6430_v40  ;;  %2698 = vmatpush1.bf16.msra.mxu0 %v6433_v41 }
 0x521   :  { %2656 = vmatprep.subr.bf16.mxu1 %v6438_v42  ;;  %2699 = vmatprep.subr.bf16.mxu0 %v6441_v43 }
 0x524   :  { %2657 = vmatpush1.bf16.msra.mxu1 %v6436_v44  ;;  %2700 = vmatpush1.bf16.msra.mxu0 %v6439_v45 }
 0x525   :  { %2658 = vmatprep.subr.bf16.mxu1 %v6444_v46  ;;  %2701 = vmatprep.subr.bf16.mxu0 %v6447_v47 }
 0x528   :  { %2659 = vmatpush1.bf16.msra.mxu1 %v6442_v48  ;;  %2702 = vmatpush1.bf16.msra.mxu0 %v6445_v49 }
 0x529   :  { %2660 = vmatprep.subr.bf16.mxu1 %v6450_v50  ;;  %2703 = vmatprep.subr.bf16.mxu0 %v6453_v51 }
 0x52c   :  { %2661 = vmatpush1.bf16.msra.mxu1 %v6448_v52  ;;  %2704 = vmatpush1.bf16.msra.mxu0 %v6451_v53 }
 0x52d   :  { %2662 = vmatprep.subr.bf16.mxu1 %v6456_v54  ;;  %2705 = vmatprep.subr.bf16.mxu0 %v6459_v55 }
 0x530   :  { %2663 = vmatpush2.bf16.msra.mxu1 %v6454_v56  ;;  %2706 = vmatpush2.bf16.msra.mxu0 %v6457_v57 }
 0x531   :  { %2664 = vmatprep.subr.bf16.mxu1 %v6462_v58  ;;  %2707 = vmatprep.subr.bf16.mxu0 %v6465_v59 }
 0x534   :  { %2665 = vmatpush2.bf16.msra.mxu1 %v6460_v60  ;;  %2708 = vmatpush2.bf16.msra.mxu0 %v6463_v61  ;;  %v6502_v60 = vld [vmem:[#allocation19 + $0xe8] ss:$16 sps:$4 sm:$0xff]  }
 0x535   :  { %2666 = vmatprep.subr.bf16.mxu1 %v6468_v62  ;;  %2709 = vmatprep.subr.bf16.mxu0 %v6471_v63  ;;  %v6505_v61 = vld [vmem:[#allocation19 + $0x2e8] ss:$16 sps:$4 sm:$0xff]  }
 0x538   :  { %2667 = vmatpush2.bf16.msra.mxu1 %v6466_v1  ;;  %2710 = vmatpush2.bf16.msra.mxu0 %v6469_v2  ;;  %v6510_v1 = vld [vmem:[#allocation19 + $0xcc] ss:$16 sps:$4 sm:$0xff]  }
 0x539   :  { %2668 = vmatprep.subr.bf16.mxu1 %v6474_v3  ;;  %2711 = vmatprep.subr.bf16.mxu0 %v6477_v4  ;;  %v6513_v2 = vld [vmem:[#allocation19 + $0x2cc] ss:$16 sps:$4 sm:$0xff]   ;;  %v6508_v3 = vld [vmem:[#allocation19 + $0xc8] ss:$16 sps:$4 sm:$0xff]  }
 0x53a   :  { %v6511_v4 = vld [vmem:[#allocation19 + $0x2c8] ss:$16 sps:$4 sm:$0xff]  }
 0x53c   :  { %2669 = vmatpush2.bf16.msra.mxu1 %v6472_v5  ;;  %2712 = vmatpush2.bf16.msra.mxu0 %v6475_v6  ;;  %v6516_v5 = vld [vmem:[#allocation19 + $0xac] ss:$16 sps:$4 sm:$0xff]  }
 0x53d   :  { %2670 = vmatprep.subr.bf16.mxu1 %v6480_v7  ;;  %2713 = vmatprep.subr.bf16.mxu0 %v6483_v8  ;;  %v6519_v6 = vld [vmem:[#allocation19 + $0x2ac] ss:$16 sps:$4 sm:$0xff]   ;;  %v6514_v7 = vld [vmem:[#allocation19 + $0xa8] ss:$16 sps:$4 sm:$0xff]  }
 0x53e   :  { %v6517_v8 = vld [vmem:[#allocation19 + $0x2a8] ss:$16 sps:$4 sm:$0xff]  }
 0x540   :  { %2671 = vmatpush2.bf16.msra.mxu1 %v6478_v9  ;;  %2714 = vmatpush2.bf16.msra.mxu0 %v6481_v10  ;;  %v6522_v9 = vld [vmem:[#allocation19 + $0x8c] ss:$16 sps:$4 sm:$0xff]  }
 0x541   :  { %2672 = vmatprep.subr.bf16.mxu1 %v6486_v11  ;;  %2715 = vmatprep.subr.bf16.mxu0 %v6489_v12  ;;  %v6525_v10 = vld [vmem:[#allocation19 + $0x28c] ss:$16 sps:$4 sm:$0xff]   ;;  %v6520_v11 = vld [vmem:[#allocation19 + $0x88] ss:$16 sps:$4 sm:$0xff]  }
 0x542   :  { %v6523_v12 = vld [vmem:[#allocation19 + $0x288] ss:$16 sps:$4 sm:$0xff]  }
 0x544   :  { %2673 = vmatpush2.bf16.msra.mxu1 %v6484_v13  ;;  %2716 = vmatpush2.bf16.msra.mxu0 %v6487_v14  ;;  %v6528_v13 = vld [vmem:[#allocation19 + $0x6c] ss:$16 sps:$4 sm:$0xff]  }
 0x545   :  { %2674 = vmatprep.subr.bf16.mxu1 %v6492_v15  ;;  %2717 = vmatprep.subr.bf16.mxu0 %v6495_v16  ;;  %v6531_v14 = vld [vmem:[#allocation19 + $0x26c] ss:$16 sps:$4 sm:$0xff]   ;;  %v6526_v15 = vld [vmem:[#allocation19 + $0x68] ss:$16 sps:$4 sm:$0xff]  }
 0x546   :  { %v6529_v16 = vld [vmem:[#allocation19 + $0x268] ss:$16 sps:$4 sm:$0xff]  }
 0x548   :  { %2675 = vmatpush2.bf16.msra.mxu1 %v6490_v17  ;;  %2718 = vmatpush2.bf16.msra.mxu0 %v6493_v18  ;;  %v6534_v17 = vld [vmem:[#allocation19 + $0x4c] ss:$16 sps:$4 sm:$0xff]  }
 0x549   :  { %2676 = vmatprep.subr.bf16.mxu1 %v6498_v19  ;;  %2719 = vmatprep.subr.bf16.mxu0 %v6501_v20  ;;  %v6537_v18 = vld [vmem:[#allocation19 + $0x24c] ss:$16 sps:$4 sm:$0xff]   ;;  %v6532_v19 = vld [vmem:[#allocation19 + $0x48] ss:$16 sps:$4 sm:$0xff]  }
 0x54a   :  { %v6535_v20 = vld [vmem:[#allocation19 + $0x248] ss:$16 sps:$4 sm:$0xff]  }
 0x54c   :  { %2677 = vmatpush2.bf16.msra.mxu1 %v6496_v21  ;;  %2720 = vmatpush2.bf16.msra.mxu0 %v6499_v22  ;;  %v6540_v21 = vld [vmem:[#allocation19 + $0x2c] ss:$16 sps:$4 sm:$0xff]  }
 0x54d   :  { %2732 = vmatprep.subr.bf16.mxu1 %v6504_v23  ;;  %2775 = vmatprep.subr.bf16.mxu0 %v6507_v24  ;;  %v6543_v22 = vld [vmem:[#allocation19 + $0x22c] ss:$16 sps:$4 sm:$0xff]   ;;  %v6538_v23 = vld [vmem:[#allocation19 + $0x28] ss:$16 sps:$4 sm:$0xff]  }
 0x54e   :  { %v6541_v24 = vld [vmem:[#allocation19 + $0x228] ss:$16 sps:$4 sm:$0xff]  }
 0x5cf   :  { %v1792_v28 = vpop.f32.mrf.mxu1  ;;  %v1835_v32 = vpop.f32.mrf.mxu0 }
 0x5d0   :  { %v1793_v44 = vadd.f32 %v1792_v28, %v1421_v35  ;;  %v1836_v45 = vadd.f32 %v1835_v32, %v1429_v36  ;;  %v6549_v28 = vld [vmem:[#allocation19 + $0x20c] ss:$16 sps:$4 sm:$0xff]   ;;  %v6544_v32 = vld [vmem:[#allocation19 + $0x8] ss:$16 sps:$4 sm:$0xff]  }
 0x5d1   :  { %v1794_v37 = vpop.f32.mrf.mxu1  ;;  %v1837_v38 = vpop.f32.mrf.mxu0 }
 0x5d2   :  { %v1795_v41 = vadd.f32 %v1794_v37, %v1425_v33  ;;  %v1838_v42 = vadd.f32 %v1837_v38, %v1433_v34  ;;  %v1844_v56 = vmax.f32 %v1793_v44, 0.0  ;;  %v1846_v57 = vmax.f32 %v1836_v45, 0.0  ;;  %v6553_v37 = vld [vmem:[#allocation19 + $0x3e8] ss:$16 sps:$4 sm:$0xff]   ;;  %v6558_v38 = vld [vmem:[#allocation19 + $0x1cc] ss:$16 sps:$4 sm:$0xff]  }
 0x5d3   :  { %v1796_v39 = vpop.f32.mrf.mxu1  ;;  %v1839_v40 = vpop.f32.mrf.mxu0  ;;  %v6565_v44 = vld [vmem:[#allocation19 + $0x3a8] ss:$16 sps:$4 sm:$0xff]   ;;  %v6570_v45 = vld [vmem:[#allocation19 + $0x18c] ss:$16 sps:$4 sm:$0xff]  }
 0x5d4   :  { %v1797_v43 = vadd.f32 %v1796_v39, %v1421_v35  ;;  %v1840_v29 = vadd.f32 %v1839_v40, %v1429_v36  ;;  %v1845_v52 = vmax.f32 %v1795_v41, 0.0  ;;  %v1847_v53 = vmax.f32 %v1838_v42, 0.0  ;;  %v6555_v35 = vld [vmem:[#allocation19 + $0x3ec] ss:$16 sps:$4 sm:$0xff]   ;;  %v6550_v36 = vld [vmem:[#allocation19 + $0x1e8] ss:$16 sps:$4 sm:$0xff]  }
 0x5d5   :  { %v1798_v46 = vpop.f32.mrf.mxu1  ;;  %v1841_v47 = vpop.f32.mrf.mxu0  ;;  %v6561_v39 = vld [vmem:[#allocation19 + $0x3cc] ss:$16 sps:$4 sm:$0xff]   ;;  %v6556_v40 = vld [vmem:[#allocation19 + $0x1c8] ss:$16 sps:$4 sm:$0xff]  }
 0x5d6   :  { %v1799_v48 = vadd.f32 %v1798_v46, %v1425_v33  ;;  %v1842_v49 = vadd.f32 %v1841_v47, %v1433_v34  ;;  %v1848_v50 = vmax.f32 %v1797_v43, 0.0  ;;  %v1850_v51 = vmax.f32 %v1840_v29, 0.0  ;;  %v6547_v33 = vld [vmem:[#allocation19 + $0x208] ss:$16 sps:$4 sm:$0xff]   ;;  %v6552_v34 = vld [vmem:[#allocation19 + $0x1ec] ss:$16 sps:$4 sm:$0xff]  }
 0x5d7   :  { %v6559_v41 = vld [vmem:[#allocation19 + $0x3c8] ss:$16 sps:$4 sm:$0xff]   ;;  %v6564_v42 = vld [vmem:[#allocation19 + $0x1ac] ss:$16 sps:$4 sm:$0xff]  }
 0x5d8   :  { %v1849_v54 = vmax.f32 %v1799_v48, 0.0  ;;  %v1851_v55 = vmax.f32 %v1842_v49, 0.0  ;;  %v7764_v62 = vpack.c.bf16 %v1848_v50, %v1844_v56  ;;  %v7766_v63 = vpack.c.bf16 %v1850_v51, %v1846_v57  ;;  %v6567_v43 = vld [vmem:[#allocation19 + $0x3ac] ss:$16 sps:$4 sm:$0xff]   ;;  %v6562_v29 = vld [vmem:[#allocation19 + $0x1a8] ss:$16 sps:$4 sm:$0xff]  }
 0x5d9   :  { %v6573_v46 = vld [vmem:[#allocation19 + $0x38c] ss:$16 sps:$4 sm:$0xff]   ;;  %v6568_v47 = vld [vmem:[#allocation19 + $0x188] ss:$16 sps:$4 sm:$0xff]  }
 0x5da   :  { %v1982_v58 = vpack.c.bf16 %v1849_v54, %v1845_v52  ;;  %v1984_v59 = vpack.c.bf16 %v1851_v55, %v1847_v53  ;;  %v6571_v48 = vld [vmem:[#allocation19 + $0x388] ss:$16 sps:$4 sm:$0xff]   ;;  %v6576_v49 = vld [vmem:[#allocation19 + $0x16c] ss:$16 sps:$4 sm:$0xff]  }
 0x5db   :  { %v6579_v50 = vld [vmem:[#allocation19 + $0x36c] ss:$16 sps:$4 sm:$0xff]   ;;  %v6574_v51 = vld [vmem:[#allocation19 + $0x168] ss:$16 sps:$4 sm:$0xff]  }
 0x5dc   :  { %2678 = vmatprep.mubr.bf16.mxu1 %v1982_v58  ;;  %2721 = vmatprep.mubr.bf16.mxu0 %v1984_v59  ;;  %v6577_v52 = vld [vmem:[#allocation19 + $0x368] ss:$16 sps:$4 sm:$0xff]   ;;  %v6582_v53 = vld [vmem:[#allocation19 + $0x14c] ss:$16 sps:$4 sm:$0xff]  }
 0x5dd   :  { %2679 = vmatmul.mubr.bf16.vlgmr.msra.gmra.mxu1 %v7764_v62  ;;  %2722 = vmatmul.mubr.bf16.vlgmr.msra.gmra.mxu0 %v7766_v63  ;;  %v6585_v54 = vld [vmem:[#allocation19 + $0x34c] ss:$16 sps:$4 sm:$0xff]   ;;  %v6580_v55 = vld [vmem:[#allocation19 + $0x148] ss:$16 sps:$4 sm:$0xff]  }
 0x5de   :  { %2733 = vmatpush1.bf16.msra.mxu1 %v6502_v60  ;;  %2776 = vmatpush1.bf16.msra.mxu0 %v6505_v61  ;;  %v6583_v56 = vld [vmem:[#allocation19 + $0x348] ss:$16 sps:$4 sm:$0xff]   ;;  %v6588_v57 = vld [vmem:[#allocation19 + $0x12c] ss:$16 sps:$4 sm:$0xff]  }
 0x5df   :  { %2764 = vmatprep.mubr.bf16.mxu1 %v1982_v58  ;;  %2807 = vmatprep.mubr.bf16.mxu0 %v1984_v59  ;;  %v6591_v58 = vld [vmem:[#allocation19 + $0x32c] ss:$16 sps:$4 sm:$0xff]   ;;  %v6586_v59 = vld [vmem:[#allocation19 + $0x128] ss:$16 sps:$4 sm:$0xff]  }
 0x5e0   :  { %2734 = vmatprep.subr.bf16.mxu1 %v6510_v1  ;;  %2777 = vmatprep.subr.bf16.mxu0 %v6513_v2  ;;  %v6589_v60 = vld [vmem:[#allocation19 + $0x328] ss:$16 sps:$4 sm:$0xff]   ;;  %v6594_v61 = vld [vmem:[#allocation19 + $0x10c] ss:$16 sps:$4 sm:$0xff]  }
 0x5e1   :  { %v6597_v1 = vld [vmem:[#allocation19 + $0x30c] ss:$16 sps:$4 sm:$0xff]   ;;  %v6592_v2 = vld [vmem:[#allocation19 + $0x108] ss:$16 sps:$4 sm:$0xff]  }
 0x5e2   :  { %2735 = vmatpush1.bf16.msra.mxu1 %v6508_v3  ;;  %2778 = vmatpush1.bf16.msra.mxu0 %v6511_v4  ;;  %v6595_v3 = vld [vmem:[#allocation19 + $0x308] ss:$16 sps:$4 sm:$0xff]   ;;  %v6600_v4 = vld [vmem:[#allocation20 + $0xe4] ss:$16 sps:$4 sm:$0xff]  }
 0x5e3   :  { %2736 = vmatprep.subr.bf16.mxu1 %v6516_v5  ;;  %2779 = vmatprep.subr.bf16.mxu0 %v6519_v6  ;;  %v6598_v5 = vld [vmem:[#allocation20 + $0xe0] ss:$16 sps:$4 sm:$0xff]   ;;  %v6603_v6 = vld [vmem:[#allocation20 + $0xc4] ss:$16 sps:$4 sm:$0xff]  }
 0x5e6   :  { %2737 = vmatpush1.bf16.msra.mxu1 %v6514_v7  ;;  %2780 = vmatpush1.bf16.msra.mxu0 %v6517_v8  ;;  %v6601_v7 = vld [vmem:[#allocation20 + $0xc0] ss:$16 sps:$4 sm:$0xff]   ;;  %v6606_v8 = vld [vmem:[#allocation20 + $0xa4] ss:$16 sps:$4 sm:$0xff]  }
 0x5e7   :  { %2738 = vmatprep.subr.bf16.mxu1 %v6522_v9  ;;  %2781 = vmatprep.subr.bf16.mxu0 %v6525_v10  ;;  %v6604_v9 = vld [vmem:[#allocation20 + $0xa0] ss:$16 sps:$4 sm:$0xff]   ;;  %v6609_v10 = vld [vmem:[#allocation20 + $0x84] ss:$16 sps:$4 sm:$0xff]  }
 0x5ea   :  { %2739 = vmatpush1.bf16.msra.mxu1 %v6520_v11  ;;  %2782 = vmatpush1.bf16.msra.mxu0 %v6523_v12  ;;  %v6607_v11 = vld [vmem:[#allocation20 + $0x80] ss:$16 sps:$4 sm:$0xff]   ;;  %v6612_v12 = vld [vmem:[#allocation20 + $0x64] ss:$16 sps:$4 sm:$0xff]  }
 0x5eb   :  { %2740 = vmatprep.subr.bf16.mxu1 %v6528_v13  ;;  %2783 = vmatprep.subr.bf16.mxu0 %v6531_v14  ;;  %v6610_v13 = vld [vmem:[#allocation20 + $0x60] ss:$16 sps:$4 sm:$0xff]  }
 0x5ec   :  { %v6646_v14 = vld [vmem:[#allocation20 + $0x2e0] ss:$16 sps:$4 sm:$0xff]  }
 0x5ee   :  { %2741 = vmatpush1.bf16.msra.mxu1 %v6526_v15  ;;  %2784 = vmatpush1.bf16.msra.mxu0 %v6529_v16  ;;  %v6648_v15 = vld [vmem:[#allocation20 + $0x2e4] ss:$16 sps:$4 sm:$0xff]   ;;  %v6652_v16 = vld [vmem:[#allocation20 + $0x2c0] ss:$16 sps:$4 sm:$0xff]  }
 0x5ef   :  { %2742 = vmatprep.subr.bf16.mxu1 %v6534_v17  ;;  %2785 = vmatprep.subr.bf16.mxu0 %v6537_v18  ;;  %v6654_v17 = vld [vmem:[#allocation20 + $0x2c4] ss:$16 sps:$4 sm:$0xff]  }
 0x5f0   :  { %v6618_v18 = vld [vmem:[#allocation20 + $0x24] ss:$16 sps:$4 sm:$0xff]  }
 0x5f2   :  { %2743 = vmatpush1.bf16.msra.mxu1 %v6532_v19  ;;  %2786 = vmatpush1.bf16.msra.mxu0 %v6535_v20  ;;  %v6616_v19 = vld [vmem:[#allocation20 + $0x20] ss:$16 sps:$4 sm:$0xff]  }
 0x5f3   :  { %2744 = vmatprep.subr.bf16.mxu1 %v6540_v21  ;;  %2787 = vmatprep.subr.bf16.mxu0 %v6543_v22  ;;  %v6658_v20 = vld [vmem:[#allocation20 + $0x2a0] ss:$16 sps:$4 sm:$0xff]   ;;  %v6660_v21 = vld [vmem:[#allocation20 + $0x2a4] ss:$16 sps:$4 sm:$0xff]  }
 0x5f4   :  { %v6621_v22 = vld [vmem:[#allocation20 + $0x4] ss:$16 sps:$4 sm:$0xff]  }
 0x5f6   :  { %2745 = vmatpush1.bf16.msra.mxu1 %v6538_v23  ;;  %2788 = vmatpush1.bf16.msra.mxu0 %v6541_v24  ;;  %v6619_v23 = vld [vmem:[#allocation20] ss:$16 sps:$4 sm:$0xff]  }
 0x5f7   :  { %2746 = vmatprep.subr.bf16.mxu1 %v6546_v27  ;;  %2789 = vmatprep.subr.bf16.mxu0 %v6549_v28  ;;  %v6664_v24 = vld [vmem:[#allocation20 + $0x280] ss:$16 sps:$4 sm:$0xff]   ;;  %v6666_v27 = vld [vmem:[#allocation20 + $0x284] ss:$16 sps:$4 sm:$0xff]  }
 0x5f8   :  { %v6624_v28 = vld [vmem:[#allocation20 + $0x1e4] ss:$16 sps:$4 sm:$0xff]  }
 0x5fa   :  { %2747 = vmatpush1.bf16.msra.mxu1 %v6544_v32  ;;  %2790 = vmatpush1.bf16.msra.mxu0 %v6547_v33  ;;  %v6622_v32 = vld [vmem:[#allocation20 + $0x1e0] ss:$16 sps:$4 sm:$0xff]  }
 0x5fb   :  { %2748 = vmatprep.subr.bf16.mxu1 %v6552_v34  ;;  %2791 = vmatprep.subr.bf16.mxu0 %v6555_v35  ;;  %v6670_v33 = vld [vmem:[#allocation20 + $0x260] ss:$16 sps:$4 sm:$0xff]   ;;  %v6672_v34 = vld [vmem:[#allocation20 + $0x264] ss:$16 sps:$4 sm:$0xff]  }
 0x5fc   :  { %v6627_v35 = vld [vmem:[#allocation20 + $0x1c4] ss:$16 sps:$4 sm:$0xff]  }
 0x5fe   :  { %2749 = vmatpush2.bf16.msra.mxu1 %v6550_v36  ;;  %2792 = vmatpush2.bf16.msra.mxu0 %v6553_v37  ;;  %v6625_v36 = vld [vmem:[#allocation20 + $0x1c0] ss:$16 sps:$4 sm:$0xff]  }
 0x5ff   :  { %2750 = vmatprep.subr.bf16.mxu1 %v6558_v38  ;;  %2793 = vmatprep.subr.bf16.mxu0 %v6561_v39  ;;  %v6676_v37 = vld [vmem:[#allocation20 + $0x240] ss:$16 sps:$4 sm:$0xff]   ;;  %v6678_v38 = vld [vmem:[#allocation20 + $0x244] ss:$16 sps:$4 sm:$0xff]  }
 0x600   :  { %v6630_v39 = vld [vmem:[#allocation20 + $0x1a4] ss:$16 sps:$4 sm:$0xff]  }
 0x602   :  { %2751 = vmatpush2.bf16.msra.mxu1 %v6556_v40  ;;  %2794 = vmatpush2.bf16.msra.mxu0 %v6559_v41  ;;  %v6628_v40 = vld [vmem:[#allocation20 + $0x1a0] ss:$16 sps:$4 sm:$0xff]  }
 0x603   :  { %2752 = vmatprep.subr.bf16.mxu1 %v6564_v42  ;;  %2795 = vmatprep.subr.bf16.mxu0 %v6567_v43  ;;  %v6682_v41 = vld [vmem:[#allocation20 + $0x220] ss:$16 sps:$4 sm:$0xff]   ;;  %v6684_v42 = vld [vmem:[#allocation20 + $0x224] ss:$16 sps:$4 sm:$0xff]  }
 0x604   :  { %v6633_v43 = vld [vmem:[#allocation20 + $0x184] ss:$16 sps:$4 sm:$0xff]  }
 0x606   :  { %2753 = vmatpush2.bf16.msra.mxu1 %v6562_v29  ;;  %2796 = vmatpush2.bf16.msra.mxu0 %v6565_v44  ;;  %v6631_v29 = vld [vmem:[#allocation20 + $0x180] ss:$16 sps:$4 sm:$0xff]  }
 0x607   :  { %2754 = vmatprep.subr.bf16.mxu1 %v6570_v45  ;;  %2797 = vmatprep.subr.bf16.mxu0 %v6573_v46  ;;  %v6688_v44 = vld [vmem:[#allocation20 + $0x200] ss:$16 sps:$4 sm:$0xff]   ;;  %v6690_v45 = vld [vmem:[#allocation20 + $0x204] ss:$16 sps:$4 sm:$0xff]  }
 0x608   :  { %v6636_v46 = vld [vmem:[#allocation20 + $0x164] ss:$16 sps:$4 sm:$0xff]  }
 0x60a   :  { %2755 = vmatpush2.bf16.msra.mxu1 %v6568_v47  ;;  %2798 = vmatpush2.bf16.msra.mxu0 %v6571_v48  ;;  %v6634_v47 = vld [vmem:[#allocation20 + $0x160] ss:$16 sps:$4 sm:$0xff]  }
 0x60b   :  { %2756 = vmatprep.subr.bf16.mxu1 %v6576_v49  ;;  %2799 = vmatprep.subr.bf16.mxu0 %v6579_v50  ;;  %v6694_v48 = vld [vmem:[#allocation20 + $0x3e0] ss:$16 sps:$4 sm:$0xff]   ;;  %v6696_v49 = vld [vmem:[#allocation20 + $0x3e4] ss:$16 sps:$4 sm:$0xff]  }
 0x60c   :  { %v6639_v50 = vld [vmem:[#allocation20 + $0x144] ss:$16 sps:$4 sm:$0xff]  }
 0x60e   :  { %2757 = vmatpush2.bf16.msra.mxu1 %v6574_v51  ;;  %2800 = vmatpush2.bf16.msra.mxu0 %v6577_v52  ;;  %v6637_v51 = vld [vmem:[#allocation20 + $0x140] ss:$16 sps:$4 sm:$0xff]  }
 0x60f   :  { %2758 = vmatprep.subr.bf16.mxu1 %v6582_v53  ;;  %2801 = vmatprep.subr.bf16.mxu0 %v6585_v54  ;;  %v6700_v52 = vld [vmem:[#allocation20 + $0x3c0] ss:$16 sps:$4 sm:$0xff]   ;;  %v6702_v53 = vld [vmem:[#allocation20 + $0x3c4] ss:$16 sps:$4 sm:$0xff]  }
 0x610   :  { %v6642_v54 = vld [vmem:[#allocation20 + $0x124] ss:$16 sps:$4 sm:$0xff]  }
 0x612   :  { %2759 = vmatpush2.bf16.msra.mxu1 %v6580_v55  ;;  %2802 = vmatpush2.bf16.msra.mxu0 %v6583_v56  ;;  %v6640_v55 = vld [vmem:[#allocation20 + $0x120] ss:$16 sps:$4 sm:$0xff]  }
 0x613   :  { %2760 = vmatprep.subr.bf16.mxu1 %v6588_v57  ;;  %2803 = vmatprep.subr.bf16.mxu0 %v6591_v58  ;;  %v6706_v56 = vld [vmem:[#allocation20 + $0x3a0] ss:$16 sps:$4 sm:$0xff]   ;;  %v6708_v57 = vld [vmem:[#allocation20 + $0x3a4] ss:$16 sps:$4 sm:$0xff]  }
 0x614   :  { %v6645_v58 = vld [vmem:[#allocation20 + $0x104] ss:$16 sps:$4 sm:$0xff]  }
 0x616   :  { %2761 = vmatpush2.bf16.msra.mxu1 %v6586_v59  ;;  %2804 = vmatpush2.bf16.msra.mxu0 %v6589_v60  ;;  %v6643_v59 = vld [vmem:[#allocation20 + $0x100] ss:$16 sps:$4 sm:$0xff]  }
 0x617   :  { %2762 = vmatprep.subr.bf16.mxu1 %v6594_v61  ;;  %2805 = vmatprep.subr.bf16.mxu0 %v6597_v1  ;;  %v6712_v60 = vld [vmem:[#allocation20 + $0x380] ss:$16 sps:$4 sm:$0xff]   ;;  %v6714_v61 = vld [vmem:[#allocation20 + $0x384] ss:$16 sps:$4 sm:$0xff]   ;;  %v6651_v1 = vld [vmem:[#allocation20 + $0xec] ss:$16 sps:$4 sm:$0xff]  }
 0x61a   :  { %2763 = vmatpush2.bf16.msra.mxu1 %v6592_v2  ;;  %2806 = vmatpush2.bf16.msra.mxu0 %v6595_v3  ;;  %v6718_v2 = vld [vmem:[#allocation20 + $0x360] ss:$16 sps:$4 sm:$0xff]   ;;  %v6720_v3 = vld [vmem:[#allocation20 + $0x364] ss:$16 sps:$4 sm:$0xff]  }
 0x61b   :  { %3620 = vmatprep.subr.bf16.mxu1 %v6600_v4  ;;  %3663 = vmatprep.subr.bf16.mxu0 %v6648_v15  ;;  %v6726_v4 = vld [vmem:[#allocation20 + $0x344] ss:$16 sps:$4 sm:$0xff]  }
 0x61d   :  { %2765 = vmatmul.mubr.bf16.vlgmr.msra.gmra.mxu1 %v7764_v62  ;;  %2808 = vmatmul.mubr.bf16.vlgmr.msra.gmra.mxu0 %v7766_v63  ;;  %v6615_v62 = vld [vmem:[#allocation20 + $0x44] ss:$16 sps:$4 sm:$0xff]   ;;  %v6613_v63 = vld [vmem:[#allocation20 + $0x40] ss:$16 sps:$4 sm:$0xff]  }
 0x61e   :  { %3621 = vmatpush1.bf16.msra.mxu1 %v6598_v5  ;;  %3664 = vmatpush1.bf16.msra.mxu0 %v6646_v14  ;;  %v6724_v5 = vld [vmem:[#allocation20 + $0x340] ss:$16 sps:$4 sm:$0xff]  }
 0x61f   :  { %3622 = vmatprep.subr.bf16.mxu1 %v6603_v6  ;;  %3665 = vmatprep.subr.bf16.mxu0 %v6654_v17  ;;  %v6732_v6 = vld [vmem:[#allocation20 + $0x324] ss:$16 sps:$4 sm:$0xff]  }
 0x622   :  { %3623 = vmatpush1.bf16.msra.mxu1 %v6601_v7  ;;  %3666 = vmatpush1.bf16.msra.mxu0 %v6652_v16  ;;  %v6730_v7 = vld [vmem:[#allocation20 + $0x320] ss:$16 sps:$4 sm:$0xff]  }
 0x623   :  { %3624 = vmatprep.subr.bf16.mxu1 %v6606_v8  ;;  %3667 = vmatprep.subr.bf16.mxu0 %v6660_v21  ;;  %v6738_v8 = vld [vmem:[#allocation20 + $0x304] ss:$16 sps:$4 sm:$0xff]  }
 0x626   :  { %3625 = vmatpush1.bf16.msra.mxu1 %v6604_v9  ;;  %3668 = vmatpush1.bf16.msra.mxu0 %v6658_v20  ;;  %v6736_v9 = vld [vmem:[#allocation20 + $0x300] ss:$16 sps:$4 sm:$0xff]  }
 0x627   :  { %3626 = vmatprep.subr.bf16.mxu1 %v6609_v10  ;;  %3669 = vmatprep.subr.bf16.mxu0 %v6666_v27  ;;  %v6744_v10 = vld [vmem:[#allocation20 + $0x2ec] ss:$16 sps:$4 sm:$0xff]  }
 0x62a   :  { %3627 = vmatpush1.bf16.msra.mxu1 %v6607_v11  ;;  %3670 = vmatpush1.bf16.msra.mxu0 %v6664_v24  ;;  %v7773_v11 = vld [vmem:[%s7843_s9] sm:$0xf] }
 0x62b   :  { %3628 = vmatprep.subr.bf16.mxu1 %v6612_v12  ;;  %3671 = vmatprep.subr.bf16.mxu0 %v6672_v34  ;;  %v1993_v12 = vrot.slane %v7773_v11, %v7738_v30 }
 0x62e   :  { %3629 = vmatpush1.bf16.msra.mxu1 %v6610_v13  ;;  %3672 = vmatpush1.bf16.msra.mxu0 %v6670_v33  ;;  %v1989_v13 = vrot.slane %v7773_v11, %v7741_v31 }
 0x62f   :  { %3630 = vmatprep.subr.bf16.mxu1 %v6615_v62  ;;  %3673 = vmatprep.subr.bf16.mxu0 %v6678_v38  ;;  %v6649_v38 = vld [vmem:[#allocation20 + $0xe8] ss:$16 sps:$4 sm:$0xff]  }
 0x632   :  { %3631 = vmatpush1.bf16.msra.mxu1 %v6613_v63  ;;  %3674 = vmatpush1.bf16.msra.mxu0 %v6676_v37 }
 0x633   :  { %3632 = vmatprep.subr.bf16.mxu1 %v6618_v18  ;;  %3675 = vmatprep.subr.bf16.mxu0 %v6684_v42  ;;  %v6663_v42 = vld [vmem:[#allocation20 + $0xac] ss:$16 sps:$4 sm:$0xff]  }
 0x636   :  { %3633 = vmatpush1.bf16.msra.mxu1 %v6616_v19  ;;  %3676 = vmatpush1.bf16.msra.mxu0 %v6682_v41  ;;  %v6655_v41 = vld [vmem:[#allocation20 + $0xc8] ss:$16 sps:$4 sm:$0xff]  }
 0x637   :  { %3634 = vmatprep.subr.bf16.mxu1 %v6621_v22  ;;  %3677 = vmatprep.subr.bf16.mxu0 %v6690_v45  ;;  %v6675_v45 = vld [vmem:[#allocation20 + $0x6c] ss:$16 sps:$4 sm:$0xff]  }
 0x63a   :  { %3635 = vmatpush1.bf16.msra.mxu1 %v6619_v23  ;;  %3678 = vmatpush1.bf16.msra.mxu0 %v6688_v44  ;;  %v6667_v44 = vld [vmem:[#allocation20 + $0x88] ss:$16 sps:$4 sm:$0xff]  }
 0x63b   :  { %3636 = vmatprep.subr.bf16.mxu1 %v6624_v28  ;;  %3679 = vmatprep.subr.bf16.mxu0 %v6696_v49  ;;  %v6687_v49 = vld [vmem:[#allocation20 + $0x2c] ss:$16 sps:$4 sm:$0xff]  }
 0x63e   :  { %3637 = vmatpush2.bf16.msra.mxu1 %v6622_v32  ;;  %3680 = vmatpush2.bf16.msra.mxu0 %v6694_v48  ;;  %v6679_v48 = vld [vmem:[#allocation20 + $0x48] ss:$16 sps:$4 sm:$0xff]  }
 0x63f   :  { %3638 = vmatprep.subr.bf16.mxu1 %v6627_v35  ;;  %3681 = vmatprep.subr.bf16.mxu0 %v6702_v53  ;;  %v6699_v53 = vld [vmem:[#allocation20 + $0x1ec] ss:$16 sps:$4 sm:$0xff]  }
 0x642   :  { %3639 = vmatpush2.bf16.msra.mxu1 %v6625_v36  ;;  %3682 = vmatpush2.bf16.msra.mxu0 %v6700_v52  ;;  %v6691_v52 = vld [vmem:[#allocation20 + $0x8] ss:$16 sps:$4 sm:$0xff]  }
 0x643   :  { %3640 = vmatprep.subr.bf16.mxu1 %v6630_v39  ;;  %3683 = vmatprep.subr.bf16.mxu0 %v6708_v57  ;;  %v6711_v57 = vld [vmem:[#allocation20 + $0x1ac] ss:$16 sps:$4 sm:$0xff]  }
 0x646   :  { %3641 = vmatpush2.bf16.msra.mxu1 %v6628_v40  ;;  %3684 = vmatpush2.bf16.msra.mxu0 %v6706_v56  ;;  %v6657_v40 = vld [vmem:[#allocation20 + $0xcc] ss:$16 sps:$4 sm:$0xff]   ;;  %v6703_v56 = vld [vmem:[#allocation20 + $0x1c8] ss:$16 sps:$4 sm:$0xff]  }
 0x647   :  { %3642 = vmatprep.subr.bf16.mxu1 %v6633_v43  ;;  %3685 = vmatprep.subr.bf16.mxu0 %v6714_v61  ;;  %v6661_v43 = vld [vmem:[#allocation20 + $0xa8] ss:$16 sps:$4 sm:$0xff]   ;;  %v6723_v61 = vld [vmem:[#allocation20 + $0x16c] ss:$16 sps:$4 sm:$0xff]  }
 0x64a   :  { %3643 = vmatpush2.bf16.msra.mxu1 %v6631_v29  ;;  %3686 = vmatpush2.bf16.msra.mxu0 %v6712_v60  ;;  %v6669_v29 = vld [vmem:[#allocation20 + $0x8c] ss:$16 sps:$4 sm:$0xff]   ;;  %v6715_v60 = vld [vmem:[#allocation20 + $0x188] ss:$16 sps:$4 sm:$0xff]  }
 0x64b   :  { %3644 = vmatprep.subr.bf16.mxu1 %v6636_v46  ;;  %3687 = vmatprep.subr.bf16.mxu0 %v6720_v3  ;;  %v6673_v46 = vld [vmem:[#allocation20 + $0x68] ss:$16 sps:$4 sm:$0xff]   ;;  %v2001_v3 = vrot.slane %v7773_v11, %v7754_v25 }
 0x64e   :  { %3645 = vmatpush2.bf16.msra.mxu1 %v6634_v47  ;;  %3688 = vmatpush2.bf16.msra.mxu0 %v6718_v2  ;;  %v6681_v47 = vld [vmem:[#allocation20 + $0x4c] ss:$16 sps:$4 sm:$0xff]  }
 0x64f   :  { %3646 = vmatprep.subr.bf16.mxu1 %v6639_v50  ;;  %3689 = vmatprep.subr.bf16.mxu0 %v6726_v4  ;;  %v6685_v50 = vld [vmem:[#allocation20 + $0x28] ss:$16 sps:$4 sm:$0xff]   ;;  %v6729_v2 = vld [vmem:[#allocation20 + $0x14c] ss:$16 sps:$4 sm:$0xff]   ;;  %v1997_v4 = vrot.slane %v7773_v11, %v7757_v26 }
 0x652   :  { %3647 = vmatpush2.bf16.msra.mxu1 %v6637_v51  ;;  %3690 = vmatpush2.bf16.msra.mxu0 %v6724_v5  ;;  %v6693_v51 = vld [vmem:[#allocation20 + $0xc] ss:$16 sps:$4 sm:$0xff]  }
 0x653   :  { %3648 = vmatprep.subr.bf16.mxu1 %v6642_v54  ;;  %3691 = vmatprep.subr.bf16.mxu0 %v6732_v6  ;;  %v6697_v54 = vld [vmem:[#allocation20 + $0x1e8] ss:$16 sps:$4 sm:$0xff]  }
 0x656   :  { %3649 = vmatpush2.bf16.msra.mxu1 %v6640_v55  ;;  %3692 = vmatpush2.bf16.msra.mxu0 %v6730_v7  ;;  %v6705_v55 = vld [vmem:[#allocation20 + $0x1cc] ss:$16 sps:$4 sm:$0xff]   ;;  %v6727_v7 = vld [vmem:[#allocation20 + $0x148] ss:$16 sps:$4 sm:$0xff]  }
 0x657   :  { %3650 = vmatprep.subr.bf16.mxu1 %v6645_v58  ;;  %3693 = vmatprep.subr.bf16.mxu0 %v6738_v8  ;;  %v6709_v58 = vld [vmem:[#allocation20 + $0x1a8] ss:$16 sps:$4 sm:$0xff]  }
 0x65a   :  { %3651 = vmatpush2.bf16.msra.mxu1 %v6643_v59  ;;  %3694 = vmatpush2.bf16.msra.mxu0 %v6736_v9  ;;  %v6717_v59 = vld [vmem:[#allocation20 + $0x18c] ss:$16 sps:$4 sm:$0xff]  }
 0x65b   :  { %3706 = vmatprep.subr.bf16.mxu1 %v6651_v1  ;;  %3749 = vmatprep.subr.bf16.mxu0 %v6744_v10  ;;  %v6721_v1 = vld [vmem:[#allocation20 + $0x168] ss:$16 sps:$4 sm:$0xff]   ;;  %v6735_v10 = vld [vmem:[#allocation20 + $0x12c] ss:$16 sps:$4 sm:$0xff]  }
 0x69d   :  { %v2680_v14 = vpop.f32.mrf.mxu1  ;;  %v2723_v15 = vpop.f32.mrf.mxu0 }
 0x69e   :  { %v2681_v17 = vadd.f32 %v2680_v14, %v1989_v13 }
 0x69f   :  { %v2682_v62 = vpop.f32.mrf.mxu1  ;;  %v2725_v63 = vpop.f32.mrf.mxu0 }
 0x6a0   :  { %v2683_v16 = vadd.f32 %v2682_v62, %v1993_v12  ;;  %v2724_v27 = vadd.f32 %v2723_v15, %v2681_v17  ;;  %v6741_v17 = vld [vmem:[#allocation20 + $0x10c] ss:$16 sps:$4 sm:$0xff]  }
 0x6a1   :  { %v2684_v18 = vpop.f32.mrf.mxu1  ;;  %v2727_v19 = vpop.f32.mrf.mxu0 }
 0x6a2   :  { %v2685_v20 = vadd.f32 %v2684_v18, %v1989_v13  ;;  %v2726_v22 = vadd.f32 %v2725_v63, %v2683_v16  ;;  %v2818_v36 = vmax.f32 %v2724_v27, 0.0  ;;  %v6733_v63 = vld [vmem:[#allocation20 + $0x128] ss:$16 sps:$4 sm:$0xff]  }
 0x6a3   :  { %v2686_v21 = vpop.f32.mrf.mxu1  ;;  %v2729_v28 = vpop.f32.mrf.mxu0 }
 0x6a4   :  { %v2728_v23 = vadd.f32 %v2727_v19, %v2685_v20  ;;  %v2687_v24 = vadd.f32 %v2686_v21, %v1993_v12  ;;  %v2819_v34 = vmax.f32 %v2726_v22, 0.0 }
 0x6a6   :  { %v2730_v32 = vadd.f32 %v2729_v28, %v2687_v24  ;;  %v2822_v33 = vmax.f32 %v2728_v23, 0.0  ;;  %v6739_v23 = vld [vmem:[#allocation20 + $0x108] ss:$16 sps:$4 sm:$0xff]  }
 0x6a8   :  { %v2823_v35 = vmax.f32 %v2730_v32, 0.0  ;;  %v7779_v39 = vpack.c.bf16 %v2822_v33, %v2818_v36  ;;  %v6747_v36 = vld [vmem:[#allocation20 + $0x2cc] ss:$16 sps:$4 sm:$0xff]  }
 0x6aa   :  { %v2956_v37 = vpack.c.bf16 %v2823_v35, %v2819_v34  ;;  %v6742_v34 = vld [vmem:[#allocation20 + $0x2e8] ss:$16 sps:$4 sm:$0xff]  }
 0x6ac   :  { %3652 = vmatprep.mubr.bf16.mxu1 %v2956_v37 }
 0x6ad   :  { %3653 = vmatmul.mubr.bf16.vlgmr.msra.gmra.mxu1 %v7779_v39 }
 0x6ae   :  { %3707 = vmatpush1.bf16.msra.mxu1 %v6649_v38  ;;  %3738 = vmatprep.mubr.bf16.mxu1 %v2956_v37  ;;  %v6745_v37 = vld [vmem:[#allocation20 + $0x2c8] ss:$16 sps:$4 sm:$0xff]   ;;  %v6750_v38 = vld [vmem:[#allocation20 + $0x2ac] ss:$16 sps:$4 sm:$0xff]  }
 0x6af   :  { %3708 = vmatprep.subr.bf16.mxu1 %v6657_v40  ;;  %v6748_v40 = vld [vmem:[#allocation20 + $0x2a8] ss:$16 sps:$4 sm:$0xff]  }
 0x6b2   :  { %3709 = vmatpush1.bf16.msra.mxu1 %v6655_v41  ;;  %v6753_v41 = vld [vmem:[#allocation20 + $0x28c] ss:$16 sps:$4 sm:$0xff]  }
 0x6b3   :  { %3710 = vmatprep.subr.bf16.mxu1 %v6663_v42  ;;  %v6790_v42 = vld [vmem:[#allocation22 + $0x70] ss:$8 sps:$4 sm:$0xff]  }
 0x6b6   :  { %3711 = vmatpush1.bf16.msra.mxu1 %v6661_v43  ;;  %v6792_v43 = vld [vmem:[#allocation22 + $0x74] ss:$8 sps:$4 sm:$0xff]  }
 0x6b7   :  { %3712 = vmatprep.subr.bf16.mxu1 %v6669_v29  ;;  %v6795_v29 = vld [vmem:[#allocation22 + $0x64] ss:$8 sps:$4 sm:$0xff]  }
 0x6ba   :  { %3713 = vmatpush1.bf16.msra.mxu1 %v6667_v44  ;;  %v6751_v44 = vld [vmem:[#allocation20 + $0x288] ss:$16 sps:$4 sm:$0xff]  }
 0x6bb   :  { %3714 = vmatprep.subr.bf16.mxu1 %v6675_v45  ;;  %v6756_v45 = vld [vmem:[#allocation20 + $0x26c] ss:$16 sps:$4 sm:$0xff]  }
 0x6be   :  { %3715 = vmatpush1.bf16.msra.mxu1 %v6673_v46  ;;  %v6793_v46 = vld [vmem:[#allocation22 + $0x60] ss:$8 sps:$4 sm:$0xff]  }
 0x6bf   :  { %3716 = vmatprep.subr.bf16.mxu1 %v6681_v47  ;;  %v6754_v47 = vld [vmem:[#allocation20 + $0x268] ss:$16 sps:$4 sm:$0xff]  }
 0x6c2   :  { %3717 = vmatpush1.bf16.msra.mxu1 %v6679_v48  ;;  %v6759_v48 = vld [vmem:[#allocation20 + $0x24c] ss:$16 sps:$4 sm:$0xff]  }
 0x6c3   :  { %3718 = vmatprep.subr.bf16.mxu1 %v6687_v49  ;;  %v6796_v49 = vld [vmem:[#allocation22 + $0x50] ss:$8 sps:$4 sm:$0xff]  }
 0x6c6   :  { %3719 = vmatpush1.bf16.msra.mxu1 %v6685_v50  ;;  %v6801_v50 = vld [vmem:[#allocation22 + $0x44] ss:$8 sps:$4 sm:$0xff]  }
 0x6c7   :  { %3720 = vmatprep.subr.bf16.mxu1 %v6693_v51  ;;  %v6757_v51 = vld [vmem:[#allocation20 + $0x248] ss:$16 sps:$4 sm:$0xff]  }
 0x6ca   :  { %3721 = vmatpush1.bf16.msra.mxu1 %v6691_v52  ;;  %v6762_v52 = vld [vmem:[#allocation20 + $0x22c] ss:$16 sps:$4 sm:$0xff]  }
 0x6cb   :  { %3722 = vmatprep.subr.bf16.mxu1 %v6699_v53  ;;  %v6799_v53 = vld [vmem:[#allocation22 + $0x40] ss:$8 sps:$4 sm:$0xff]  }
 0x6ce   :  { %3723 = vmatpush2.bf16.msra.mxu1 %v6697_v54  ;;  %v6804_v54 = vld [vmem:[#allocation22 + $0x34] ss:$8 sps:$4 sm:$0xff]  }
 0x6cf   :  { %3724 = vmatprep.subr.bf16.mxu1 %v6705_v55  ;;  %v6760_v55 = vld [vmem:[#allocation20 + $0x228] ss:$16 sps:$4 sm:$0xff]  }
 0x6d2   :  { %3725 = vmatpush2.bf16.msra.mxu1 %v6703_v56  ;;  %v6765_v56 = vld [vmem:[#allocation20 + $0x20c] ss:$16 sps:$4 sm:$0xff]  }
 0x6d3   :  { %3726 = vmatprep.subr.bf16.mxu1 %v6711_v57  ;;  %v6802_v57 = vld [vmem:[#allocation22 + $0x30] ss:$8 sps:$4 sm:$0xff]  }
 0x6d6   :  { %3727 = vmatpush2.bf16.msra.mxu1 %v6709_v58  ;;  %v6807_v58 = vld [vmem:[#allocation22 + $0x24] ss:$8 sps:$4 sm:$0xff]  }
 0x6d7   :  { %3728 = vmatprep.subr.bf16.mxu1 %v6717_v59  ;;  %v6763_v59 = vld [vmem:[#allocation20 + $0x208] ss:$16 sps:$4 sm:$0xff]  }
 0x6da   :  { %3729 = vmatpush2.bf16.msra.mxu1 %v6715_v60  ;;  %v6768_v60 = vld [vmem:[#allocation20 + $0x3ec] ss:$16 sps:$4 sm:$0xff]  }
 0x6db   :  { %3730 = vmatprep.subr.bf16.mxu1 %v6723_v61  ;;  %v6805_v61 = vld [vmem:[#allocation22 + $0x20] ss:$8 sps:$4 sm:$0xff]  }
 0x6dd   :  { %v2766_v5 = vpop.f32.mrf.mxu1  ;;  %v2809_v6 = vpop.f32.mrf.mxu0 }
 0x6de   :  { %3731 = vmatpush2.bf16.msra.mxu1 %v6721_v1  ;;  %v2767_v13 = vadd.f32 %v2766_v5, %v1997_v4  ;;  %v6810_v1 = vld [vmem:[#allocation22 + $0x14] ss:$8 sps:$4 sm:$0xff]   ;;  %v6813_v5 = vld [vmem:[#allocation22 + $0x4] ss:$8 sps:$4 sm:$0xff]  }
 0x6df   :  { %v2768_v8 = vpop.f32.mrf.mxu1  ;;  %v2811_v9 = vpop.f32.mrf.mxu0  ;;  %3732 = vmatprep.subr.bf16.mxu1 %v6729_v2  ;;  %v6766_v2 = vld [vmem:[#allocation20 + $0x3e8] ss:$16 sps:$4 sm:$0xff]  }
 0x6e0   :  { %v2769_v12 = vadd.f32 %v2768_v8, %v2001_v3  ;;  %v2810_v20 = vadd.f32 %v2809_v6, %v2767_v13  ;;  %v6769_v6 = vld [vmem:[#allocation20 + $0x3c8] ss:$16 sps:$4 sm:$0xff]  }
 0x6e1   :  { %v2770_v14 = vpop.f32.mrf.mxu1  ;;  %v2813_v15 = vpop.f32.mrf.mxu0  ;;  %v6811_v8 = vld [vmem:[#allocation22] ss:$8 sps:$4 sm:$0xff]   ;;  %v6814_v13 = vld [vmem:[#allocation22 + $0xf0] ss:$8 sps:$4 sm:$0xff]  }
 0x6e2   :  { %v2771_v62 = vadd.f32 %v2770_v14, %v1997_v4  ;;  %3733 = vmatpush2.bf16.msra.mxu1 %v6727_v7  ;;  %v2812_v18 = vadd.f32 %v2811_v9, %v2769_v12  ;;  %v2820_v32 = vmax.f32 %v2810_v20, 0.0  ;;  %v6808_v4 = vld [vmem:[#allocation22 + $0x10] ss:$8 sps:$4 sm:$0xff]   ;;  %v6774_v7 = vld [vmem:[#allocation20 + $0x3ac] ss:$16 sps:$4 sm:$0xff]  }
 0x6e3   :  { %v2772_v16 = vpop.f32.mrf.mxu1  ;;  %3734 = vmatprep.subr.bf16.mxu1 %v6735_v10  ;;  %v2815_v21 = vpop.f32.mrf.mxu0  ;;  %v6816_v9 = vld [vmem:[#allocation22 + $0xf4] ss:$8 sps:$4 sm:$0xff]   ;;  %v6772_v10 = vld [vmem:[#allocation20 + $0x3a8] ss:$16 sps:$4 sm:$0xff]   ;;  %v6819_v14 = vld [vmem:[#allocation22 + $0xe4] ss:$8 sps:$4 sm:$0xff]  }
 0x6e4   :  { %v2814_v11 = vadd.f32 %v2813_v15, %v2771_v62  ;;  %v2773_v19 = vadd.f32 %v2772_v16, %v2001_v3  ;;  %v2821_v27 = vmax.f32 %v2812_v18, 0.0  ;;  %v6771_v3 = vld [vmem:[#allocation20 + $0x3cc] ss:$16 sps:$4 sm:$0xff]   ;;  %v6775_v15 = vld [vmem:[#allocation20 + $0x388] ss:$16 sps:$4 sm:$0xff]  }
 0x6e5   :  { %v6777_v12 = vld [vmem:[#allocation20 + $0x38c] ss:$16 sps:$4 sm:$0xff]   ;;  %v6781_v20 = vld [vmem:[#allocation20 + $0x348] ss:$16 sps:$4 sm:$0xff]  }
 0x6e6   :  { %v2816_v22 = vadd.f32 %v2815_v21, %v2773_v19  ;;  %3735 = vmatpush2.bf16.msra.mxu1 %v6733_v63  ;;  %v2824_v24 = vmax.f32 %v2814_v11, 0.0  ;;  %v6780_v62 = vld [vmem:[#allocation20 + $0x36c] ss:$16 sps:$4 sm:$0xff]   ;;  %v6817_v63 = vld [vmem:[#allocation22 + $0xe0] ss:$8 sps:$4 sm:$0xff]  }
 0x6e7   :  { %3736 = vmatprep.subr.bf16.mxu1 %v6741_v17  ;;  %v6822_v16 = vld [vmem:[#allocation22 + $0xd4] ss:$8 sps:$4 sm:$0xff]   ;;  %v6778_v17 = vld [vmem:[#allocation20 + $0x368] ss:$16 sps:$4 sm:$0xff]   ;;  %v6825_v19 = vld [vmem:[#allocation22 + $0xc4] ss:$8 sps:$4 sm:$0xff]  }
 0x6e8   :  { %v2825_v28 = vmax.f32 %v2816_v22, 0.0  ;;  %v7786_v35 = vpack.c.bf16 %v2824_v24, %v2820_v32  ;;  %v6783_v18 = vld [vmem:[#allocation20 + $0x34c] ss:$16 sps:$4 sm:$0xff]   ;;  %v6820_v11 = vld [vmem:[#allocation22 + $0xd0] ss:$8 sps:$4 sm:$0xff]  }
 0x6e9   :  { %v6786_v21 = vld [vmem:[#allocation20 + $0x32c] ss:$16 sps:$4 sm:$0xff]   ;;  %v6823_v22 = vld [vmem:[#allocation22 + $0xc0] ss:$8 sps:$4 sm:$0xff]  }
 0x6ea   :  { %v2958_v33 = vpack.c.bf16 %v2825_v28, %v2821_v27  ;;  %3737 = vmatpush2.bf16.msra.mxu1 %v6739_v23  ;;  %v6828_v23 = vld [vmem:[#allocation22 + $0xb4] ss:$8 sps:$4 sm:$0xff]   ;;  %v6784_v24 = vld [vmem:[#allocation20 + $0x328] ss:$16 sps:$4 sm:$0xff]  }
 0x6eb   :  { %4200 = vmatprep.subr.bf16.mxu1 %v6792_v43  ;;  %v6789_v27 = vld [vmem:[#allocation20 + $0x30c] ss:$16 sps:$4 sm:$0xff]   ;;  %v6826_v28 = vld [vmem:[#allocation22 + $0xb0] ss:$8 sps:$4 sm:$0xff]  }
 0x6ec   :  { %3695 = vmatprep.mubr.bf16.mxu0 %v2958_v33  ;;  %v6787_v32 = vld [vmem:[#allocation20 + $0x308] ss:$16 sps:$4 sm:$0xff]   ;;  %v6843_v43 = vld [vmem:[#allocation22 + $0x164] ss:$8 sps:$4 sm:$0xff]  }
 0x6ed   :  { %3696 = vmatmul.mubr.bf16.vlgmr.msra.gmra.mxu0 %v7786_v35  ;;  %3739 = vmatmul.mubr.bf16.vlgmr.msra.gmra.mxu1 %v7779_v39  ;;  %v6798_v39 = vld [vmem:[#allocation22 + $0x54] ss:$8 sps:$4 sm:$0xff]  }
 0x6ee   :  { %3750 = vmatpush1.bf16.msra.mxu0 %v6742_v34  ;;  %3781 = vmatprep.mubr.bf16.mxu0 %v2958_v33  ;;  %v6831_v33 = vld [vmem:[#allocation22 + $0xa4] ss:$8 sps:$4 sm:$0xff]   ;;  %v6829_v34 = vld [vmem:[#allocation22 + $0xa0] ss:$8 sps:$4 sm:$0xff]  }
 0x6ef   :  { %3751 = vmatprep.subr.bf16.mxu0 %v6747_v36  ;;  %4201 = vmatpush1.bf16.msra.mxu1 %v6790_v42  ;;  %v6834_v36 = vld [vmem:[#allocation22 + $0x94] ss:$8 sps:$4 sm:$0xff]   ;;  %v6838_v42 = vld [vmem:[#allocation22 + $0x170] ss:$8 sps:$4 sm:$0xff]  }
 0x6f0   :  { %4202 = vmatprep.subr.bf16.mxu1 %v6795_v29  ;;  %v6841_v29 = vld [vmem:[#allocation22 + $0x160] ss:$8 sps:$4 sm:$0xff]  }
 0x6f2   :  { %3752 = vmatpush1.bf16.msra.mxu0 %v6745_v37  ;;  %v6832_v37 = vld [vmem:[#allocation22 + $0x90] ss:$8 sps:$4 sm:$0xff]  }
 0x6f3   :  { %3753 = vmatprep.subr.bf16.mxu0 %v6750_v38  ;;  %4203 = vmatpush1.bf16.msra.mxu1 %v6793_v46  ;;  %v6837_v38 = vld [vmem:[#allocation22 + $0x84] ss:$8 sps:$4 sm:$0xff]   ;;  %v6847_v46 = vld [vmem:[#allocation22 + $0x140] ss:$8 sps:$4 sm:$0xff]  }
 0x6f4   :  { %4204 = vmatprep.subr.bf16.mxu1 %v6798_v39  ;;  %v6852_v39 = vld [vmem:[#allocation22 + $0x134] ss:$8 sps:$4 sm:$0xff]  }
 0x6f6   :  { %3754 = vmatpush1.bf16.msra.mxu0 %v6748_v40  ;;  %v6835_v40 = vld [vmem:[#allocation22 + $0x80] ss:$8 sps:$4 sm:$0xff]  }
 0x6f7   :  { %3755 = vmatprep.subr.bf16.mxu0 %v6753_v41  ;;  %4205 = vmatpush1.bf16.msra.mxu1 %v6796_v49  ;;  %v6840_v41 = vld [vmem:[#allocation22 + $0x174] ss:$8 sps:$4 sm:$0xff]   ;;  %v6853_v49 = vld [vmem:[#allocation22 + $0x120] ss:$8 sps:$4 sm:$0xff]  }
 0x6f8   :  { %4206 = vmatprep.subr.bf16.mxu1 %v6801_v50  ;;  %v6858_v50 = vld [vmem:[#allocation22 + $0x114] ss:$8 sps:$4 sm:$0xff]  }
 0x6fa   :  { %3756 = vmatpush1.bf16.msra.mxu0 %v6751_v44  ;;  %v6844_v44 = vld [vmem:[#allocation22 + $0x150] ss:$8 sps:$4 sm:$0xff]  }
 0x6fb   :  { %3757 = vmatprep.subr.bf16.mxu0 %v6756_v45  ;;  %4207 = vmatpush1.bf16.msra.mxu1 %v6799_v53  ;;  %v6849_v45 = vld [vmem:[#allocation22 + $0x144] ss:$8 sps:$4 sm:$0xff]   ;;  %v6859_v53 = vld [vmem:[#allocation22 + $0x100] ss:$8 sps:$4 sm:$0xff]  }
 0x6fc   :  { %4208 = vmatprep.subr.bf16.mxu1 %v6804_v54  ;;  %v6864_v54 = vld [vmem:[#allocation22 + $0x1f4] ss:$8 sps:$4 sm:$0xff]  }
 0x6fe   :  { %3758 = vmatpush1.bf16.msra.mxu0 %v6754_v47  ;;  %v6850_v47 = vld [vmem:[#allocation22 + $0x130] ss:$8 sps:$4 sm:$0xff]  }
 0x6ff   :  { %3759 = vmatprep.subr.bf16.mxu0 %v6759_v48  ;;  %4209 = vmatpush1.bf16.msra.mxu1 %v6802_v57  ;;  %v6855_v48 = vld [vmem:[#allocation22 + $0x124] ss:$8 sps:$4 sm:$0xff]   ;;  %v6865_v57 = vld [vmem:[#allocation22 + $0x1e0] ss:$8 sps:$4 sm:$0xff]  }
 0x700   :  { %4210 = vmatprep.subr.bf16.mxu1 %v6807_v58  ;;  %v6870_v58 = vld [vmem:[#allocation22 + $0x1d4] ss:$8 sps:$4 sm:$0xff]  }
 0x702   :  { %3760 = vmatpush1.bf16.msra.mxu0 %v6757_v51  ;;  %v6856_v51 = vld [vmem:[#allocation22 + $0x110] ss:$8 sps:$4 sm:$0xff]  }
 0x703   :  { %3761 = vmatprep.subr.bf16.mxu0 %v6762_v52  ;;  %4211 = vmatpush1.bf16.msra.mxu1 %v6805_v61  ;;  %v6861_v52 = vld [vmem:[#allocation22 + $0x104] ss:$8 sps:$4 sm:$0xff]   ;;  %v6871_v61 = vld [vmem:[#allocation22 + $0x1c0] ss:$8 sps:$4 sm:$0xff]  }
 0x704   :  { %4212 = vmatprep.subr.bf16.mxu1 %v6810_v1  ;;  %v6876_v1 = vld [vmem:[#allocation22 + $0x1b4] ss:$8 sps:$4 sm:$0xff]  }
 0x706   :  { %3762 = vmatpush1.bf16.msra.mxu0 %v6760_v55  ;;  %v6862_v55 = vld [vmem:[#allocation22 + $0x1f0] ss:$8 sps:$4 sm:$0xff]  }
 0x707   :  { %3763 = vmatprep.subr.bf16.mxu0 %v6765_v56  ;;  %4213 = vmatpush1.bf16.msra.mxu1 %v6808_v4  ;;  %v6867_v56 = vld [vmem:[#allocation22 + $0x1e4] ss:$8 sps:$4 sm:$0xff]   ;;  %v6877_v4 = vld [vmem:[#allocation22 + $0x1a0] ss:$8 sps:$4 sm:$0xff]  }
 0x708   :  { %4214 = vmatprep.subr.bf16.mxu1 %v6813_v5  ;;  %v6882_v5 = vld [vmem:[#allocation22 + $0x194] ss:$8 sps:$4 sm:$0xff]  }
 0x70a   :  { %3764 = vmatpush1.bf16.msra.mxu0 %v6763_v59  ;;  %v6868_v59 = vld [vmem:[#allocation22 + $0x1d0] ss:$8 sps:$4 sm:$0xff]  }
 0x70b   :  { %3765 = vmatprep.subr.bf16.mxu0 %v6768_v60  ;;  %4215 = vmatpush1.bf16.msra.mxu1 %v6811_v8  ;;  %v6873_v60 = vld [vmem:[#allocation22 + $0x1c4] ss:$8 sps:$4 sm:$0xff]   ;;  %v6883_v8 = vld [vmem:[#allocation22 + $0x180] ss:$8 sps:$4 sm:$0xff]  }
 0x70c   :  { %4216 = vmatprep.subr.bf16.mxu1 %v6816_v9 }
 0x70e   :  { %3766 = vmatpush2.bf16.msra.mxu0 %v6766_v2  ;;  %v6874_v2 = vld [vmem:[#allocation22 + $0x1b0] ss:$8 sps:$4 sm:$0xff]  }
 0x70f   :  { %3767 = vmatprep.subr.bf16.mxu0 %v6771_v3  ;;  %4217 = vmatpush2.bf16.msra.mxu1 %v6814_v13  ;;  %v6879_v3 = vld [vmem:[#allocation22 + $0x1a4] ss:$8 sps:$4 sm:$0xff]  }
 0x710   :  { %4218 = vmatprep.subr.bf16.mxu1 %v6819_v14 }
 0x712   :  { %3768 = vmatpush2.bf16.msra.mxu0 %v6769_v6  ;;  %v6880_v6 = vld [vmem:[#allocation22 + $0x190] ss:$8 sps:$4 sm:$0xff]  }
 0x713   :  { %3769 = vmatprep.subr.bf16.mxu0 %v6774_v7  ;;  %4219 = vmatpush2.bf16.msra.mxu1 %v6817_v63  ;;  %v6885_v7 = vld [vmem:[#allocation22 + $0x184] ss:$8 sps:$4 sm:$0xff]  }
 0x714   :  { %4220 = vmatprep.subr.bf16.mxu1 %v6822_v16 }
 0x716   :  { %3770 = vmatpush2.bf16.msra.mxu0 %v6772_v10 }
 0x717   :  { %3771 = vmatprep.subr.bf16.mxu0 %v6777_v12  ;;  %4221 = vmatpush2.bf16.msra.mxu1 %v6820_v11  ;;  %v2954_v12 = vld [vmem:[%s7844_s2] sm:$0xf] }
 0x718   :  { %4222 = vmatprep.subr.bf16.mxu1 %v6825_v19  ;;  %v2967_v14 = vrot.slane %v2954_v12, %v7738_v30 }
 0x71a   :  { %3772 = vmatpush2.bf16.msra.mxu0 %v6775_v15  ;;  %v2963_v15 = vrot.slane %v2954_v12, %v7741_v31 }
 0x71b   :  { %3773 = vmatprep.subr.bf16.mxu0 %v6780_v62  ;;  %4223 = vmatpush2.bf16.msra.mxu1 %v6823_v22 }
 0x71c   :  { %4224 = vmatprep.subr.bf16.mxu1 %v6828_v23 }
 0x71e   :  { %3774 = vmatpush2.bf16.msra.mxu0 %v6778_v17 }
 0x71f   :  { %3775 = vmatprep.subr.bf16.mxu0 %v6783_v18  ;;  %4225 = vmatpush2.bf16.msra.mxu1 %v6826_v28 }
 0x720   :  { %4226 = vmatprep.subr.bf16.mxu1 %v6831_v33 }
 0x722   :  { %3776 = vmatpush2.bf16.msra.mxu0 %v6781_v20 }
 0x723   :  { %3777 = vmatprep.subr.bf16.mxu0 %v6786_v21  ;;  %4227 = vmatpush2.bf16.msra.mxu1 %v6829_v34 }
 0x724   :  { %4228 = vmatprep.subr.bf16.mxu1 %v6834_v36 }
 0x726   :  { %3778 = vmatpush2.bf16.msra.mxu0 %v6784_v24 }
 0x727   :  { %3779 = vmatprep.subr.bf16.mxu0 %v6789_v27  ;;  %4229 = vmatpush2.bf16.msra.mxu1 %v6832_v37 }
 0x728   :  { %4230 = vmatprep.subr.bf16.mxu1 %v6837_v38 }
 0x72a   :  { %3780 = vmatpush2.bf16.msra.mxu0 %v6787_v32 }
 0x72b   :  { %4231 = vmatpush2.bf16.msra.mxu1 %v6835_v40  ;;  %4243 = vmatprep.subr.bf16.mxu0 %v6840_v41 }
 0x72d   :  { %3782 = vmatmul.mubr.bf16.vlgmr.msra.gmra.mxu0 %v7786_v35  ;;  %v6846_v35 = vld [vmem:[#allocation22 + $0x154] ss:$8 sps:$4 sm:$0xff]  }
 0x72e   :  { %4244 = vmatpush1.bf16.msra.mxu0 %v6838_v42  ;;  %v2975_v42 = vrot.slane %v2954_v12, %v7754_v25 }
 0x72f   :  { %4245 = vmatprep.subr.bf16.mxu0 %v6843_v43  ;;  %v2971_v43 = vrot.slane %v2954_v12, %v7757_v26  ;;  %v6886_v26 = vld [vmem:[#allocation23 + $0x70] ss:$8 sps:$4 sm:$0xff]   ;;  %v6909_v12 = vld [vmem:[#allocation23 + $0x4] ss:$8 sps:$4 sm:$0xff]  }
 0x732   :  { %4246 = vmatpush1.bf16.msra.mxu0 %v6841_v29 }
 0x733   :  { %4247 = vmatprep.subr.bf16.mxu0 %v6846_v35 }
 0x736   :  { %4248 = vmatpush1.bf16.msra.mxu0 %v6844_v44 }
 0x737   :  { %4249 = vmatprep.subr.bf16.mxu0 %v6849_v45 }
 0x73a   :  { %4250 = vmatpush1.bf16.msra.mxu0 %v6847_v46 }
 0x73b   :  { %4251 = vmatprep.subr.bf16.mxu0 %v6852_v39 }
 0x73e   :  { %4252 = vmatpush1.bf16.msra.mxu0 %v6850_v47 }
 0x73f   :  { %4253 = vmatprep.subr.bf16.mxu0 %v6855_v48 }
 0x742   :  { %4254 = vmatpush1.bf16.msra.mxu0 %v6853_v49 }
 0x743   :  { %4255 = vmatprep.subr.bf16.mxu0 %v6858_v50 }
 0x746   :  { %4256 = vmatpush1.bf16.msra.mxu0 %v6856_v51 }
 0x747   :  { %4257 = vmatprep.subr.bf16.mxu0 %v6861_v52 }
 0x74a   :  { %4258 = vmatpush1.bf16.msra.mxu0 %v6859_v53 }
 0x74b   :  { %4259 = vmatprep.subr.bf16.mxu0 %v6864_v54 }
 0x74e   :  { %4260 = vmatpush2.bf16.msra.mxu0 %v6862_v55 }
 0x74f   :  { %4261 = vmatprep.subr.bf16.mxu0 %v6867_v56 }
 0x752   :  { %4262 = vmatpush2.bf16.msra.mxu0 %v6865_v57 }
 0x753   :  { %4263 = vmatprep.subr.bf16.mxu0 %v6870_v58 }
 0x756   :  { %4264 = vmatpush2.bf16.msra.mxu0 %v6868_v59  ;;  %v6888_v59 = vld [vmem:[#allocation23 + $0x74] ss:$8 sps:$4 sm:$0xff]  }
 0x757   :  { %4265 = vmatprep.subr.bf16.mxu0 %v6873_v60  ;;  %v6891_v60 = vld [vmem:[#allocation23 + $0x64] ss:$8 sps:$4 sm:$0xff]   ;;  %4496 = vmatprep.subr.bf16.mxu1 %v6888_v59 }
 0x75a   :  { %4266 = vmatpush2.bf16.msra.mxu0 %v6871_v61  ;;  %v6889_v61 = vld [vmem:[#allocation23 + $0x60] ss:$8 sps:$4 sm:$0xff]  }
 0x75b   :  { %4267 = vmatprep.subr.bf16.mxu0 %v6876_v1  ;;  %v6894_v1 = vld [vmem:[#allocation23 + $0x54] ss:$8 sps:$4 sm:$0xff]  }
 0x75e   :  { %4268 = vmatpush2.bf16.msra.mxu0 %v6874_v2  ;;  %v6892_v2 = vld [vmem:[#allocation23 + $0x50] ss:$8 sps:$4 sm:$0xff]  }
 0x75f   :  { %4269 = vmatprep.subr.bf16.mxu0 %v6879_v3  ;;  %v6897_v3 = vld [vmem:[#allocation23 + $0x44] ss:$8 sps:$4 sm:$0xff]  }
 0x762   :  { %4270 = vmatpush2.bf16.msra.mxu0 %v6877_v4  ;;  %v6895_v4 = vld [vmem:[#allocation23 + $0x40] ss:$8 sps:$4 sm:$0xff]  }
 0x763   :  { %4271 = vmatprep.subr.bf16.mxu0 %v6882_v5  ;;  %v6900_v5 = vld [vmem:[#allocation23 + $0x34] ss:$8 sps:$4 sm:$0xff]  }
 0x766   :  { %4272 = vmatpush2.bf16.msra.mxu0 %v6880_v6  ;;  %v6898_v6 = vld [vmem:[#allocation23 + $0x30] ss:$8 sps:$4 sm:$0xff]  }
 0x767   :  { %4273 = vmatprep.subr.bf16.mxu0 %v6885_v7  ;;  %v6903_v7 = vld [vmem:[#allocation23 + $0x24] ss:$8 sps:$4 sm:$0xff]  }
 0x76a   :  { %4274 = vmatpush2.bf16.msra.mxu0 %v6883_v8  ;;  %v6901_v8 = vld [vmem:[#allocation23 + $0x20] ss:$8 sps:$4 sm:$0xff]  }
 0x76d   :  { %v3654_v9 = vpop.f32.mrf.mxu1 }
 0x76e   :  { %v3655_v11 = vadd.f32 %v3654_v9, %v2963_v15  ;;  %v6906_v9 = vld [vmem:[#allocation23 + $0x14] ss:$8 sps:$4 sm:$0xff]  }
 0x76f   :  { %v3656_v10 = vpop.f32.mrf.mxu1 }
 0x770   :  { %v3657_v17 = vadd.f32 %v3656_v10, %v2967_v14  ;;  %v6904_v10 = vld [vmem:[#allocation23 + $0x10] ss:$8 sps:$4 sm:$0xff]  }
 0x771   :  { %v3658_v13 = vpop.f32.mrf.mxu1 }
 0x772   :  { %v3659_v18 = vadd.f32 %v3658_v13, %v2963_v15  ;;  %v6907_v13 = vld [vmem:[#allocation23] ss:$8 sps:$4 sm:$0xff]   ;;  %v6910_v15 = vld [vmem:[#allocation23 + $0xf0] ss:$8 sps:$4 sm:$0xff]  }
 0x773   :  { %v3660_v63 = vpop.f32.mrf.mxu1 }
 0x774   :  { %v3661_v20 = vadd.f32 %v3660_v63, %v2967_v14  ;;  %v6912_v14 = vld [vmem:[#allocation23 + $0xf4] ss:$8 sps:$4 sm:$0xff]   ;;  %v6913_v63 = vld [vmem:[#allocation23 + $0xe0] ss:$8 sps:$4 sm:$0xff]  }
 0x7ad   :  { %v3697_v62 = vpop.f32.mrf.mxu0  ;;  %v3740_v38 = vpop.f32.mrf.mxu1 }
 0x7ae   :  { %v3698_v23 = vadd.f32 %v3697_v62, %v3655_v11  ;;  %v3741_v39 = vadd.f32 %v3740_v38, %v2971_v43  ;;  %v6915_v62 = vld [vmem:[#allocation23 + $0xe4] ss:$8 sps:$4 sm:$0xff]   ;;  %v6919_v11 = vld [vmem:[#allocation23 + $0xc0] ss:$8 sps:$4 sm:$0xff]   ;;  %v6940_v38 = vld [vmem:[#allocation25 + $0x50] ss:$8 sps:$4 sm:$0xff]  }
 0x7af   :  { %v3699_v16 = vpop.f32.mrf.mxu0  ;;  %v3742_v40 = vpop.f32.mrf.mxu1 }
 0x7b0   :  { %v3700_v21 = vadd.f32 %v3699_v16, %v3657_v17  ;;  %v3792_v34 = vmax.f32 %v3698_v23, 0.0  ;;  %v3743_v45 = vadd.f32 %v3742_v40, %v2975_v42  ;;  %v6918_v16 = vld [vmem:[#allocation23 + $0xd4] ss:$8 sps:$4 sm:$0xff]   ;;  %v6916_v17 = vld [vmem:[#allocation23 + $0xd0] ss:$8 sps:$4 sm:$0xff]  }
 0x7b1   :  { %v3701_v19 = vpop.f32.mrf.mxu0  ;;  %v3744_v41 = vpop.f32.mrf.mxu1  ;;  %v6930_v23 = vld [vmem:[#allocation23 + $0x94] ss:$8 sps:$4 sm:$0xff]   ;;  %v6945_v40 = vld [vmem:[#allocation25 + $0x44] ss:$8 sps:$4 sm:$0xff]  }
 0x7b2   :  { %v3702_v22 = vadd.f32 %v3701_v19, %v3659_v18  ;;  %v3793_v32 = vmax.f32 %v3700_v21, 0.0  ;;  %v3745_v46 = vadd.f32 %v3744_v41, %v2971_v43  ;;  %v6921_v18 = vld [vmem:[#allocation23 + $0xc4] ss:$8 sps:$4 sm:$0xff]   ;;  %v6924_v19 = vld [vmem:[#allocation23 + $0xb4] ss:$8 sps:$4 sm:$0xff]  }
 0x7b3   :  { %v3703_v24 = vpop.f32.mrf.mxu0  ;;  %v3746_v35 = vpop.f32.mrf.mxu1  ;;  %v6927_v21 = vld [vmem:[#allocation23 + $0xa4] ss:$8 sps:$4 sm:$0xff]   ;;  %v6943_v41 = vld [vmem:[#allocation25 + $0x40] ss:$8 sps:$4 sm:$0xff]   ;;  %v6946_v43 = vld [vmem:[#allocation25 + $0x30] ss:$8 sps:$4 sm:$0xff]  }
 0x7b4   :  { %v3704_v27 = vadd.f32 %v3703_v24, %v3661_v20  ;;  %v3796_v28 = vmax.f32 %v3702_v22, 0.0  ;;  %v3747_v48 = vadd.f32 %v3746_v35, %v2975_v42  ;;  %v6922_v20 = vld [vmem:[#allocation23 + $0xb0] ss:$8 sps:$4 sm:$0xff]   ;;  %v6925_v22 = vld [vmem:[#allocation23 + $0xa0] ss:$8 sps:$4 sm:$0xff]  }
 0x7b5   :  { %v6928_v24 = vld [vmem:[#allocation23 + $0x90] ss:$8 sps:$4 sm:$0xff]   ;;  %v6948_v42 = vld [vmem:[#allocation25 + $0x34] ss:$8 sps:$4 sm:$0xff]   ;;  %v6949_v35 = vld [vmem:[#allocation25 + $0x20] ss:$8 sps:$4 sm:$0xff]  }
 0x7b6   :  { %v3797_v33 = vmax.f32 %v3704_v27, 0.0  ;;  %v3865_v37 = vpack.c.bf16 %v3796_v28, %v3792_v34  ;;  %v6933_v27 = vld [vmem:[#allocation23 + $0x84] ss:$8 sps:$4 sm:$0xff]   ;;  %v6931_v28 = vld [vmem:[#allocation23 + $0x80] ss:$8 sps:$4 sm:$0xff]  }
 0x7b7   :  { %v6939_v34 = vld [vmem:[#allocation25 + $0x64] ss:$8 sps:$4 sm:$0xff]  }
 0x7b8   :  { %v3866_v36 = vpack.c.bf16 %v3797_v33, %v3793_v32  ;;  %v6934_v32 = vld [vmem:[#allocation25 + $0x70] ss:$8 sps:$4 sm:$0xff]   ;;  %v6936_v33 = vld [vmem:[#allocation25 + $0x74] ss:$8 sps:$4 sm:$0xff]  }
 0x7b9   :  { %4749 = vmatprep.subr.bf16.mxu0 %v6936_v33  ;;  %v6988_v33 = vld [vmem:[#allocation26 + $0x50] ss:$8 sps:$4 sm:$0xff]  }
 0x7ba   :  { %4232 = vmatprep.mubr.bf16.mxu1 %v3866_v36  ;;  %v6937_v36 = vld [vmem:[#allocation25 + $0x60] ss:$8 sps:$4 sm:$0xff]  }
 0x7bb   :  { %4233 = vmatmul.mubr.bf16.vlgmr.msra.gmra.mxu1 %v3865_v37  ;;  %v6942_v37 = vld [vmem:[#allocation25 + $0x54] ss:$8 sps:$4 sm:$0xff]  }
 0x7bc   :  { %4497 = vmatpush1.bf16.msra.mxu1 %v6886_v26 }
 0x7bd   :  { %4498 = vmatprep.subr.bf16.mxu1 %v6891_v60 }
 0x7c0   :  { %4499 = vmatpush1.bf16.msra.mxu1 %v6889_v61 }
 0x7c1   :  { %4500 = vmatprep.subr.bf16.mxu1 %v6894_v1 }
 0x7c4   :  { %4501 = vmatpush1.bf16.msra.mxu1 %v6892_v2 }
 0x7c5   :  { %4502 = vmatprep.subr.bf16.mxu1 %v6897_v3 }
 0x7c8   :  { %4503 = vmatpush1.bf16.msra.mxu1 %v6895_v4 }
 0x7c9   :  { %4504 = vmatprep.subr.bf16.mxu1 %v6900_v5 }
 0x7cc   :  { %4505 = vmatpush1.bf16.msra.mxu1 %v6898_v6 }
 0x7cd   :  { %4506 = vmatprep.subr.bf16.mxu1 %v6903_v7 }
 0x7d0   :  { %4507 = vmatpush1.bf16.msra.mxu1 %v6901_v8 }
 0x7d1   :  { %4508 = vmatprep.subr.bf16.mxu1 %v6906_v9 }
 0x7d4   :  { %4509 = vmatpush1.bf16.msra.mxu1 %v6904_v10 }
 0x7d5   :  { %4510 = vmatprep.subr.bf16.mxu1 %v6909_v12 }
 0x7d8   :  { %4511 = vmatpush1.bf16.msra.mxu1 %v6907_v13 }
 0x7d9   :  { %4512 = vmatprep.subr.bf16.mxu1 %v6912_v14 }
 0x7dc   :  { %4513 = vmatpush2.bf16.msra.mxu1 %v6910_v15 }
 0x7dd   :  { %4514 = vmatprep.subr.bf16.mxu1 %v6915_v62 }
 0x7e0   :  { %4515 = vmatpush2.bf16.msra.mxu1 %v6913_v63 }
 0x7e1   :  { %4516 = vmatprep.subr.bf16.mxu1 %v6918_v16 }
 0x7e4   :  { %4517 = vmatpush2.bf16.msra.mxu1 %v6916_v17 }
 0x7e5   :  { %4518 = vmatprep.subr.bf16.mxu1 %v6921_v18  ;;  %v6975_v18 = vld [vmem:[#allocation25 + $0xa4] ss:$8 sps:$4 sm:$0xff]  }
 0x7e8   :  { %4519 = vmatpush2.bf16.msra.mxu1 %v6919_v11  ;;  %v6973_v11 = vld [vmem:[#allocation25 + $0xa0] ss:$8 sps:$4 sm:$0xff]  }
 0x7e9   :  { %4520 = vmatprep.subr.bf16.mxu1 %v6924_v19  ;;  %v6978_v19 = vld [vmem:[#allocation25 + $0x94] ss:$8 sps:$4 sm:$0xff]  }
 0x7ec   :  { %4521 = vmatpush2.bf16.msra.mxu1 %v6922_v20  ;;  %v6976_v20 = vld [vmem:[#allocation25 + $0x90] ss:$8 sps:$4 sm:$0xff]  }
 0x7ed   :  { %v3783_v29 = vpop.f32.mrf.mxu0  ;;  %4522 = vmatprep.subr.bf16.mxu1 %v6927_v21  ;;  %v6981_v21 = vld [vmem:[#allocation25 + $0x84] ss:$8 sps:$4 sm:$0xff]  }
 0x7ee   :  { %v3784_v51 = vadd.f32 %v3783_v29, %v3741_v39  ;;  %v6951_v29 = vld [vmem:[#allocation25 + $0x24] ss:$8 sps:$4 sm:$0xff]   ;;  %v6955_v39 = vld [vmem:[#allocation25] ss:$8 sps:$4 sm:$0xff]  }
 0x7ef   :  { %v3785_v44 = vpop.f32.mrf.mxu0 }
 0x7f0   :  { %v3786_v49 = vadd.f32 %v3785_v44, %v3743_v45  ;;  %v3794_v57 = vmax.f32 %v3784_v51, 0.0  ;;  %4523 = vmatpush2.bf16.msra.mxu1 %v6925_v22  ;;  %v6954_v44 = vld [vmem:[#allocation25 + $0x14] ss:$8 sps:$4 sm:$0xff]   ;;  %v6952_v45 = vld [vmem:[#allocation25 + $0x10] ss:$8 sps:$4 sm:$0xff]  }
 0x7f1   :  { %v3787_v47 = vpop.f32.mrf.mxu0  ;;  %4524 = vmatprep.subr.bf16.mxu1 %v6930_v23  ;;  %v6966_v51 = vld [vmem:[#allocation25 + $0xd4] ss:$8 sps:$4 sm:$0xff]   ;;  %v6979_v22 = vld [vmem:[#allocation25 + $0x80] ss:$8 sps:$4 sm:$0xff]   ;;  %v6982_v23 = vld [vmem:[#allocation26 + $0x70] ss:$8 sps:$4 sm:$0xff]  }
 0x7f2   :  { %v3788_v50 = vadd.f32 %v3787_v47, %v3745_v46  ;;  %v3795_v55 = vmax.f32 %v3786_v49, 0.0  ;;  %v6957_v46 = vld [vmem:[#allocation25 + $0x4] ss:$8 sps:$4 sm:$0xff]   ;;  %v6960_v47 = vld [vmem:[#allocation25 + $0xf4] ss:$8 sps:$4 sm:$0xff]  }
 0x7f3   :  { %v3789_v52 = vpop.f32.mrf.mxu0  ;;  %v6963_v49 = vld [vmem:[#allocation25 + $0xe4] ss:$8 sps:$4 sm:$0xff]  }
 0x7f4   :  { %v3790_v53 = vadd.f32 %v3789_v52, %v3747_v48  ;;  %v3798_v54 = vmax.f32 %v3788_v50, 0.0  ;;  %4525 = vmatpush2.bf16.msra.mxu1 %v6928_v24  ;;  %v6958_v48 = vld [vmem:[#allocation25 + $0xf0] ss:$8 sps:$4 sm:$0xff]   ;;  %v6961_v50 = vld [vmem:[#allocation25 + $0xe0] ss:$8 sps:$4 sm:$0xff]  }
 0x7f5   :  { %4526 = vmatprep.subr.bf16.mxu1 %v6933_v27  ;;  %v6964_v52 = vld [vmem:[#allocation25 + $0xd0] ss:$8 sps:$4 sm:$0xff]   ;;  %v6984_v24 = vld [vmem:[#allocation26 + $0x74] ss:$8 sps:$4 sm:$0xff]   ;;  %v6987_v27 = vld [vmem:[#allocation26 + $0x64] ss:$8 sps:$4 sm:$0xff]  }
 0x7f6   :  { %v3799_v56 = vmax.f32 %v3790_v53, 0.0  ;;  %v3867_v58 = vpack.c.bf16 %v3798_v54, %v3794_v57  ;;  %v6969_v53 = vld [vmem:[#allocation25 + $0xc4] ss:$8 sps:$4 sm:$0xff]   ;;  %v6967_v54 = vld [vmem:[#allocation25 + $0xc0] ss:$8 sps:$4 sm:$0xff]  }
 0x7f8   :  { %v3868_v25 = vpack.c.bf16 %v3799_v56, %v3795_v55  ;;  %4527 = vmatpush2.bf16.msra.mxu1 %v6931_v28  ;;  %v6972_v55 = vld [vmem:[#allocation25 + $0xb4] ss:$8 sps:$4 sm:$0xff]   ;;  %v6970_v56 = vld [vmem:[#allocation25 + $0xb0] ss:$8 sps:$4 sm:$0xff]   ;;  %v6985_v28 = vld [vmem:[#allocation26 + $0x60] ss:$8 sps:$4 sm:$0xff]  }
 0x7f9   :  { %5002 = vmatprep.subr.bf16.mxu1 %v6984_v24 }
 0x7fa   :  { %4275 = vmatprep.mubr.bf16.mxu0 %v3868_v25 }
 0x7fb   :  { %4276 = vmatmul.mubr.bf16.vlgmr.msra.gmra.mxu0 %v3867_v58  ;;  %v3864_v58 = vld [vmem:[%s7845_s24] sm:$0x3] }
 0x7fc   :  { %4750 = vmatpush1.bf16.msra.mxu0 %v6934_v32  ;;  %v3877_v59 = vrot.slane %v3864_v58, %v7738_v30  ;;  %v3873_v60 = vrot.slane %v3864_v58, %v7741_v31  ;;  %v6990_v32 = vld [vmem:[#allocation26 + $0x54] ss:$8 sps:$4 sm:$0xff]  }
 0x7fd   :  { %4751 = vmatprep.subr.bf16.mxu0 %v6939_v34  ;;  %v6993_v34 = vld [vmem:[#allocation26 + $0x44] ss:$8 sps:$4 sm:$0xff]  }
 0x800   :  { %4752 = vmatpush1.bf16.msra.mxu0 %v6937_v36  ;;  %v6991_v36 = vld [vmem:[#allocation26 + $0x40] ss:$8 sps:$4 sm:$0xff]  }
 0x801   :  { %4753 = vmatprep.subr.bf16.mxu0 %v6942_v37  ;;  %v6996_v37 = vld [vmem:[#allocation26 + $0x34] ss:$8 sps:$4 sm:$0xff]  }
 0x804   :  { %4754 = vmatpush1.bf16.msra.mxu0 %v6940_v38  ;;  %v6994_v38 = vld [vmem:[#allocation26 + $0x30] ss:$8 sps:$4 sm:$0xff]  }
 0x805   :  { %4755 = vmatprep.subr.bf16.mxu0 %v6945_v40  ;;  %v6999_v40 = vld [vmem:[#allocation26 + $0x24] ss:$8 sps:$4 sm:$0xff]  }
 0x808   :  { %4756 = vmatpush1.bf16.msra.mxu0 %v6943_v41  ;;  %v6997_v41 = vld [vmem:[#allocation26 + $0x20] ss:$8 sps:$4 sm:$0xff]  }
 0x809   :  { %4757 = vmatprep.subr.bf16.mxu0 %v6948_v42  ;;  %v7002_v42 = vld [vmem:[#allocation26 + $0x14] ss:$8 sps:$4 sm:$0xff]  }
 0x80c   :  { %4758 = vmatpush1.bf16.msra.mxu0 %v6946_v43  ;;  %v7000_v43 = vld [vmem:[#allocation26 + $0x10] ss:$8 sps:$4 sm:$0xff]  }
 0x80d   :  { %4759 = vmatprep.subr.bf16.mxu0 %v6951_v29  ;;  %v7005_v29 = vld [vmem:[#allocation26 + $0x4] ss:$8 sps:$4 sm:$0xff]  }
 0x810   :  { %4760 = vmatpush1.bf16.msra.mxu0 %v6949_v35  ;;  %v7003_v35 = vld [vmem:[#allocation26] ss:$8 sps:$4 sm:$0xff]  }
 0x811   :  { %4761 = vmatprep.subr.bf16.mxu0 %v6954_v44  ;;  %v7008_v44 = vld [vmem:[#allocation26 + $0xf4] ss:$8 sps:$4 sm:$0xff]  }
 0x814   :  { %4762 = vmatpush1.bf16.msra.mxu0 %v6952_v45  ;;  %v7006_v45 = vld [vmem:[#allocation26 + $0xf0] ss:$8 sps:$4 sm:$0xff]  }
 0x815   :  { %4763 = vmatprep.subr.bf16.mxu0 %v6957_v46  ;;  %v7011_v46 = vld [vmem:[#allocation26 + $0xe4] ss:$8 sps:$4 sm:$0xff]  }
 0x818   :  { %4764 = vmatpush1.bf16.msra.mxu0 %v6955_v39  ;;  %v7009_v39 = vld [vmem:[#allocation26 + $0xe0] ss:$8 sps:$4 sm:$0xff]  }
 0x819   :  { %4765 = vmatprep.subr.bf16.mxu0 %v6960_v47  ;;  %v7014_v47 = vld [vmem:[#allocation26 + $0xd4] ss:$8 sps:$4 sm:$0xff]  }
 0x81c   :  { %4766 = vmatpush2.bf16.msra.mxu0 %v6958_v48  ;;  %v7012_v48 = vld [vmem:[#allocation26 + $0xd0] ss:$8 sps:$4 sm:$0xff]  }
 0x81d   :  { %4767 = vmatprep.subr.bf16.mxu0 %v6963_v49  ;;  %v7017_v49 = vld [vmem:[#allocation26 + $0xc4] ss:$8 sps:$4 sm:$0xff]  }
 0x820   :  { %4768 = vmatpush2.bf16.msra.mxu0 %v6961_v50  ;;  %v7015_v50 = vld [vmem:[#allocation26 + $0xc0] ss:$8 sps:$4 sm:$0xff]  }
 0x821   :  { %4769 = vmatprep.subr.bf16.mxu0 %v6966_v51  ;;  %v7020_v51 = vld [vmem:[#allocation26 + $0xb4] ss:$8 sps:$4 sm:$0xff]  }
 0x824   :  { %4770 = vmatpush2.bf16.msra.mxu0 %v6964_v52  ;;  %v7018_v52 = vld [vmem:[#allocation26 + $0xb0] ss:$8 sps:$4 sm:$0xff]  }
 0x825   :  { %4771 = vmatprep.subr.bf16.mxu0 %v6969_v53  ;;  %v4322_v53 = vld [vmem:[%s7846_s7] sm:$0x3] }
 0x828   :  { %4772 = vmatpush2.bf16.msra.mxu0 %v6967_v54 }
 0x829   :  { %4773 = vmatprep.subr.bf16.mxu0 %v6972_v55  ;;  %v4333_v55 = vrot.slane %v4322_v53, %v7738_v30 }
 0x82c   :  { %4774 = vmatpush2.bf16.msra.mxu0 %v6970_v56  ;;  %v4329_v56 = vrot.slane %v4322_v53, %v7741_v31 }
 0x82d   :  { %4775 = vmatprep.subr.bf16.mxu0 %v6975_v18  ;;  %v7036_v18 = vld [vmem:[#allocation28 + $0x60] sm:$0xff]  }
 0x830   :  { %4776 = vmatpush2.bf16.msra.mxu0 %v6973_v11  ;;  %v7037_v11 = vld [vmem:[#allocation28 + $0x20] sm:$0xff]  }
 0x831   :  { %4777 = vmatprep.subr.bf16.mxu0 %v6978_v19  ;;  %v7038_v19 = vld [vmem:[#allocation28 + $0x58] sm:$0xff]  }
 0x834   :  { %4778 = vmatpush2.bf16.msra.mxu0 %v6976_v20  ;;  %v7039_v20 = vld [vmem:[#allocation28 + $0x18] sm:$0xff]  }
 0x835   :  { %4779 = vmatprep.subr.bf16.mxu0 %v6981_v21  ;;  %v4575_v21 = vld [vmem:[%s7847_s13] sm:$0x3] }
 0x836   :  { %v4582_v24 = vrot.slane %v4575_v21, %v7741_v31 }
 0x838   :  { %4780 = vmatpush2.bf16.msra.mxu0 %v6979_v22 }
 0x87b   :  { %v4234_v57 = vpop.f32.mrf.mxu1 }
 0x87c   :  { %v4235_v5 = vadd.f32 %v4234_v57, %v3873_v60 }
 0x87d   :  { %v4236_v25 = vpop.f32.mrf.mxu1 }
 0x87e   :  { %v4237_v3 = vadd.f32 %v4236_v25, %v3877_v59 }
 0x87f   :  { %v4238_v26 = vpop.f32.mrf.mxu1 }
 0x880   :  { %v4239_v4 = vadd.f32 %v4238_v26, %v3873_v60 }
 0x881   :  { %v4240_v1 = vpop.f32.mrf.mxu1 }
 0x882   :  { %v4241_v7 = vadd.f32 %v4240_v1, %v3877_v59 }
 0x8bb   :  { %v4277_v61 = vpop.f32.mrf.mxu0 }
 0x8bc   :  { %v4278_v10 = vadd.f32 %v4277_v61, %v4235_v5 }
 0x8bd   :  { %v4279_v2 = vpop.f32.mrf.mxu0 }
 0x8be   :  { %v4280_v8 = vadd.f32 %v4279_v2, %v4237_v3  ;;  %v4286_v63 = vmax.f32 %v4278_v10, 0.0  ;;  %v7024_v10 = vld [vmem:[#allocation26 + $0x90] ss:$8 sps:$4 sm:$0xff]  }
 0x8bf   :  { %v4281_v6 = vpop.f32.mrf.mxu0 }
 0x8c0   :  { %v4282_v9 = vadd.f32 %v4281_v6, %v4239_v4  ;;  %v4287_v15 = vmax.f32 %v4280_v8, 0.0  ;;  %v7021_v8 = vld [vmem:[#allocation26 + $0xa0] ss:$8 sps:$4 sm:$0xff]  }
 0x8c1   :  { %v4283_v12 = vpop.f32.mrf.mxu0 }
 0x8c2   :  { %v4284_v13 = vadd.f32 %v4283_v12, %v4241_v7  ;;  %v4288_v14 = vmax.f32 %v4282_v9, 0.0  ;;  %v7023_v7 = vld [vmem:[#allocation26 + $0xa4] ss:$8 sps:$4 sm:$0xff]   ;;  %v7026_v9 = vld [vmem:[#allocation26 + $0x94] ss:$8 sps:$4 sm:$0xff]  }
 0x8c3   :  { %v7029_v12 = vld [vmem:[#allocation26 + $0x84] ss:$8 sps:$4 sm:$0xff]  }
 0x8c4   :  { %v4289_v62 = vmax.f32 %v4284_v13, 0.0  ;;  %v4323_v17 = vpack.c.bf16 %v4288_v14, %v4286_v63  ;;  %v7027_v13 = vld [vmem:[#allocation26 + $0x80] ss:$8 sps:$4 sm:$0xff]   ;;  %v7030_v14 = vld [vmem:[#allocation28 + $0x78] sm:$0xff]   ;;  %v7033_v63 = vld [vmem:[#allocation28 + $0x30] sm:$0xff]  }
 0x8c5   :  { %6024 = vmatprep.subr.bf16.mxu0 %v7030_v14 }
 0x8c6   :  { %v4324_v16 = vpack.c.bf16 %v4289_v62, %v4287_v15  ;;  %v7031_v15 = vld [vmem:[#allocation28 + $0x38] sm:$0xff]   ;;  %v7032_v62 = vld [vmem:[#allocation28 + $0x70] sm:$0xff]  }
 0x8c8   :  { %4528 = vmatprep.mubr.bf16.mxu1 %v4324_v16  ;;  %v7034_v16 = vld [vmem:[#allocation28 + $0x68] sm:$0xff]  }
 0x8c9   :  { %4529 = vmatmul.mubr.bf16.vlgmr.msra.gmra.mxu1 %v4323_v17  ;;  %v7035_v17 = vld [vmem:[#allocation28 + $0x28] sm:$0xff]  }
 0x8ca   :  { %5003 = vmatpush1.bf16.msra.mxu1 %v6982_v23  ;;  %v4586_v23 = vrot.slane %v4575_v21, %v7738_v30 }
 0x8cb   :  { %5004 = vmatprep.subr.bf16.mxu1 %v6987_v27 }
 0x8ce   :  { %5005 = vmatpush1.bf16.msra.mxu1 %v6985_v28 }
 0x8cf   :  { %5006 = vmatprep.subr.bf16.mxu1 %v6990_v32 }
 0x8d2   :  { %5007 = vmatpush1.bf16.msra.mxu1 %v6988_v33 }
 0x8d3   :  { %5008 = vmatprep.subr.bf16.mxu1 %v6993_v34 }
 0x8d6   :  { %5009 = vmatpush1.bf16.msra.mxu1 %v6991_v36 }
 0x8d7   :  { %5010 = vmatprep.subr.bf16.mxu1 %v6996_v37 }
 0x8da   :  { %5011 = vmatpush1.bf16.msra.mxu1 %v6994_v38 }
 0x8db   :  { %5012 = vmatprep.subr.bf16.mxu1 %v6999_v40 }
 0x8de   :  { %5013 = vmatpush1.bf16.msra.mxu1 %v6997_v41 }
 0x8df   :  { %5014 = vmatprep.subr.bf16.mxu1 %v7002_v42 }
 0x8e2   :  { %5015 = vmatpush1.bf16.msra.mxu1 %v7000_v43 }
 0x8e3   :  { %5016 = vmatprep.subr.bf16.mxu1 %v7005_v29 }
 0x8e6   :  { %5017 = vmatpush1.bf16.msra.mxu1 %v7003_v35  ;;  %v7040_v35 = vld [vmem:[#allocation28 + $0x50] sm:$0xff]  }
 0x8e7   :  { %5018 = vmatprep.subr.bf16.mxu1 %v7008_v44  ;;  %v7041_v44 = vld [vmem:[#allocation28 + $0x10] sm:$0xff]  }
 0x8ea   :  { %5019 = vmatpush2.bf16.msra.mxu1 %v7006_v45  ;;  %v7042_v45 = vld [vmem:[#allocation28 + $0x48] sm:$0xff]  }
 0x8eb   :  { %5020 = vmatprep.subr.bf16.mxu1 %v7011_v46  ;;  %v7043_v46 = vld [vmem:[#allocation28 + $0x8] sm:$0xff]  }
 0x8ee   :  { %5021 = vmatpush2.bf16.msra.mxu1 %v7009_v39  ;;  %v7044_v39 = vld [vmem:[#allocation28 + $0x40] sm:$0xff]  }
 0x8ef   :  { %5022 = vmatprep.subr.bf16.mxu1 %v7014_v47  ;;  %v7045_v47 = vld [vmem:[#allocation28] sm:$0xff]  }
 0x8f2   :  { %5023 = vmatpush2.bf16.msra.mxu1 %v7012_v48  ;;  %v7046_v48 = vld [vmem:[#allocation29 + $0x38] sm:$0xff]  }
 0x8f3   :  { %5024 = vmatprep.subr.bf16.mxu1 %v7017_v49  ;;  %v7047_v49 = vld [vmem:[#allocation29 + $0x30] sm:$0xff]  }
 0x8f6   :  { %5025 = vmatpush2.bf16.msra.mxu1 %v7015_v50  ;;  %v7048_v50 = vld [vmem:[#allocation29 + $0x28] sm:$0xff]  }
 0x8f7   :  { %5026 = vmatprep.subr.bf16.mxu1 %v7020_v51  ;;  %v7049_v51 = vld [vmem:[#allocation29 + $0x20] sm:$0xff]  }
 0x8fa   :  { %5027 = vmatpush2.bf16.msra.mxu1 %v7018_v52  ;;  %v4828_v52 = vld [vmem:[%s7848_s21] sm:$0x3] }
 0x8fb   :  { %5028 = vmatprep.subr.bf16.mxu1 %v7023_v7  ;;  %v7053_v7 = vld [vmem:[#allocation29] sm:$0xff]  }
 0x8fe   :  { %5029 = vmatpush2.bf16.msra.mxu1 %v7021_v8 }
 0x8ff   :  { %5030 = vmatprep.subr.bf16.mxu1 %v7026_v9 }
 0x902   :  { %5031 = vmatpush2.bf16.msra.mxu1 %v7024_v10 }
 0x903   :  { %5032 = vmatprep.subr.bf16.mxu1 %v7029_v12  ;;  %v5995_v12 = vld [vmem:[%s7651_s12] ss:$0 sm:$0xff]  ;;  %s7414_s12 = scalar_lea.vmem %s5350_s11, 256 }
 0x904   :  { %p7415_p6 = scmp.ne.s32.totalorder %s5350_s11, %s7414_s12  ;;  %p7420_p8 = scmp.lt.s32.totalorder %s7414_s12, %s7414_s12 }
 0x906   :  { %5033 = vmatpush2.bf16.msra.mxu1 %v7027_v13  ;;  %p7421_p9 = por %p7420_p8, %p7419_p7 }
 0x907   :  { %6063 = vmatprep.subr.bf16.mxu1 %v7509_v0 }
 0x908   :  { %p7422_p10 = pnand %p7421_p9, %p7415_p6 }
 0x989   :  { %v4530_v54 = vpop.f32.mrf.mxu1 }
 0x98a   :  { %v4531_v59 = vadd.f32 %v4530_v54, %v4329_v56  ;;  %v4839_v54 = vrot.slane %v4828_v52, %v7738_v30  ;;  %v7051_v30 = vld [vmem:[#allocation29 + $0x10] sm:$0xff]  }
 0x98b   :  { %v4532_v57 = vpop.f32.mrf.mxu1 }
 0x98c   :  { %v4533_v58 = vadd.f32 %v4532_v57, %v4333_v55  ;;  %v4539_v4 = vmax.f32 %v4531_v59, 0.0 }
 0x98d   :  { %v4534_v25 = vpop.f32.mrf.mxu1 }
 0x98e   :  { %v4535_v26 = vadd.f32 %v4534_v25, %v4329_v56  ;;  %v4540_v2 = vmax.f32 %v4533_v58, 0.0 }
 0x98f   :  { %v4536_v60 = vpop.f32.mrf.mxu1 }
 0x990   :  { %v4537_v61 = vadd.f32 %v4536_v60, %v4333_v55  ;;  %v4541_v1 = vmax.f32 %v4535_v26, 0.0  ;;  %v4835_v55 = vrot.slane %v4828_v52, %v7741_v31  ;;  %v7052_v31 = vld [vmem:[#allocation29 + $0x8] sm:$0xff]  }
 0x992   :  { %v4542_v3 = vmax.f32 %v4537_v61, 0.0  ;;  %v4576_v6 = vpack.c.bf16 %v4541_v1, %v4539_v4 }
 0x994   :  { %v4577_v5 = vpack.c.bf16 %v4542_v3, %v4540_v2 }
 0x996   :  { %4781 = vmatprep.mubr.bf16.mxu0 %v4577_v5 }
 0x997   :  { %4782 = vmatmul.mubr.bf16.vlgmr.msra.gmra.mxu0 %v4576_v6  ;;  %v7050_v6 = vld [vmem:[#allocation29 + $0x18] sm:$0xff]  }
 0x998   :  { %6025 = vmatpush3.bf16.msra.mxu0 %v7031_v15 }
 0x999   :  { %6026 = vmatprep.subr.bf16.mxu0 %v7032_v62 }
 0x99c   :  { %6027 = vmatpush3.bf16.msra.mxu0 %v7033_v63 }
 0x99d   :  { %6028 = vmatprep.subr.bf16.mxu0 %v7034_v16 }
 0x9a0   :  { %6029 = vmatpush3.bf16.msra.mxu0 %v7035_v17 }
 0x9a1   :  { %6030 = vmatprep.subr.bf16.mxu0 %v7036_v18 }
 0x9a4   :  { %6031 = vmatpush3.bf16.msra.mxu0 %v7037_v11  ;;  %v6012_v11 = vld [vmem:[%s7661_s27] ss:$0 sm:$0xff] }
 0x9a5   :  { %6032 = vmatprep.subr.bf16.mxu0 %v7038_v19 }
 0x9a8   :  { %6033 = vmatpush3.bf16.msra.mxu0 %v7039_v20 }
 0x9a9   :  { %6034 = vmatprep.subr.bf16.mxu0 %v7040_v35 }
 0x9ac   :  { %6035 = vmatpush3.bf16.msra.mxu0 %v7041_v44 }
 0x9ad   :  { %6036 = vmatprep.subr.bf16.mxu0 %v7042_v45 }
 0x9b0   :  { %6037 = vmatpush3.bf16.msra.mxu0 %v7043_v46 }
 0x9b1   :  { %6038 = vmatprep.subr.bf16.mxu0 %v7044_v39 }
 0x9b4   :  { %6039 = vmatpush3.bf16.msra.mxu0 %v7045_v47 }
 0xa57   :  { %v4783_v22 = vpop.f32.mrf.mxu0 }
 0xa58   :  { %v4784_v34 = vadd.f32 %v4783_v22, %v4582_v24 }
 0xa59   :  { %v4785_v27 = vpop.f32.mrf.mxu0 }
 0xa5a   :  { %v4786_v32 = vadd.f32 %v4785_v27, %v4586_v23  ;;  %v4792_v42 = vmax.f32 %v4784_v34, 0.0 }
 0xa5b   :  { %v4787_v28 = vpop.f32.mrf.mxu0 }
 0xa5c   :  { %v4788_v33 = vadd.f32 %v4787_v28, %v4582_v24  ;;  %v4793_v40 = vmax.f32 %v4786_v32, 0.0 }
 0xa5d   :  { %v4789_v36 = vpop.f32.mrf.mxu0 }
 0xa5e   :  { %v4790_v37 = vadd.f32 %v4789_v36, %v4586_v23  ;;  %v4794_v38 = vmax.f32 %v4788_v33, 0.0 }
 0xa60   :  { %v4795_v41 = vmax.f32 %v4790_v37, 0.0  ;;  %v4829_v29 = vpack.c.bf16 %v4794_v38, %v4792_v42 }
 0xa62   :  { %v4830_v43 = vpack.c.bf16 %v4795_v41, %v4793_v40 }
 0xa64   :  { %5034 = vmatprep.mubr.bf16.mxu1 %v4830_v43 }
 0xa65   :  { %5035 = vmatmul.mubr.bf16.vlgmr.msra.gmra.mxu1 %v4829_v29 }
 0xa66   :  { %6079 = vmatprep.mubr.msk.bf16.mxu1 %vm7510_vm0, %v7509_v0  ;;  %6064 = vmatpush3.bf16.msra.mxu1 %v7046_v48 }
 0xa67   :  { %6065 = vmatprep.subr.bf16.mxu1 %v7509_v0 }
 0xa6a   :  { %6066 = vmatpush3.bf16.msra.mxu1 %v7047_v49 }
 0xa6b   :  { %6067 = vmatprep.subr.bf16.mxu1 %v7509_v0 }
 0xa6e   :  { %6068 = vmatpush3.bf16.msra.mxu1 %v7048_v50 }
 0xa6f   :  { %6069 = vmatprep.subr.bf16.mxu1 %v7509_v0 }
 0xa72   :  { %6070 = vmatpush3.bf16.msra.mxu1 %v7049_v51 }
 0xa73   :  { %6071 = vmatprep.subr.bf16.mxu1 %v7509_v0 }
 0xa76   :  { %6072 = vmatpush3.bf16.msra.mxu1 %v7050_v6 }
 0xa77   :  { %6073 = vmatprep.subr.bf16.mxu1 %v7509_v0 }
 0xa7a   :  { %6074 = vmatpush3.bf16.msra.mxu1 %v7051_v30 }
 0xa7b   :  { %6075 = vmatprep.subr.bf16.mxu1 %v7509_v0 }
 0xa7e   :  { %6076 = vmatpush3.bf16.msra.mxu1 %v7052_v31 }
 0xa7f   :  { %6077 = vmatprep.subr.bf16.mxu1 %v7509_v0 }
 0xa82   :  { %6078 = vmatpush3.bf16.msra.mxu1 %v7053_v7 }
 0xb25   :  { %v5036_v53 = vpop.f32.mrf.mxu1 }
 0xb26   :  { %v5037_v26 = vadd.f32 %v5036_v53, %v4835_v55 }
 0xb27   :  { %v5038_v56 = vpop.f32.mrf.mxu1 }
 0xb28   :  { %v5039_v25 = vadd.f32 %v5038_v56, %v4839_v54  ;;  %v5045_v3 = vmax.f32 %v5037_v26, 0.0 }
 0xb29   :  { %v5040_v57 = vpop.f32.mrf.mxu1 }
 0xb2a   :  { %v5041_v58 = vadd.f32 %v5040_v57, %v4835_v55  ;;  %v5046_v1 = vmax.f32 %v5039_v25, 0.0 }
 0xb2b   :  { %v5042_v59 = vpop.f32.mrf.mxu1 }
 0xb2c   :  { %v5043_v60 = vadd.f32 %v5042_v59, %v4839_v54  ;;  %v5047_v61 = vmax.f32 %v5041_v58, 0.0 }
 0xb2e   :  { %v5048_v2 = vmax.f32 %v5043_v60, 0.0  ;;  %v5082_v5 = vpack.c.bf16 %v5047_v61, %v5045_v3 }
 0xb30   :  { %v5083_v4 = vpack.c.bf16 %v5048_v2, %v5046_v1 }
 0xb32   :  { %5218 = vmatprep.mubr.bf16.mxu0 %v5083_v4 }
 0xb33   :  { %5219 = vmatmul.mubr.bf16.vlgmr.msra.gmra.mxu0 %v5082_v5 }
 0xbf3   :  { %v6040_v8 = vpop.f32.mrf.mxu0 }
 0xbf5   :  { %v6041_v9 = vpop.f32.mrf.mxu0 }
 0xbf6   :  { %v6042_v10 = vadd.f32 %v6041_v9, %v6040_v8 }
 0xbf7   :  { %v6043_v13 = vpop.f32.mrf.mxu0 }
 0xbf8   :  { %v5221_v15 = vadd.f32 %v6042_v10, %v5995_v12 }
 0xbf9   :  { %v6044_v14 = vpop.f32.mrf.mxu0 }
 0xbfa   :  { %v6045_v62 = vadd.f32 %v6044_v14, %v6043_v13  ;;  %v5227_v16 = vmax.f32 %v5221_v15, 0.0 }
 0xbfc   :  { %v5224_v63 = vadd.f32 %v6045_v62, %v5995_v12 }
 0xbfe   :  { %v5228_v17 = vmax.f32 %v5224_v63, 0.0 }
 0xc00   :  { %v5246_v18 = vpack.c.bf16 %v5228_v17, %v5227_v16 }
 0xc02   :  { %6080 = vmatmul.mubr.bf16.vlgmr.msra.gmra.mxu1 %v5246_v18 }
 0xcc2   :  { %v5335_v19 = vpop.f32.mrf.mxu1 }
 0xcc3   :  { %v5336_v20 = vadd.f32 %v6012_v11, %v5335_v19 }
 0xcc4   :  { %v6081_v0 = vpop.f32.mrf.mxu1 }
 0xcc5   :  { %5342 = vst [vmem:[#allocation31] sm:$0xff] %v5336_v20 }
 0xcc6   :  { %v5338_v21 = vpop.f32.mrf.mxu1 }
 0xcc7   :  { %v5339_v22 = vadd.f32 %v6012_v11, %v5338_v21 }
 0xcc8   :  { %v6082_v23 = vpop.f32.mrf.mxu1 }
 0xcc9   :  { %5343 = vst [vmem:[#allocation31 + $0x8] sm:$0xff] %v5339_v22 }
 0xcca   :  { %7425 = shalt.err (!%p7422_p10)
}
 0xccb   :  { %5355 = dma.vmem_to_hbm [thread:$0]  %s5350_s11, 256, %s7666_s19, [#allocation4], %s7490_s28, %s7490_s28, %s7491_s1  }
 0xccc   :  { %7454 = dma.done.wait [#allocation4], 256  }
 0xccd   :  { %7455 = vsyncadd [#allocation4], 4294967040 }
 0xcce   :  { %5359 = vsyncpa [#allocation3], 1 }
 0xccf   :  { %5360 = vsyncpa [#allocation6], 1 }
 0xcd0   :  { %5361 = vsyncpa [#allocation9], 1 }
 0xcd1   :  { %5362 = vsyncpa [#allocation12], 1 }
 0xcd2   :  { %5363 = vsyncpa [#allocation15], 1 }
 0xcd3   :  { %5364 = vsyncpa [#allocation18], 1 }
 0xcd4   :  { %5365 = vsyncpa [#allocation21], 1 }
 0xcd5   :  { %5366 = vsyncpa [#allocation24], 1 }
 0xcd6   :  { %5367 = vsyncpa [#allocation27], 1 }
 0xcd7   :  { %5368 = vsyncpa [#allocation30], 1 }
 0xcd8   :  { %5369 = vsyncpa [#allocation4], 1 }

</bundles_post_ra>
